<compile_context>
chip_gen: v6e
topology: v6e:2x2x1
jax: 0.10.0
libtpu: 0.0.40
codegen_flags: <defaults>
</compile_context>

<pallas_src>
import functools

import jax
import jax.numpy as jnp
from jax.experimental import pallas as pl
from jax.experimental.pallas import tpu as pltpu

# ----------------------------- config (small, DistilBERT-shaped) --------------
VOCAB = 100        # vocab_size
MAX_POS = 16       # max_position_embeddings
DIM = 32           # config.dim (hidden size)
N_HEADS = 4        # config.n_heads
FFN_DIM = 64       # config.hidden_dim
N_LAYERS = 2       # config.n_layers
NUM_CLASSES = 2
BATCH = 2
SEQ = 8
LN_EPS = 1e-12     # DistilBERT LayerNorm eps
LANE = 128         # lane-dense output width


# ----------------------------- in-kernel helpers -------------------------------
def _layer_norm(x, gamma, beta):
    # x: (N, D); gamma/beta: (1, D); all f32
    mu = jnp.mean(x, axis=-1, keepdims=True)
    var = jnp.mean((x - mu) ** 2, axis=-1, keepdims=True)
    return (x - mu) * jax.lax.rsqrt(var + LN_EPS) * gamma + beta


def _gelu(x):
    # TODO(synk): HF DistilBERT uses exact erf-GELU; tanh approximation used for Mosaic-safe lowering.
    c = 0.7978845608028654  # sqrt(2/pi)
    return 0.5 * x * (1.0 + jnp.tanh(c * (x + 0.044715 * x * x * x)))


# ----------------------------- fused forward kernel ----------------------------
def fused_forward_kernel(emb_ref, mask_ref, pool_ref, eg_ref, eb_ref,
                         wqkv_ref, bqkv_ref, wo_ref, bo_ref,
                         g1_ref, be1_ref, w1_ref, bf1_ref, w2_ref, bf2_ref,
                         g2_ref, be2_ref, wp_ref, bp_ref, wc_ref, bc_ref,
                         o_ref, *, num_layers, num_heads, batch, seq):
    B, S, H = batch, seq, num_heads
    D = emb_ref.shape[-1]
    N = B * S
    dh = D // H

    # ---- embedding LayerNorm (word + position add already done in wrapper) ----
    x = _layer_norm(emb_ref[...], eg_ref[...], eb_ref[...])        # (N, D) f32

    addmask = mask_ref[...]                                        # (B, 1, S): 0 keep / -1e9 masked

    # ---- transformer layers, fully unrolled, all weights VMEM-resident ----
    for l in range(num_layers):
        x_bf = x.astype(jnp.bfloat16)

        # fused QKV projection: one lane-dense matmul per layer.
        # 1/sqrt(dh) already folded into the Q columns of wqkv / bqkv.
        qkv = jnp.dot(x_bf, wqkv_ref[l],
                      preferred_element_type=jnp.float32) + bqkv_ref[l]   # (N, 3D) f32

        # per-head attention, batched over the example axis (O(B*S^2)).
        ctx_heads = []
        for h in range(H):
            qh = qkv[:, h * dh:(h + 1) * dh].reshape(B, S, dh).astype(jnp.bfloat16)
            kh = qkv[:, D + h * dh:D + (h + 1) * dh].reshape(B, S, dh).astype(jnp.bfloat16)
            vh = qkv[:, 2 * D + h * dh:2 * D + (h + 1) * dh].reshape(B, S, dh).astype(jnp.bfloat16)

            s = jnp.einsum('bqe,bke->bqk', qh, kh,
                           preferred_element_type=jnp.float32)            # (B, S, S) f32
            s = s + addmask                                               # broadcast over query dim
            m = jnp.max(s, axis=-1, keepdims=True)
            e = jnp.exp(s - m)
            p = e / jnp.sum(e, axis=-1, keepdims=True)                    # exact softmax

            ctx = jnp.einsum('bqk,bke->bqe', p.astype(jnp.bfloat16), vh,
                             preferred_element_type=jnp.float32)          # (B, S, dh) f32
            ctx_heads.append(ctx.reshape(N, dh))

        # head merge (lane concat) + single output-projection matmul.
        ctx_all = jnp.concatenate(ctx_heads, axis=-1).astype(jnp.bfloat16)  # (N, D)
        attn = jnp.dot(ctx_all, wo_ref[l],
                       preferred_element_type=jnp.float32) + bo_ref[l]      # (N, D) f32
        sa = _layer_norm(attn + x, g1_ref[l], be1_ref[l])

        # FFN
        h1 = jnp.dot(sa.astype(jnp.bfloat16), w1_ref[l],
                     preferred_element_type=jnp.float32) + bf1_ref[l]       # (N, F)
        h1 = _gelu(h1)
        ff = jnp.dot(h1.astype(jnp.bfloat16), w2_ref[l],
                     preferred_element_type=jnp.float32) + bf2_ref[l]       # (N, D)
        x = _layer_norm(ff + sa, g2_ref[l], be2_ref[l])

    # ---- pooling (hidden_state[:, 0]) via one-hot selection matmul + head ----
    pooled = jnp.dot(pool_ref[...], x.astype(jnp.bfloat16),
                     preferred_element_type=jnp.float32)                    # (B, D)
    hcls = jnp.dot(pooled.astype(jnp.bfloat16), wp_ref[...],
                   preferred_element_type=jnp.float32) + bp_ref[...]        # (B, D)
    hcls = jnp.maximum(hcls, 0.0)                                           # ReLU
    # TODO(synk): attention / FFN / seq_classif dropout are identity in eval mode; head_mask unsupported (None).
    o_ref[...] = jnp.dot(hcls.astype(jnp.bfloat16), wc_ref[...],
                         preferred_element_type=jnp.float32) + bc_ref[...]  # (B, 128) lane-dense


# ----------------------------- parameter init / prep ---------------------------
def init_raw_params(key):
    """Standard (in, out)-layout f32 parameters, DistilBERT structure."""
    def lin(k, fan_in, fan_out):
        kw, _ = jax.random.split(k)
        w = 0.02 * jax.random.normal(kw, (fan_in, fan_out), jnp.float32)
        b = jnp.zeros((1, fan_out), jnp.float32)
        return w, b

    keys = jax.random.split(key, 4 + N_LAYERS)
    params = {
        'word_emb': 0.02 * jax.random.normal(keys[0], (VOCAB, DIM), jnp.float32),
        'pos_emb': 0.02 * jax.random.normal(keys[1], (MAX_POS, DIM), jnp.float32),
        'emb_ln_g': jnp.ones((1, DIM), jnp.float32),
        'emb_ln_b': jnp.zeros((1, DIM), jnp.float32),
        'layers': [],
    }
    for l in range(N_LAYERS):
        lk = jax.random.split(keys[4 + l], 6)
        wq, bq = lin(lk[0], DIM, DIM)
        wk, bk = lin(lk[1], DIM, DIM)
        wv, bv = lin(lk[2], DIM, DIM)
        wo, bo = lin(lk[3], DIM, DIM)
        w1, b1 = lin(lk[4], DIM, FFN_DIM)
        w2, b2 = lin(lk[5], FFN_DIM, DIM)
        params['layers'].append(dict(
            wq=wq, bq=bq, wk=wk, bk=bk, wv=wv, bv=bv, wo=wo, bo=bo,
            ln1_g=jnp.ones((1, DIM), jnp.float32), ln1_b=jnp.zeros((1, DIM), jnp.float32),
            w1=w1, b1=b1, w2=w2, b2=b2,
            ln2_g=jnp.ones((1, DIM), jnp.float32), ln2_b=jnp.zeros((1, DIM), jnp.float32),
        ))
    wp, bp = lin(keys[2], DIM, DIM)          # pre_classifier
    wc, bc = lin(keys[3], DIM, NUM_CLASSES)  # classifier
    params.update(wp=wp, bp=bp, wc=wc, bc=bc)
    return params


def prepare_params(raw):
    """Fused QKV (scale folded into Q), layer-stacked bf16 matmul weights, lane-padded classifier."""
    dh = DIM // N_HEADS
    scale = 1.0 / float(dh) ** 0.5
    layers = raw['layers']

    def stack(fn, dtype=None):
        a = jnp.stack([fn(lp) for lp in layers])
        return a.astype(dtype) if dtype is not None else a

    # Fused QKV: (L, D, 3D) bf16 weight / (L, 1, 3D) f32 bias; 1/sqrt(dh) folded into Q.
    wqkv = stack(lambda lp: jnp.concatenate(
        [lp['wq'] * scale, lp['wk'], lp['wv']], axis=1), jnp.bfloat16)
    bqkv = stack(lambda lp: jnp.concatenate(
        [lp['bq'] * scale, lp['bk'], lp['bv']], axis=1))

    wc_pad = jnp.zeros((DIM, LANE), jnp.float32).at[:, :NUM_CLASSES].set(raw['wc'])
    bc_pad = jnp.zeros((1, LANE), jnp.float32).at[:, :NUM_CLASSES].set(raw['bc'])

    return dict(
        word_emb=raw['word_emb'], pos_emb=raw['pos_emb'],
        emb_ln_g=raw['emb_ln_g'], emb_ln_b=raw['emb_ln_b'],
        wqkv=wqkv, bqkv=bqkv,
        wo=stack(lambda lp: lp['wo'], jnp.bfloat16), bo=stack(lambda lp: lp['bo']),
        ln1_g=stack(lambda lp: lp['ln1_g']), ln1_b=stack(lambda lp: lp['ln1_b']),
        w1=stack(lambda lp: lp['w1'], jnp.bfloat16), b1=stack(lambda lp: lp['b1']),
        w2=stack(lambda lp: lp['w2'], jnp.bfloat16), b2=stack(lambda lp: lp['b2']),
        ln2_g=stack(lambda lp: lp['ln2_g']), ln2_b=stack(lambda lp: lp['ln2_b']),
        wp=raw['wp'].astype(jnp.bfloat16), bp=raw['bp'],
        wc=wc_pad.astype(jnp.bfloat16), bc=bc_pad,
    )


# ----------------------------- full forward -------------------------------------
def distilbert_for_sequence_classification(params, input_ids, attention_mask):
    assert attention_mask is not None, 'attention mask is none'
    B, S = input_ids.shape
    N = B * S
    dh = DIM // N_HEADS

    # embedding gather + position add stay in plain JAX (glue); everything else is one fused kernel.
    word = jnp.take(params['word_emb'], input_ids, axis=0).astype(jnp.float32)   # (B, S, D)
    pos = params['pos_emb'][:S].astype(jnp.float32)                              # (S, D)
    emb = (word + pos[None, :, :]).reshape(N, DIM)                               # (N, D)

    # per-example additive key mask: 0 keep / -1e9 masked, shape (B, 1, S).
    addmask = jnp.where(attention_mask != 0, 0.0, -1e9).astype(jnp.float32)[:, None, :]

    # one-hot selector picking row b*S (the [CLS] token) of the (N, D) slab → MXU pooling.
    pool_sel = jax.nn.one_hot(jnp.arange(B) * S, N, dtype=jnp.bfloat16)          # (B, N)

    args = (emb, addmask, pool_sel,
            params['emb_ln_g'], params['emb_ln_b'],
            params['wqkv'], params['bqkv'], params['wo'], params['bo'],
            params['ln1_g'], params['ln1_b'],
            params['w1'], params['b1'], params['w2'], params['b2'],
            params['ln2_g'], params['ln2_b'],
            params['wp'], params['bp'], params['wc'], params['bc'])

    flops = N_LAYERS * (2 * N * DIM * 3 * DIM        # fused QKV
                        + 4 * B * N_HEADS * S * S * dh  # scores + ctx
                        + 2 * N * DIM * DIM          # output projection
                        + 4 * N * DIM * FFN_DIM)     # FFN
    flops += 2 * B * N * DIM + 2 * B * DIM * DIM + 2 * B * DIM * LANE
    transcendentals = N_LAYERS * (B * N_HEADS * S * S + N * FFN_DIM)
    bytes_accessed = sum(int(a.size) * a.dtype.itemsize for a in args) + B * LANE * 4

    vmem_spec = pl.BlockSpec(memory_space=pltpu.MemorySpace.VMEM)
    logits_pad = pl.pallas_call(
        functools.partial(fused_forward_kernel, num_layers=N_LAYERS,
                          num_heads=N_HEADS, batch=B, seq=S),
        out_shape=jax.ShapeDtypeStruct((B, LANE), jnp.float32),    # lane-dense output
        in_specs=[vmem_spec] * len(args),
        out_specs=vmem_spec,
        compiler_params=pltpu.CompilerParams(vmem_limit_bytes=32 * 1024 * 1024),
        cost_estimate=pl.CostEstimate(flops=flops,
                                      transcendentals=transcendentals,
                                      bytes_accessed=bytes_accessed),
    )(*args)
    return logits_pad[:, :NUM_CLASSES]


# ----------------------------- main ----------------------------------------------
if __name__ == "__main__":
    key = jax.random.PRNGKey(0)
    k_param, k_ids = jax.random.split(key)
    raw = init_raw_params(k_param)
    params = prepare_params(raw)

    input_ids = jax.random.randint(k_ids, (BATCH, SEQ), 0, VOCAB, dtype=jnp.int32)
    attention_mask = jnp.ones((BATCH, SEQ), jnp.int32)
    attention_mask = attention_mask.at[1, SEQ - 2:].set(0)  # exercise masking

    logits = distilbert_for_sequence_classification(params, input_ids, attention_mask)
    logits = jax.block_until_ready(logits)
    assert logits.shape == (BATCH, NUM_CLASSES)
    assert bool(jnp.all(jnp.isfinite(logits)))
    print("KERNEL_OK")
</pallas_src>

<mosaic_0001>
module attributes {stable_mosaic.version = 11 : i64} {
  func.func @fused_forward_kernel(%arg0: memref<16x32xf32, #tpu.memory_space<vmem>>, %arg1: memref<2x1x8xf32, #tpu.memory_space<vmem>>, %arg2: memref<2x16xbf16, #tpu.memory_space<vmem>>, %arg3: memref<1x32xf32, #tpu.memory_space<vmem>>, %arg4: memref<1x32xf32, #tpu.memory_space<vmem>>, %arg5: memref<2x32x96xbf16, #tpu.memory_space<vmem>>, %arg6: memref<2x1x96xf32, #tpu.memory_space<vmem>>, %arg7: memref<2x32x32xbf16, #tpu.memory_space<vmem>>, %arg8: memref<2x1x32xf32, #tpu.memory_space<vmem>>, %arg9: memref<2x1x32xf32, #tpu.memory_space<vmem>>, %arg10: memref<2x1x32xf32, #tpu.memory_space<vmem>>, %arg11: memref<2x32x64xbf16, #tpu.memory_space<vmem>>, %arg12: memref<2x1x64xf32, #tpu.memory_space<vmem>>, %arg13: memref<2x64x32xbf16, #tpu.memory_space<vmem>>, %arg14: memref<2x1x32xf32, #tpu.memory_space<vmem>>, %arg15: memref<2x1x32xf32, #tpu.memory_space<vmem>>, %arg16: memref<2x1x32xf32, #tpu.memory_space<vmem>>, %arg17: memref<32x32xbf16, #tpu.memory_space<vmem>>, %arg18: memref<1x32xf32, #tpu.memory_space<vmem>>, %arg19: memref<32x128xbf16, #tpu.memory_space<vmem>>, %arg20: memref<1x128xf32, #tpu.memory_space<vmem>>, %arg21: memref<2x128xf32, #tpu.memory_space<vmem>>) attributes {dimension_semantics = [], scalar_prefetch = 0 : i64, scratch_operands = 0 : i64, tpu.core_type = #tpu.core_type<tc>} {
    %c0 = arith.constant 0 : index
    %c0_0 = arith.constant 0 : index
    %0 = vector.load %arg0[%c0, %c0_0] : memref<16x32xf32, #tpu.memory_space<vmem>>, vector<16x32xf32>
    %c0_1 = arith.constant 0 : index
    %c0_2 = arith.constant 0 : index
    %1 = vector.load %arg3[%c0_1, %c0_2] : memref<1x32xf32, #tpu.memory_space<vmem>>, vector<1x32xf32>
    %c0_3 = arith.constant 0 : index
    %c0_4 = arith.constant 0 : index
    %2 = vector.load %arg4[%c0_3, %c0_4] : memref<1x32xf32, #tpu.memory_space<vmem>>, vector<1x32xf32>
    %cst = arith.constant dense<0.000000e+00> : vector<16xf32>
    %3 = vector.multi_reduction <add>, %0, %cst [1] : vector<16x32xf32> to vector<16xf32>
    %4 = vector.shape_cast %3 : vector<16xf32> to vector<16x1xf32>
    %cst_5 = arith.constant 3.200000e+01 : f32
    %5 = vector.broadcast %cst_5 : f32 to vector<16x1xf32>
    %6 = arith.divf %4, %5 : vector<16x1xf32>
    %7 = vector.broadcast %6 : vector<16x1xf32> to vector<16x32xf32>
    %8 = arith.subf %0, %7 : vector<16x32xf32>
    %9 = arith.mulf %8, %8 : vector<16x32xf32>
    %cst_6 = arith.constant dense<0.000000e+00> : vector<16xf32>
    %10 = vector.multi_reduction <add>, %9, %cst_6 [1] : vector<16x32xf32> to vector<16xf32>
    %11 = vector.shape_cast %10 : vector<16xf32> to vector<16x1xf32>
    %cst_7 = arith.constant 3.200000e+01 : f32
    %12 = vector.broadcast %cst_7 : f32 to vector<16x1xf32>
    %13 = arith.divf %11, %12 : vector<16x1xf32>
    %14 = vector.broadcast %6 : vector<16x1xf32> to vector<16x32xf32>
    %15 = arith.subf %0, %14 : vector<16x32xf32>
    %cst_8 = arith.constant 9.99999996E-13 : f32
    %16 = vector.broadcast %cst_8 : f32 to vector<16x1xf32>
    %17 = arith.addf %13, %16 : vector<16x1xf32>
    %18 = math.rsqrt %17 : vector<16x1xf32>
    %19 = vector.broadcast %18 : vector<16x1xf32> to vector<16x32xf32>
    %20 = arith.mulf %15, %19 : vector<16x32xf32>
    %21 = vector.broadcast %1 : vector<1x32xf32> to vector<16x32xf32>
    %22 = arith.mulf %20, %21 : vector<16x32xf32>
    %23 = vector.broadcast %2 : vector<1x32xf32> to vector<16x32xf32>
    %24 = arith.addf %22, %23 : vector<16x32xf32>
    %c0_9 = arith.constant 0 : index
    %c0_10 = arith.constant 0 : index
    %c0_11 = arith.constant 0 : index
    %25 = vector.load %arg1[%c0_9, %c0_10, %c0_11] : memref<2x1x8xf32, #tpu.memory_space<vmem>>, vector<2x1x8xf32>
    %26 = arith.truncf %24 : vector<16x32xf32> to vector<16x32xbf16>
    %c0_12 = arith.constant 0 : index
    %c0_13 = arith.constant 0 : index
    %c0_14 = arith.constant 0 : index
    %27 = vector.load %arg5[%c0_12, %c0_13, %c0_14] : memref<2x32x96xbf16, #tpu.memory_space<vmem>>, vector<1x32x96xbf16>
    %28 = vector.shape_cast %27 : vector<1x32x96xbf16> to vector<32x96xbf16>
    %cst_15 = arith.constant dense<0.000000e+00> : vector<16x96xf32>
    %29 = tpu.matmul %26, %28, %cst_15 {dimension_numbers = #tpu.dot_dimension_numbers<[1], [0], [0], [1], [0, 0, 1, 1], [], []>} : vector<16x32xbf16>, vector<32x96xbf16>, vector<16x96xf32> -> vector<16x96xf32>
    %c0_16 = arith.constant 0 : index
    %c0_17 = arith.constant 0 : index
    %c0_18 = arith.constant 0 : index
    %30 = vector.load %arg6[%c0_16, %c0_17, %c0_18] : memref<2x1x96xf32, #tpu.memory_space<vmem>>, vector<1x1x96xf32>
    %31 = vector.shape_cast %30 : vector<1x1x96xf32> to vector<1x96xf32>
    %32 = vector.broadcast %31 : vector<1x96xf32> to vector<16x96xf32>
    %33 = arith.addf %29, %32 : vector<16x96xf32>
    %34 = vector.extract_strided_slice %33 {offsets = [0, 0], sizes = [16, 8], strides = [1, 1]} : vector<16x96xf32> to vector<16x8xf32>
    %35 = vector.shape_cast %34 : vector<16x8xf32> to vector<2x8x8xf32>
    %36 = arith.truncf %35 : vector<2x8x8xf32> to vector<2x8x8xbf16>
    %37 = vector.extract_strided_slice %33 {offsets = [0, 32], sizes = [16, 8], strides = [1, 1]} : vector<16x96xf32> to vector<16x8xf32>
    %38 = vector.shape_cast %37 : vector<16x8xf32> to vector<2x8x8xf32>
    %39 = arith.truncf %38 : vector<2x8x8xf32> to vector<2x8x8xbf16>
    %40 = vector.extract_strided_slice %33 {offsets = [0, 64], sizes = [16, 8], strides = [1, 1]} : vector<16x96xf32> to vector<16x8xf32>
    %41 = vector.shape_cast %40 : vector<16x8xf32> to vector<2x8x8xf32>
    %42 = arith.truncf %41 : vector<2x8x8xf32> to vector<2x8x8xbf16>
    "tpu.trace_start"() <{level = 10 : i32, message = "bqe,bke->bqk"}> : () -> ()
    %cst_19 = arith.constant dense<0.000000e+00> : vector<2x8x8xf32>
    %43 = tpu.matmul %36, %39, %cst_19 {dimension_numbers = #tpu.dot_dimension_numbers<[2], [2], [1], [1], [0, 0, 0, 1, 1, 1], [0], [0]>} : vector<2x8x8xbf16>, vector<2x8x8xbf16>, vector<2x8x8xf32> -> vector<2x8x8xf32>
    "tpu.trace_stop"() : () -> ()
    %44 = vector.broadcast %25 : vector<2x1x8xf32> to vector<2x8x8xf32>
    %45 = arith.addf %43, %44 : vector<2x8x8xf32>
    %cst_20 = arith.constant dense<0xFF800000> : vector<2x8xf32>
    %46 = vector.multi_reduction <maximumf>, %45, %cst_20 [2] : vector<2x8x8xf32> to vector<2x8xf32>
    %47 = vector.shape_cast %46 : vector<2x8xf32> to vector<2x8x1xf32>
    %48 = vector.broadcast %47 : vector<2x8x1xf32> to vector<2x8x8xf32>
    %49 = arith.subf %45, %48 : vector<2x8x8xf32>
    %50 = math.exp %49 : vector<2x8x8xf32>
    %cst_21 = arith.constant dense<0.000000e+00> : vector<2x8xf32>
    %51 = vector.multi_reduction <add>, %50, %cst_21 [2] : vector<2x8x8xf32> to vector<2x8xf32>
    %52 = vector.shape_cast %51 : vector<2x8xf32> to vector<2x8x1xf32>
    %53 = vector.broadcast %52 : vector<2x8x1xf32> to vector<2x8x8xf32>
    %54 = arith.divf %50, %53 : vector<2x8x8xf32>
    %55 = arith.truncf %54 : vector<2x8x8xf32> to vector<2x8x8xbf16>
    "tpu.trace_start"() <{level = 10 : i32, message = "bqk,bke->bqe"}> : () -> ()
    %cst_22 = arith.constant dense<0.000000e+00> : vector<2x8x8xf32>
    %56 = tpu.matmul %55, %42, %cst_22 {dimension_numbers = #tpu.dot_dimension_numbers<[2], [1], [1], [2], [0, 0, 0, 1, 1, 2], [0], [0]>} : vector<2x8x8xbf16>, vector<2x8x8xbf16>, vector<2x8x8xf32> -> vector<2x8x8xf32>
    "tpu.trace_stop"() : () -> ()
    %57 = vector.shape_cast %56 : vector<2x8x8xf32> to vector<16x8xf32>
    %58 = vector.extract_strided_slice %33 {offsets = [0, 8], sizes = [16, 8], strides = [1, 1]} : vector<16x96xf32> to vector<16x8xf32>
    %59 = vector.shape_cast %58 : vector<16x8xf32> to vector<2x8x8xf32>
    %60 = arith.truncf %59 : vector<2x8x8xf32> to vector<2x8x8xbf16>
    %61 = vector.extract_strided_slice %33 {offsets = [0, 40], sizes = [16, 8], strides = [1, 1]} : vector<16x96xf32> to vector<16x8xf32>
    %62 = vector.shape_cast %61 : vector<16x8xf32> to vector<2x8x8xf32>
    %63 = arith.truncf %62 : vector<2x8x8xf32> to vector<2x8x8xbf16>
    %64 = vector.extract_strided_slice %33 {offsets = [0, 72], sizes = [16, 8], strides = [1, 1]} : vector<16x96xf32> to vector<16x8xf32>
    %65 = vector.shape_cast %64 : vector<16x8xf32> to vector<2x8x8xf32>
    %66 = arith.truncf %65 : vector<2x8x8xf32> to vector<2x8x8xbf16>
    "tpu.trace_start"() <{level = 10 : i32, message = "bqe,bke->bqk"}> : () -> ()
    %cst_23 = arith.constant dense<0.000000e+00> : vector<2x8x8xf32>
    %67 = tpu.matmul %60, %63, %cst_23 {dimension_numbers = #tpu.dot_dimension_numbers<[2], [2], [1], [1], [0, 0, 0, 1, 1, 1], [0], [0]>} : vector<2x8x8xbf16>, vector<2x8x8xbf16>, vector<2x8x8xf32> -> vector<2x8x8xf32>
    "tpu.trace_stop"() : () -> ()
    %68 = vector.broadcast %25 : vector<2x1x8xf32> to vector<2x8x8xf32>
    %69 = arith.addf %67, %68 : vector<2x8x8xf32>
    %cst_24 = arith.constant dense<0xFF800000> : vector<2x8xf32>
    %70 = vector.multi_reduction <maximumf>, %69, %cst_24 [2] : vector<2x8x8xf32> to vector<2x8xf32>
    %71 = vector.shape_cast %70 : vector<2x8xf32> to vector<2x8x1xf32>
    %72 = vector.broadcast %71 : vector<2x8x1xf32> to vector<2x8x8xf32>
    %73 = arith.subf %69, %72 : vector<2x8x8xf32>
    %74 = math.exp %73 : vector<2x8x8xf32>
    %cst_25 = arith.constant dense<0.000000e+00> : vector<2x8xf32>
    %75 = vector.multi_reduction <add>, %74, %cst_25 [2] : vector<2x8x8xf32> to vector<2x8xf32>
    %76 = vector.shape_cast %75 : vector<2x8xf32> to vector<2x8x1xf32>
    %77 = vector.broadcast %76 : vector<2x8x1xf32> to vector<2x8x8xf32>
    %78 = arith.divf %74, %77 : vector<2x8x8xf32>
    %79 = arith.truncf %78 : vector<2x8x8xf32> to vector<2x8x8xbf16>
    "tpu.trace_start"() <{level = 10 : i32, message = "bqk,bke->bqe"}> : () -> ()
    %cst_26 = arith.constant dense<0.000000e+00> : vector<2x8x8xf32>
    %80 = tpu.matmul %79, %66, %cst_26 {dimension_numbers = #tpu.dot_dimension_numbers<[2], [1], [1], [2], [0, 0, 0, 1, 1, 2], [0], [0]>} : vector<2x8x8xbf16>, vector<2x8x8xbf16>, vector<2x8x8xf32> -> vector<2x8x8xf32>
    "tpu.trace_stop"() : () -> ()
    %81 = vector.shape_cast %80 : vector<2x8x8xf32> to vector<16x8xf32>
    %82 = vector.extract_strided_slice %33 {offsets = [0, 16], sizes = [16, 8], strides = [1, 1]} : vector<16x96xf32> to vector<16x8xf32>
    %83 = vector.shape_cast %82 : vector<16x8xf32> to vector<2x8x8xf32>
    %84 = arith.truncf %83 : vector<2x8x8xf32> to vector<2x8x8xbf16>
    %85 = vector.extract_strided_slice %33 {offsets = [0, 48], sizes = [16, 8], strides = [1, 1]} : vector<16x96xf32> to vector<16x8xf32>
    %86 = vector.shape_cast %85 : vector<16x8xf32> to vector<2x8x8xf32>
    %87 = arith.truncf %86 : vector<2x8x8xf32> to vector<2x8x8xbf16>
    %88 = vector.extract_strided_slice %33 {offsets = [0, 80], sizes = [16, 8], strides = [1, 1]} : vector<16x96xf32> to vector<16x8xf32>
    %89 = vector.shape_cast %88 : vector<16x8xf32> to vector<2x8x8xf32>
    %90 = arith.truncf %89 : vector<2x8x8xf32> to vector<2x8x8xbf16>
    "tpu.trace_start"() <{level = 10 : i32, message = "bqe,bke->bqk"}> : () -> ()
    %cst_27 = arith.constant dense<0.000000e+00> : vector<2x8x8xf32>
    %91 = tpu.matmul %84, %87, %cst_27 {dimension_numbers = #tpu.dot_dimension_numbers<[2], [2], [1], [1], [0, 0, 0, 1, 1, 1], [0], [0]>} : vector<2x8x8xbf16>, vector<2x8x8xbf16>, vector<2x8x8xf32> -> vector<2x8x8xf32>
    "tpu.trace_stop"() : () -> ()
    %92 = vector.broadcast %25 : vector<2x1x8xf32> to vector<2x8x8xf32>
    %93 = arith.addf %91, %92 : vector<2x8x8xf32>
    %cst_28 = arith.constant dense<0xFF800000> : vector<2x8xf32>
    %94 = vector.multi_reduction <maximumf>, %93, %cst_28 [2] : vector<2x8x8xf32> to vector<2x8xf32>
    %95 = vector.shape_cast %94 : vector<2x8xf32> to vector<2x8x1xf32>
    %96 = vector.broadcast %95 : vector<2x8x1xf32> to vector<2x8x8xf32>
    %97 = arith.subf %93, %96 : vector<2x8x8xf32>
    %98 = math.exp %97 : vector<2x8x8xf32>
    %cst_29 = arith.constant dense<0.000000e+00> : vector<2x8xf32>
    %99 = vector.multi_reduction <add>, %98, %cst_29 [2] : vector<2x8x8xf32> to vector<2x8xf32>
    %100 = vector.shape_cast %99 : vector<2x8xf32> to vector<2x8x1xf32>
    %101 = vector.broadcast %100 : vector<2x8x1xf32> to vector<2x8x8xf32>
    %102 = arith.divf %98, %101 : vector<2x8x8xf32>
    %103 = arith.truncf %102 : vector<2x8x8xf32> to vector<2x8x8xbf16>
    "tpu.trace_start"() <{level = 10 : i32, message = "bqk,bke->bqe"}> : () -> ()
    %cst_30 = arith.constant dense<0.000000e+00> : vector<2x8x8xf32>
    %104 = tpu.matmul %103, %90, %cst_30 {dimension_numbers = #tpu.dot_dimension_numbers<[2], [1], [1], [2], [0, 0, 0, 1, 1, 2], [0], [0]>} : vector<2x8x8xbf16>, vector<2x8x8xbf16>, vector<2x8x8xf32> -> vector<2x8x8xf32>
    "tpu.trace_stop"() : () -> ()
    %105 = vector.shape_cast %104 : vector<2x8x8xf32> to vector<16x8xf32>
    %106 = vector.extract_strided_slice %33 {offsets = [0, 24], sizes = [16, 8], strides = [1, 1]} : vector<16x96xf32> to vector<16x8xf32>
    %107 = vector.shape_cast %106 : vector<16x8xf32> to vector<2x8x8xf32>
    %108 = arith.truncf %107 : vector<2x8x8xf32> to vector<2x8x8xbf16>
    %109 = vector.extract_strided_slice %33 {offsets = [0, 56], sizes = [16, 8], strides = [1, 1]} : vector<16x96xf32> to vector<16x8xf32>
    %110 = vector.shape_cast %109 : vector<16x8xf32> to vector<2x8x8xf32>
    %111 = arith.truncf %110 : vector<2x8x8xf32> to vector<2x8x8xbf16>
    %112 = vector.extract_strided_slice %33 {offsets = [0, 88], sizes = [16, 8], strides = [1, 1]} : vector<16x96xf32> to vector<16x8xf32>
    %113 = vector.shape_cast %112 : vector<16x8xf32> to vector<2x8x8xf32>
    %114 = arith.truncf %113 : vector<2x8x8xf32> to vector<2x8x8xbf16>
    "tpu.trace_start"() <{level = 10 : i32, message = "bqe,bke->bqk"}> : () -> ()
    %cst_31 = arith.constant dense<0.000000e+00> : vector<2x8x8xf32>
    %115 = tpu.matmul %108, %111, %cst_31 {dimension_numbers = #tpu.dot_dimension_numbers<[2], [2], [1], [1], [0, 0, 0, 1, 1, 1], [0], [0]>} : vector<2x8x8xbf16>, vector<2x8x8xbf16>, vector<2x8x8xf32> -> vector<2x8x8xf32>
    "tpu.trace_stop"() : () -> ()
    %116 = vector.broadcast %25 : vector<2x1x8xf32> to vector<2x8x8xf32>
    %117 = arith.addf %115, %116 : vector<2x8x8xf32>
    %cst_32 = arith.constant dense<0xFF800000> : vector<2x8xf32>
    %118 = vector.multi_reduction <maximumf>, %117, %cst_32 [2] : vector<2x8x8xf32> to vector<2x8xf32>
    %119 = vector.shape_cast %118 : vector<2x8xf32> to vector<2x8x1xf32>
    %120 = vector.broadcast %119 : vector<2x8x1xf32> to vector<2x8x8xf32>
    %121 = arith.subf %117, %120 : vector<2x8x8xf32>
    %122 = math.exp %121 : vector<2x8x8xf32>
    %cst_33 = arith.constant dense<0.000000e+00> : vector<2x8xf32>
    %123 = vector.multi_reduction <add>, %122, %cst_33 [2] : vector<2x8x8xf32> to vector<2x8xf32>
    %124 = vector.shape_cast %123 : vector<2x8xf32> to vector<2x8x1xf32>
    %125 = vector.broadcast %124 : vector<2x8x1xf32> to vector<2x8x8xf32>
    %126 = arith.divf %122, %125 : vector<2x8x8xf32>
    %127 = arith.truncf %126 : vector<2x8x8xf32> to vector<2x8x8xbf16>
    "tpu.trace_start"() <{level = 10 : i32, message = "bqk,bke->bqe"}> : () -> ()
    %cst_34 = arith.constant dense<0.000000e+00> : vector<2x8x8xf32>
    %128 = tpu.matmul %127, %114, %cst_34 {dimension_numbers = #tpu.dot_dimension_numbers<[2], [1], [1], [2], [0, 0, 0, 1, 1, 2], [0], [0]>} : vector<2x8x8xbf16>, vector<2x8x8xbf16>, vector<2x8x8xf32> -> vector<2x8x8xf32>
    "tpu.trace_stop"() : () -> ()
    %129 = vector.shape_cast %128 : vector<2x8x8xf32> to vector<16x8xf32>
    %130 = tpu.concatenate %57, %81, %105, %129 in 1 : vector<16x8xf32>, vector<16x8xf32>, vector<16x8xf32>, vector<16x8xf32> -> vector<16x32xf32>
    %131 = arith.truncf %130 : vector<16x32xf32> to vector<16x32xbf16>
    %c0_35 = arith.constant 0 : index
    %c0_36 = arith.constant 0 : index
    %c0_37 = arith.constant 0 : index
    %132 = vector.load %arg7[%c0_35, %c0_36, %c0_37] : memref<2x32x32xbf16, #tpu.memory_space<vmem>>, vector<1x32x32xbf16>
    %133 = vector.shape_cast %132 : vector<1x32x32xbf16> to vector<32x32xbf16>
    %cst_38 = arith.constant dense<0.000000e+00> : vector<16x32xf32>
    %134 = tpu.matmul %131, %133, %cst_38 {dimension_numbers = #tpu.dot_dimension_numbers<[1], [0], [0], [1], [0, 0, 1, 1], [], []>} : vector<16x32xbf16>, vector<32x32xbf16>, vector<16x32xf32> -> vector<16x32xf32>
    %c0_39 = arith.constant 0 : index
    %c0_40 = arith.constant 0 : index
    %c0_41 = arith.constant 0 : index
    %135 = vector.load %arg8[%c0_39, %c0_40, %c0_41] : memref<2x1x32xf32, #tpu.memory_space<vmem>>, vector<1x1x32xf32>
    %136 = vector.shape_cast %135 : vector<1x1x32xf32> to vector<1x32xf32>
    %137 = vector.broadcast %136 : vector<1x32xf32> to vector<16x32xf32>
    %138 = arith.addf %134, %137 : vector<16x32xf32>
    %139 = arith.addf %138, %24 : vector<16x32xf32>
    %c0_42 = arith.constant 0 : index
    %c0_43 = arith.constant 0 : index
    %c0_44 = arith.constant 0 : index
    %140 = vector.load %arg9[%c0_42, %c0_43, %c0_44] : memref<2x1x32xf32, #tpu.memory_space<vmem>>, vector<1x1x32xf32>
    %141 = vector.shape_cast %140 : vector<1x1x32xf32> to vector<1x32xf32>
    %c0_45 = arith.constant 0 : index
    %c0_46 = arith.constant 0 : index
    %c0_47 = arith.constant 0 : index
    %142 = vector.load %arg10[%c0_45, %c0_46, %c0_47] : memref<2x1x32xf32, #tpu.memory_space<vmem>>, vector<1x1x32xf32>
    %143 = vector.shape_cast %142 : vector<1x1x32xf32> to vector<1x32xf32>
    %cst_48 = arith.constant dense<0.000000e+00> : vector<16xf32>
    %144 = vector.multi_reduction <add>, %139, %cst_48 [1] : vector<16x32xf32> to vector<16xf32>
    %145 = vector.shape_cast %144 : vector<16xf32> to vector<16x1xf32>
    %cst_49 = arith.constant 3.200000e+01 : f32
    %146 = vector.broadcast %cst_49 : f32 to vector<16x1xf32>
    %147 = arith.divf %145, %146 : vector<16x1xf32>
    %148 = vector.broadcast %147 : vector<16x1xf32> to vector<16x32xf32>
    %149 = arith.subf %139, %148 : vector<16x32xf32>
    %150 = arith.mulf %149, %149 : vector<16x32xf32>
    %cst_50 = arith.constant dense<0.000000e+00> : vector<16xf32>
    %151 = vector.multi_reduction <add>, %150, %cst_50 [1] : vector<16x32xf32> to vector<16xf32>
    %152 = vector.shape_cast %151 : vector<16xf32> to vector<16x1xf32>
    %cst_51 = arith.constant 3.200000e+01 : f32
    %153 = vector.broadcast %cst_51 : f32 to vector<16x1xf32>
    %154 = arith.divf %152, %153 : vector<16x1xf32>
    %155 = vector.broadcast %147 : vector<16x1xf32> to vector<16x32xf32>
    %156 = arith.subf %139, %155 : vector<16x32xf32>
    %cst_52 = arith.constant 9.99999996E-13 : f32
    %157 = vector.broadcast %cst_52 : f32 to vector<16x1xf32>
    %158 = arith.addf %154, %157 : vector<16x1xf32>
    %159 = math.rsqrt %158 : vector<16x1xf32>
    %160 = vector.broadcast %159 : vector<16x1xf32> to vector<16x32xf32>
    %161 = arith.mulf %156, %160 : vector<16x32xf32>
    %162 = vector.broadcast %141 : vector<1x32xf32> to vector<16x32xf32>
    %163 = arith.mulf %161, %162 : vector<16x32xf32>
    %164 = vector.broadcast %143 : vector<1x32xf32> to vector<16x32xf32>
    %165 = arith.addf %163, %164 : vector<16x32xf32>
    %166 = arith.truncf %165 : vector<16x32xf32> to vector<16x32xbf16>
    %c0_53 = arith.constant 0 : index
    %c0_54 = arith.constant 0 : index
    %c0_55 = arith.constant 0 : index
    %167 = vector.load %arg11[%c0_53, %c0_54, %c0_55] : memref<2x32x64xbf16, #tpu.memory_space<vmem>>, vector<1x32x64xbf16>
    %168 = vector.shape_cast %167 : vector<1x32x64xbf16> to vector<32x64xbf16>
    %cst_56 = arith.constant dense<0.000000e+00> : vector<16x64xf32>
    %169 = tpu.matmul %166, %168, %cst_56 {dimension_numbers = #tpu.dot_dimension_numbers<[1], [0], [0], [1], [0, 0, 1, 1], [], []>} : vector<16x32xbf16>, vector<32x64xbf16>, vector<16x64xf32> -> vector<16x64xf32>
    %c0_57 = arith.constant 0 : index
    %c0_58 = arith.constant 0 : index
    %c0_59 = arith.constant 0 : index
    %170 = vector.load %arg12[%c0_57, %c0_58, %c0_59] : memref<2x1x64xf32, #tpu.memory_space<vmem>>, vector<1x1x64xf32>
    %171 = vector.shape_cast %170 : vector<1x1x64xf32> to vector<1x64xf32>
    %172 = vector.broadcast %171 : vector<1x64xf32> to vector<16x64xf32>
    %173 = arith.addf %169, %172 : vector<16x64xf32>
    %cst_60 = arith.constant 5.000000e-01 : f32
    %174 = vector.broadcast %cst_60 : f32 to vector<16x64xf32>
    %175 = arith.mulf %174, %173 : vector<16x64xf32>
    %cst_61 = arith.constant 4.471500e-02 : f32
    %176 = vector.broadcast %cst_61 : f32 to vector<16x64xf32>
    %177 = arith.mulf %176, %173 : vector<16x64xf32>
    %178 = arith.mulf %177, %173 : vector<16x64xf32>
    %179 = arith.mulf %178, %173 : vector<16x64xf32>
    %180 = arith.addf %173, %179 : vector<16x64xf32>
    %cst_62 = arith.constant 0.797884583 : f32
    %181 = vector.broadcast %cst_62 : f32 to vector<16x64xf32>
    %182 = arith.mulf %181, %180 : vector<16x64xf32>
    %183 = math.tanh %182 : vector<16x64xf32>
    %cst_63 = arith.constant 1.000000e+00 : f32
    %184 = vector.broadcast %cst_63 : f32 to vector<16x64xf32>
    %185 = arith.addf %184, %183 : vector<16x64xf32>
    %186 = arith.mulf %175, %185 : vector<16x64xf32>
    %187 = arith.truncf %186 : vector<16x64xf32> to vector<16x64xbf16>
    %c0_64 = arith.constant 0 : index
    %c0_65 = arith.constant 0 : index
    %c0_66 = arith.constant 0 : index
    %188 = vector.load %arg13[%c0_64, %c0_65, %c0_66] : memref<2x64x32xbf16, #tpu.memory_space<vmem>>, vector<1x64x32xbf16>
    %189 = vector.shape_cast %188 : vector<1x64x32xbf16> to vector<64x32xbf16>
    %cst_67 = arith.constant dense<0.000000e+00> : vector<16x32xf32>
    %190 = tpu.matmul %187, %189, %cst_67 {dimension_numbers = #tpu.dot_dimension_numbers<[1], [0], [0], [1], [0, 0, 1, 1], [], []>} : vector<16x64xbf16>, vector<64x32xbf16>, vector<16x32xf32> -> vector<16x32xf32>
    %c0_68 = arith.constant 0 : index
    %c0_69 = arith.constant 0 : index
    %c0_70 = arith.constant 0 : index
    %191 = vector.load %arg14[%c0_68, %c0_69, %c0_70] : memref<2x1x32xf32, #tpu.memory_space<vmem>>, vector<1x1x32xf32>
    %192 = vector.shape_cast %191 : vector<1x1x32xf32> to vector<1x32xf32>
    %193 = vector.broadcast %192 : vector<1x32xf32> to vector<16x32xf32>
    %194 = arith.addf %190, %193 : vector<16x32xf32>
    %195 = arith.addf %194, %165 : vector<16x32xf32>
    %c0_71 = arith.constant 0 : index
    %c0_72 = arith.constant 0 : index
    %c0_73 = arith.constant 0 : index
    %196 = vector.load %arg15[%c0_71, %c0_72, %c0_73] : memref<2x1x32xf32, #tpu.memory_space<vmem>>, vector<1x1x32xf32>
    %197 = vector.shape_cast %196 : vector<1x1x32xf32> to vector<1x32xf32>
    %c0_74 = arith.constant 0 : index
    %c0_75 = arith.constant 0 : index
    %c0_76 = arith.constant 0 : index
    %198 = vector.load %arg16[%c0_74, %c0_75, %c0_76] : memref<2x1x32xf32, #tpu.memory_space<vmem>>, vector<1x1x32xf32>
    %199 = vector.shape_cast %198 : vector<1x1x32xf32> to vector<1x32xf32>
    %cst_77 = arith.constant dense<0.000000e+00> : vector<16xf32>
    %200 = vector.multi_reduction <add>, %195, %cst_77 [1] : vector<16x32xf32> to vector<16xf32>
    %201 = vector.shape_cast %200 : vector<16xf32> to vector<16x1xf32>
    %cst_78 = arith.constant 3.200000e+01 : f32
    %202 = vector.broadcast %cst_78 : f32 to vector<16x1xf32>
    %203 = arith.divf %201, %202 : vector<16x1xf32>
    %204 = vector.broadcast %203 : vector<16x1xf32> to vector<16x32xf32>
    %205 = arith.subf %195, %204 : vector<16x32xf32>
    %206 = arith.mulf %205, %205 : vector<16x32xf32>
    %cst_79 = arith.constant dense<0.000000e+00> : vector<16xf32>
    %207 = vector.multi_reduction <add>, %206, %cst_79 [1] : vector<16x32xf32> to vector<16xf32>
    %208 = vector.shape_cast %207 : vector<16xf32> to vector<16x1xf32>
    %cst_80 = arith.constant 3.200000e+01 : f32
    %209 = vector.broadcast %cst_80 : f32 to vector<16x1xf32>
    %210 = arith.divf %208, %209 : vector<16x1xf32>
    %211 = vector.broadcast %203 : vector<16x1xf32> to vector<16x32xf32>
    %212 = arith.subf %195, %211 : vector<16x32xf32>
    %cst_81 = arith.constant 9.99999996E-13 : f32
    %213 = vector.broadcast %cst_81 : f32 to vector<16x1xf32>
    %214 = arith.addf %210, %213 : vector<16x1xf32>
    %215 = math.rsqrt %214 : vector<16x1xf32>
    %216 = vector.broadcast %215 : vector<16x1xf32> to vector<16x32xf32>
    %217 = arith.mulf %212, %216 : vector<16x32xf32>
    %218 = vector.broadcast %197 : vector<1x32xf32> to vector<16x32xf32>
    %219 = arith.mulf %217, %218 : vector<16x32xf32>
    %220 = vector.broadcast %199 : vector<1x32xf32> to vector<16x32xf32>
    %221 = arith.addf %219, %220 : vector<16x32xf32>
    %222 = arith.truncf %221 : vector<16x32xf32> to vector<16x32xbf16>
    %c1 = arith.constant 1 : index
    %c0_82 = arith.constant 0 : index
    %c0_83 = arith.constant 0 : index
    %223 = vector.load %arg5[%c1, %c0_82, %c0_83] : memref<2x32x96xbf16, #tpu.memory_space<vmem>>, vector<1x32x96xbf16>
    %224 = vector.shape_cast %223 : vector<1x32x96xbf16> to vector<32x96xbf16>
    %cst_84 = arith.constant dense<0.000000e+00> : vector<16x96xf32>
    %225 = tpu.matmul %222, %224, %cst_84 {dimension_numbers = #tpu.dot_dimension_numbers<[1], [0], [0], [1], [0, 0, 1, 1], [], []>} : vector<16x32xbf16>, vector<32x96xbf16>, vector<16x96xf32> -> vector<16x96xf32>
    %c1_85 = arith.constant 1 : index
    %c0_86 = arith.constant 0 : index
    %c0_87 = arith.constant 0 : index
    %226 = vector.load %arg6[%c1_85, %c0_86, %c0_87] : memref<2x1x96xf32, #tpu.memory_space<vmem>>, vector<1x1x96xf32>
    %227 = vector.shape_cast %226 : vector<1x1x96xf32> to vector<1x96xf32>
    %228 = vector.broadcast %227 : vector<1x96xf32> to vector<16x96xf32>
    %229 = arith.addf %225, %228 : vector<16x96xf32>
    %230 = vector.extract_strided_slice %229 {offsets = [0, 0], sizes = [16, 8], strides = [1, 1]} : vector<16x96xf32> to vector<16x8xf32>
    %231 = vector.shape_cast %230 : vector<16x8xf32> to vector<2x8x8xf32>
    %232 = arith.truncf %231 : vector<2x8x8xf32> to vector<2x8x8xbf16>
    %233 = vector.extract_strided_slice %229 {offsets = [0, 32], sizes = [16, 8], strides = [1, 1]} : vector<16x96xf32> to vector<16x8xf32>
    %234 = vector.shape_cast %233 : vector<16x8xf32> to vector<2x8x8xf32>
    %235 = arith.truncf %234 : vector<2x8x8xf32> to vector<2x8x8xbf16>
    %236 = vector.extract_strided_slice %229 {offsets = [0, 64], sizes = [16, 8], strides = [1, 1]} : vector<16x96xf32> to vector<16x8xf32>
    %237 = vector.shape_cast %236 : vector<16x8xf32> to vector<2x8x8xf32>
    %238 = arith.truncf %237 : vector<2x8x8xf32> to vector<2x8x8xbf16>
    "tpu.trace_start"() <{level = 10 : i32, message = "bqe,bke->bqk"}> : () -> ()
    %cst_88 = arith.constant dense<0.000000e+00> : vector<2x8x8xf32>
    %239 = tpu.matmul %232, %235, %cst_88 {dimension_numbers = #tpu.dot_dimension_numbers<[2], [2], [1], [1], [0, 0, 0, 1, 1, 1], [0], [0]>} : vector<2x8x8xbf16>, vector<2x8x8xbf16>, vector<2x8x8xf32> -> vector<2x8x8xf32>
    "tpu.trace_stop"() : () -> ()
    %240 = vector.broadcast %25 : vector<2x1x8xf32> to vector<2x8x8xf32>
    %241 = arith.addf %239, %240 : vector<2x8x8xf32>
    %cst_89 = arith.constant dense<0xFF800000> : vector<2x8xf32>
    %242 = vector.multi_reduction <maximumf>, %241, %cst_89 [2] : vector<2x8x8xf32> to vector<2x8xf32>
    %243 = vector.shape_cast %242 : vector<2x8xf32> to vector<2x8x1xf32>
    %244 = vector.broadcast %243 : vector<2x8x1xf32> to vector<2x8x8xf32>
    %245 = arith.subf %241, %244 : vector<2x8x8xf32>
    %246 = math.exp %245 : vector<2x8x8xf32>
    %cst_90 = arith.constant dense<0.000000e+00> : vector<2x8xf32>
    %247 = vector.multi_reduction <add>, %246, %cst_90 [2] : vector<2x8x8xf32> to vector<2x8xf32>
    %248 = vector.shape_cast %247 : vector<2x8xf32> to vector<2x8x1xf32>
    %249 = vector.broadcast %248 : vector<2x8x1xf32> to vector<2x8x8xf32>
    %250 = arith.divf %246, %249 : vector<2x8x8xf32>
    %251 = arith.truncf %250 : vector<2x8x8xf32> to vector<2x8x8xbf16>
    "tpu.trace_start"() <{level = 10 : i32, message = "bqk,bke->bqe"}> : () -> ()
    %cst_91 = arith.constant dense<0.000000e+00> : vector<2x8x8xf32>
    %252 = tpu.matmul %251, %238, %cst_91 {dimension_numbers = #tpu.dot_dimension_numbers<[2], [1], [1], [2], [0, 0, 0, 1, 1, 2], [0], [0]>} : vector<2x8x8xbf16>, vector<2x8x8xbf16>, vector<2x8x8xf32> -> vector<2x8x8xf32>
    "tpu.trace_stop"() : () -> ()
    %253 = vector.shape_cast %252 : vector<2x8x8xf32> to vector<16x8xf32>
    %254 = vector.extract_strided_slice %229 {offsets = [0, 8], sizes = [16, 8], strides = [1, 1]} : vector<16x96xf32> to vector<16x8xf32>
    %255 = vector.shape_cast %254 : vector<16x8xf32> to vector<2x8x8xf32>
    %256 = arith.truncf %255 : vector<2x8x8xf32> to vector<2x8x8xbf16>
    %257 = vector.extract_strided_slice %229 {offsets = [0, 40], sizes = [16, 8], strides = [1, 1]} : vector<16x96xf32> to vector<16x8xf32>
    %258 = vector.shape_cast %257 : vector<16x8xf32> to vector<2x8x8xf32>
    %259 = arith.truncf %258 : vector<2x8x8xf32> to vector<2x8x8xbf16>
    %260 = vector.extract_strided_slice %229 {offsets = [0, 72], sizes = [16, 8], strides = [1, 1]} : vector<16x96xf32> to vector<16x8xf32>
    %261 = vector.shape_cast %260 : vector<16x8xf32> to vector<2x8x8xf32>
    %262 = arith.truncf %261 : vector<2x8x8xf32> to vector<2x8x8xbf16>
    "tpu.trace_start"() <{level = 10 : i32, message = "bqe,bke->bqk"}> : () -> ()
    %cst_92 = arith.constant dense<0.000000e+00> : vector<2x8x8xf32>
    %263 = tpu.matmul %256, %259, %cst_92 {dimension_numbers = #tpu.dot_dimension_numbers<[2], [2], [1], [1], [0, 0, 0, 1, 1, 1], [0], [0]>} : vector<2x8x8xbf16>, vector<2x8x8xbf16>, vector<2x8x8xf32> -> vector<2x8x8xf32>
    "tpu.trace_stop"() : () -> ()
    %264 = vector.broadcast %25 : vector<2x1x8xf32> to vector<2x8x8xf32>
    %265 = arith.addf %263, %264 : vector<2x8x8xf32>
    %cst_93 = arith.constant dense<0xFF800000> : vector<2x8xf32>
    %266 = vector.multi_reduction <maximumf>, %265, %cst_93 [2] : vector<2x8x8xf32> to vector<2x8xf32>
    %267 = vector.shape_cast %266 : vector<2x8xf32> to vector<2x8x1xf32>
    %268 = vector.broadcast %267 : vector<2x8x1xf32> to vector<2x8x8xf32>
    %269 = arith.subf %265, %268 : vector<2x8x8xf32>
    %270 = math.exp %269 : vector<2x8x8xf32>
    %cst_94 = arith.constant dense<0.000000e+00> : vector<2x8xf32>
    %271 = vector.multi_reduction <add>, %270, %cst_94 [2] : vector<2x8x8xf32> to vector<2x8xf32>
    %272 = vector.shape_cast %271 : vector<2x8xf32> to vector<2x8x1xf32>
    %273 = vector.broadcast %272 : vector<2x8x1xf32> to vector<2x8x8xf32>
    %274 = arith.divf %270, %273 : vector<2x8x8xf32>
    %275 = arith.truncf %274 : vector<2x8x8xf32> to vector<2x8x8xbf16>
    "tpu.trace_start"() <{level = 10 : i32, message = "bqk,bke->bqe"}> : () -> ()
    %cst_95 = arith.constant dense<0.000000e+00> : vector<2x8x8xf32>
    %276 = tpu.matmul %275, %262, %cst_95 {dimension_numbers = #tpu.dot_dimension_numbers<[2], [1], [1], [2], [0, 0, 0, 1, 1, 2], [0], [0]>} : vector<2x8x8xbf16>, vector<2x8x8xbf16>, vector<2x8x8xf32> -> vector<2x8x8xf32>
    "tpu.trace_stop"() : () -> ()
    %277 = vector.shape_cast %276 : vector<2x8x8xf32> to vector<16x8xf32>
    %278 = vector.extract_strided_slice %229 {offsets = [0, 16], sizes = [16, 8], strides = [1, 1]} : vector<16x96xf32> to vector<16x8xf32>
    %279 = vector.shape_cast %278 : vector<16x8xf32> to vector<2x8x8xf32>
    %280 = arith.truncf %279 : vector<2x8x8xf32> to vector<2x8x8xbf16>
    %281 = vector.extract_strided_slice %229 {offsets = [0, 48], sizes = [16, 8], strides = [1, 1]} : vector<16x96xf32> to vector<16x8xf32>
    %282 = vector.shape_cast %281 : vector<16x8xf32> to vector<2x8x8xf32>
    %283 = arith.truncf %282 : vector<2x8x8xf32> to vector<2x8x8xbf16>
    %284 = vector.extract_strided_slice %229 {offsets = [0, 80], sizes = [16, 8], strides = [1, 1]} : vector<16x96xf32> to vector<16x8xf32>
    %285 = vector.shape_cast %284 : vector<16x8xf32> to vector<2x8x8xf32>
    %286 = arith.truncf %285 : vector<2x8x8xf32> to vector<2x8x8xbf16>
    "tpu.trace_start"() <{level = 10 : i32, message = "bqe,bke->bqk"}> : () -> ()
    %cst_96 = arith.constant dense<0.000000e+00> : vector<2x8x8xf32>
    %287 = tpu.matmul %280, %283, %cst_96 {dimension_numbers = #tpu.dot_dimension_numbers<[2], [2], [1], [1], [0, 0, 0, 1, 1, 1], [0], [0]>} : vector<2x8x8xbf16>, vector<2x8x8xbf16>, vector<2x8x8xf32> -> vector<2x8x8xf32>
    "tpu.trace_stop"() : () -> ()
    %288 = vector.broadcast %25 : vector<2x1x8xf32> to vector<2x8x8xf32>
    %289 = arith.addf %287, %288 : vector<2x8x8xf32>
    %cst_97 = arith.constant dense<0xFF800000> : vector<2x8xf32>
    %290 = vector.multi_reduction <maximumf>, %289, %cst_97 [2] : vector<2x8x8xf32> to vector<2x8xf32>
    %291 = vector.shape_cast %290 : vector<2x8xf32> to vector<2x8x1xf32>
    %292 = vector.broadcast %291 : vector<2x8x1xf32> to vector<2x8x8xf32>
    %293 = arith.subf %289, %292 : vector<2x8x8xf32>
    %294 = math.exp %293 : vector<2x8x8xf32>
    %cst_98 = arith.constant dense<0.000000e+00> : vector<2x8xf32>
    %295 = vector.multi_reduction <add>, %294, %cst_98 [2] : vector<2x8x8xf32> to vector<2x8xf32>
    %296 = vector.shape_cast %295 : vector<2x8xf32> to vector<2x8x1xf32>
    %297 = vector.broadcast %296 : vector<2x8x1xf32> to vector<2x8x8xf32>
    %298 = arith.divf %294, %297 : vector<2x8x8xf32>
    %299 = arith.truncf %298 : vector<2x8x8xf32> to vector<2x8x8xbf16>
    "tpu.trace_start"() <{level = 10 : i32, message = "bqk,bke->bqe"}> : () -> ()
    %cst_99 = arith.constant dense<0.000000e+00> : vector<2x8x8xf32>
    %300 = tpu.matmul %299, %286, %cst_99 {dimension_numbers = #tpu.dot_dimension_numbers<[2], [1], [1], [2], [0, 0, 0, 1, 1, 2], [0], [0]>} : vector<2x8x8xbf16>, vector<2x8x8xbf16>, vector<2x8x8xf32> -> vector<2x8x8xf32>
    "tpu.trace_stop"() : () -> ()
    %301 = vector.shape_cast %300 : vector<2x8x8xf32> to vector<16x8xf32>
    %302 = vector.extract_strided_slice %229 {offsets = [0, 24], sizes = [16, 8], strides = [1, 1]} : vector<16x96xf32> to vector<16x8xf32>
    %303 = vector.shape_cast %302 : vector<16x8xf32> to vector<2x8x8xf32>
    %304 = arith.truncf %303 : vector<2x8x8xf32> to vector<2x8x8xbf16>
    %305 = vector.extract_strided_slice %229 {offsets = [0, 56], sizes = [16, 8], strides = [1, 1]} : vector<16x96xf32> to vector<16x8xf32>
    %306 = vector.shape_cast %305 : vector<16x8xf32> to vector<2x8x8xf32>
    %307 = arith.truncf %306 : vector<2x8x8xf32> to vector<2x8x8xbf16>
    %308 = vector.extract_strided_slice %229 {offsets = [0, 88], sizes = [16, 8], strides = [1, 1]} : vector<16x96xf32> to vector<16x8xf32>
    %309 = vector.shape_cast %308 : vector<16x8xf32> to vector<2x8x8xf32>
    %310 = arith.truncf %309 : vector<2x8x8xf32> to vector<2x8x8xbf16>
    "tpu.trace_start"() <{level = 10 : i32, message = "bqe,bke->bqk"}> : () -> ()
    %cst_100 = arith.constant dense<0.000000e+00> : vector<2x8x8xf32>
    %311 = tpu.matmul %304, %307, %cst_100 {dimension_numbers = #tpu.dot_dimension_numbers<[2], [2], [1], [1], [0, 0, 0, 1, 1, 1], [0], [0]>} : vector<2x8x8xbf16>, vector<2x8x8xbf16>, vector<2x8x8xf32> -> vector<2x8x8xf32>
    "tpu.trace_stop"() : () -> ()
    %312 = vector.broadcast %25 : vector<2x1x8xf32> to vector<2x8x8xf32>
    %313 = arith.addf %311, %312 : vector<2x8x8xf32>
    %cst_101 = arith.constant dense<0xFF800000> : vector<2x8xf32>
    %314 = vector.multi_reduction <maximumf>, %313, %cst_101 [2] : vector<2x8x8xf32> to vector<2x8xf32>
    %315 = vector.shape_cast %314 : vector<2x8xf32> to vector<2x8x1xf32>
    %316 = vector.broadcast %315 : vector<2x8x1xf32> to vector<2x8x8xf32>
    %317 = arith.subf %313, %316 : vector<2x8x8xf32>
    %318 = math.exp %317 : vector<2x8x8xf32>
    %cst_102 = arith.constant dense<0.000000e+00> : vector<2x8xf32>
    %319 = vector.multi_reduction <add>, %318, %cst_102 [2] : vector<2x8x8xf32> to vector<2x8xf32>
    %320 = vector.shape_cast %319 : vector<2x8xf32> to vector<2x8x1xf32>
    %321 = vector.broadcast %320 : vector<2x8x1xf32> to vector<2x8x8xf32>
    %322 = arith.divf %318, %321 : vector<2x8x8xf32>
    %323 = arith.truncf %322 : vector<2x8x8xf32> to vector<2x8x8xbf16>
    "tpu.trace_start"() <{level = 10 : i32, message = "bqk,bke->bqe"}> : () -> ()
    %cst_103 = arith.constant dense<0.000000e+00> : vector<2x8x8xf32>
    %324 = tpu.matmul %323, %310, %cst_103 {dimension_numbers = #tpu.dot_dimension_numbers<[2], [1], [1], [2], [0, 0, 0, 1, 1, 2], [0], [0]>} : vector<2x8x8xbf16>, vector<2x8x8xbf16>, vector<2x8x8xf32> -> vector<2x8x8xf32>
    "tpu.trace_stop"() : () -> ()
    %325 = vector.shape_cast %324 : vector<2x8x8xf32> to vector<16x8xf32>
    %326 = tpu.concatenate %253, %277, %301, %325 in 1 : vector<16x8xf32>, vector<16x8xf32>, vector<16x8xf32>, vector<16x8xf32> -> vector<16x32xf32>
    %327 = arith.truncf %326 : vector<16x32xf32> to vector<16x32xbf16>
    %c1_104 = arith.constant 1 : index
    %c0_105 = arith.constant 0 : index
    %c0_106 = arith.constant 0 : index
    %328 = vector.load %arg7[%c1_104, %c0_105, %c0_106] : memref<2x32x32xbf16, #tpu.memory_space<vmem>>, vector<1x32x32xbf16>
    %329 = vector.shape_cast %328 : vector<1x32x32xbf16> to vector<32x32xbf16>
    %cst_107 = arith.constant dense<0.000000e+00> : vector<16x32xf32>
    %330 = tpu.matmul %327, %329, %cst_107 {dimension_numbers = #tpu.dot_dimension_numbers<[1], [0], [0], [1], [0, 0, 1, 1], [], []>} : vector<16x32xbf16>, vector<32x32xbf16>, vector<16x32xf32> -> vector<16x32xf32>
    %c1_108 = arith.constant 1 : index
    %c0_109 = arith.constant 0 : index
    %c0_110 = arith.constant 0 : index
    %331 = vector.load %arg8[%c1_108, %c0_109, %c0_110] : memref<2x1x32xf32, #tpu.memory_space<vmem>>, vector<1x1x32xf32>
    %332 = vector.shape_cast %331 : vector<1x1x32xf32> to vector<1x32xf32>
    %333 = vector.broadcast %332 : vector<1x32xf32> to vector<16x32xf32>
    %334 = arith.addf %330, %333 : vector<16x32xf32>
    %335 = arith.addf %334, %221 : vector<16x32xf32>
    %c1_111 = arith.constant 1 : index
    %c0_112 = arith.constant 0 : index
    %c0_113 = arith.constant 0 : index
    %336 = vector.load %arg9[%c1_111, %c0_112, %c0_113] : memref<2x1x32xf32, #tpu.memory_space<vmem>>, vector<1x1x32xf32>
    %337 = vector.shape_cast %336 : vector<1x1x32xf32> to vector<1x32xf32>
    %c1_114 = arith.constant 1 : index
    %c0_115 = arith.constant 0 : index
    %c0_116 = arith.constant 0 : index
    %338 = vector.load %arg10[%c1_114, %c0_115, %c0_116] : memref<2x1x32xf32, #tpu.memory_space<vmem>>, vector<1x1x32xf32>
    %339 = vector.shape_cast %338 : vector<1x1x32xf32> to vector<1x32xf32>
    %cst_117 = arith.constant dense<0.000000e+00> : vector<16xf32>
    %340 = vector.multi_reduction <add>, %335, %cst_117 [1] : vector<16x32xf32> to vector<16xf32>
    %341 = vector.shape_cast %340 : vector<16xf32> to vector<16x1xf32>
    %cst_118 = arith.constant 3.200000e+01 : f32
    %342 = vector.broadcast %cst_118 : f32 to vector<16x1xf32>
    %343 = arith.divf %341, %342 : vector<16x1xf32>
    %344 = vector.broadcast %343 : vector<16x1xf32> to vector<16x32xf32>
    %345 = arith.subf %335, %344 : vector<16x32xf32>
    %346 = arith.mulf %345, %345 : vector<16x32xf32>
    %cst_119 = arith.constant dense<0.000000e+00> : vector<16xf32>
    %347 = vector.multi_reduction <add>, %346, %cst_119 [1] : vector<16x32xf32> to vector<16xf32>
    %348 = vector.shape_cast %347 : vector<16xf32> to vector<16x1xf32>
    %cst_120 = arith.constant 3.200000e+01 : f32
    %349 = vector.broadcast %cst_120 : f32 to vector<16x1xf32>
    %350 = arith.divf %348, %349 : vector<16x1xf32>
    %351 = vector.broadcast %343 : vector<16x1xf32> to vector<16x32xf32>
    %352 = arith.subf %335, %351 : vector<16x32xf32>
    %cst_121 = arith.constant 9.99999996E-13 : f32
    %353 = vector.broadcast %cst_121 : f32 to vector<16x1xf32>
    %354 = arith.addf %350, %353 : vector<16x1xf32>
    %355 = math.rsqrt %354 : vector<16x1xf32>
    %356 = vector.broadcast %355 : vector<16x1xf32> to vector<16x32xf32>
    %357 = arith.mulf %352, %356 : vector<16x32xf32>
    %358 = vector.broadcast %337 : vector<1x32xf32> to vector<16x32xf32>
    %359 = arith.mulf %357, %358 : vector<16x32xf32>
    %360 = vector.broadcast %339 : vector<1x32xf32> to vector<16x32xf32>
    %361 = arith.addf %359, %360 : vector<16x32xf32>
    %362 = arith.truncf %361 : vector<16x32xf32> to vector<16x32xbf16>
    %c1_122 = arith.constant 1 : index
    %c0_123 = arith.constant 0 : index
    %c0_124 = arith.constant 0 : index
    %363 = vector.load %arg11[%c1_122, %c0_123, %c0_124] : memref<2x32x64xbf16, #tpu.memory_space<vmem>>, vector<1x32x64xbf16>
    %364 = vector.shape_cast %363 : vector<1x32x64xbf16> to vector<32x64xbf16>
    %cst_125 = arith.constant dense<0.000000e+00> : vector<16x64xf32>
    %365 = tpu.matmul %362, %364, %cst_125 {dimension_numbers = #tpu.dot_dimension_numbers<[1], [0], [0], [1], [0, 0, 1, 1], [], []>} : vector<16x32xbf16>, vector<32x64xbf16>, vector<16x64xf32> -> vector<16x64xf32>
    %c1_126 = arith.constant 1 : index
    %c0_127 = arith.constant 0 : index
    %c0_128 = arith.constant 0 : index
    %366 = vector.load %arg12[%c1_126, %c0_127, %c0_128] : memref<2x1x64xf32, #tpu.memory_space<vmem>>, vector<1x1x64xf32>
    %367 = vector.shape_cast %366 : vector<1x1x64xf32> to vector<1x64xf32>
    %368 = vector.broadcast %367 : vector<1x64xf32> to vector<16x64xf32>
    %369 = arith.addf %365, %368 : vector<16x64xf32>
    %cst_129 = arith.constant 5.000000e-01 : f32
    %370 = vector.broadcast %cst_129 : f32 to vector<16x64xf32>
    %371 = arith.mulf %370, %369 : vector<16x64xf32>
    %cst_130 = arith.constant 4.471500e-02 : f32
    %372 = vector.broadcast %cst_130 : f32 to vector<16x64xf32>
    %373 = arith.mulf %372, %369 : vector<16x64xf32>
    %374 = arith.mulf %373, %369 : vector<16x64xf32>
    %375 = arith.mulf %374, %369 : vector<16x64xf32>
    %376 = arith.addf %369, %375 : vector<16x64xf32>
    %cst_131 = arith.constant 0.797884583 : f32
    %377 = vector.broadcast %cst_131 : f32 to vector<16x64xf32>
    %378 = arith.mulf %377, %376 : vector<16x64xf32>
    %379 = math.tanh %378 : vector<16x64xf32>
    %cst_132 = arith.constant 1.000000e+00 : f32
    %380 = vector.broadcast %cst_132 : f32 to vector<16x64xf32>
    %381 = arith.addf %380, %379 : vector<16x64xf32>
    %382 = arith.mulf %371, %381 : vector<16x64xf32>
    %383 = arith.truncf %382 : vector<16x64xf32> to vector<16x64xbf16>
    %c1_133 = arith.constant 1 : index
    %c0_134 = arith.constant 0 : index
    %c0_135 = arith.constant 0 : index
    %384 = vector.load %arg13[%c1_133, %c0_134, %c0_135] : memref<2x64x32xbf16, #tpu.memory_space<vmem>>, vector<1x64x32xbf16>
    %385 = vector.shape_cast %384 : vector<1x64x32xbf16> to vector<64x32xbf16>
    %cst_136 = arith.constant dense<0.000000e+00> : vector<16x32xf32>
    %386 = tpu.matmul %383, %385, %cst_136 {dimension_numbers = #tpu.dot_dimension_numbers<[1], [0], [0], [1], [0, 0, 1, 1], [], []>} : vector<16x64xbf16>, vector<64x32xbf16>, vector<16x32xf32> -> vector<16x32xf32>
    %c1_137 = arith.constant 1 : index
    %c0_138 = arith.constant 0 : index
    %c0_139 = arith.constant 0 : index
    %387 = vector.load %arg14[%c1_137, %c0_138, %c0_139] : memref<2x1x32xf32, #tpu.memory_space<vmem>>, vector<1x1x32xf32>
    %388 = vector.shape_cast %387 : vector<1x1x32xf32> to vector<1x32xf32>
    %389 = vector.broadcast %388 : vector<1x32xf32> to vector<16x32xf32>
    %390 = arith.addf %386, %389 : vector<16x32xf32>
    %391 = arith.addf %390, %361 : vector<16x32xf32>
    %c1_140 = arith.constant 1 : index
    %c0_141 = arith.constant 0 : index
    %c0_142 = arith.constant 0 : index
    %392 = vector.load %arg15[%c1_140, %c0_141, %c0_142] : memref<2x1x32xf32, #tpu.memory_space<vmem>>, vector<1x1x32xf32>
    %393 = vector.shape_cast %392 : vector<1x1x32xf32> to vector<1x32xf32>
    %c1_143 = arith.constant 1 : index
    %c0_144 = arith.constant 0 : index
    %c0_145 = arith.constant 0 : index
    %394 = vector.load %arg16[%c1_143, %c0_144, %c0_145] : memref<2x1x32xf32, #tpu.memory_space<vmem>>, vector<1x1x32xf32>
    %395 = vector.shape_cast %394 : vector<1x1x32xf32> to vector<1x32xf32>
    %cst_146 = arith.constant dense<0.000000e+00> : vector<16xf32>
    %396 = vector.multi_reduction <add>, %391, %cst_146 [1] : vector<16x32xf32> to vector<16xf32>
    %397 = vector.shape_cast %396 : vector<16xf32> to vector<16x1xf32>
    %cst_147 = arith.constant 3.200000e+01 : f32
    %398 = vector.broadcast %cst_147 : f32 to vector<16x1xf32>
    %399 = arith.divf %397, %398 : vector<16x1xf32>
    %400 = vector.broadcast %399 : vector<16x1xf32> to vector<16x32xf32>
    %401 = arith.subf %391, %400 : vector<16x32xf32>
    %402 = arith.mulf %401, %401 : vector<16x32xf32>
    %cst_148 = arith.constant dense<0.000000e+00> : vector<16xf32>
    %403 = vector.multi_reduction <add>, %402, %cst_148 [1] : vector<16x32xf32> to vector<16xf32>
    %404 = vector.shape_cast %403 : vector<16xf32> to vector<16x1xf32>
    %cst_149 = arith.constant 3.200000e+01 : f32
    %405 = vector.broadcast %cst_149 : f32 to vector<16x1xf32>
    %406 = arith.divf %404, %405 : vector<16x1xf32>
    %407 = vector.broadcast %399 : vector<16x1xf32> to vector<16x32xf32>
    %408 = arith.subf %391, %407 : vector<16x32xf32>
    %cst_150 = arith.constant 9.99999996E-13 : f32
    %409 = vector.broadcast %cst_150 : f32 to vector<16x1xf32>
    %410 = arith.addf %406, %409 : vector<16x1xf32>
    %411 = math.rsqrt %410 : vector<16x1xf32>
    %412 = vector.broadcast %411 : vector<16x1xf32> to vector<16x32xf32>
    %413 = arith.mulf %408, %412 : vector<16x32xf32>
    %414 = vector.broadcast %393 : vector<1x32xf32> to vector<16x32xf32>
    %415 = arith.mulf %413, %414 : vector<16x32xf32>
    %416 = vector.broadcast %395 : vector<1x32xf32> to vector<16x32xf32>
    %417 = arith.addf %415, %416 : vector<16x32xf32>
    %c0_151 = arith.constant 0 : index
    %c0_152 = arith.constant 0 : index
    %418 = vector.load %arg2[%c0_151, %c0_152] : memref<2x16xbf16, #tpu.memory_space<vmem>>, vector<2x16xbf16>
    %419 = arith.truncf %417 : vector<16x32xf32> to vector<16x32xbf16>
    %cst_153 = arith.constant dense<0.000000e+00> : vector<2x32xf32>
    %420 = tpu.matmul %418, %419, %cst_153 {dimension_numbers = #tpu.dot_dimension_numbers<[1], [0], [0], [1], [0, 0, 1, 1], [], []>} : vector<2x16xbf16>, vector<16x32xbf16>, vector<2x32xf32> -> vector<2x32xf32>
    %421 = arith.truncf %420 : vector<2x32xf32> to vector<2x32xbf16>
    %c0_154 = arith.constant 0 : index
    %c0_155 = arith.constant 0 : index
    %422 = vector.load %arg17[%c0_154, %c0_155] : memref<32x32xbf16, #tpu.memory_space<vmem>>, vector<32x32xbf16>
    %cst_156 = arith.constant dense<0.000000e+00> : vector<2x32xf32>
    %423 = tpu.matmul %421, %422, %cst_156 {dimension_numbers = #tpu.dot_dimension_numbers<[1], [0], [0], [1], [0, 0, 1, 1], [], []>} : vector<2x32xbf16>, vector<32x32xbf16>, vector<2x32xf32> -> vector<2x32xf32>
    %c0_157 = arith.constant 0 : index
    %c0_158 = arith.constant 0 : index
    %424 = vector.load %arg18[%c0_157, %c0_158] : memref<1x32xf32, #tpu.memory_space<vmem>>, vector<1x32xf32>
    %425 = vector.broadcast %424 : vector<1x32xf32> to vector<2x32xf32>
    %426 = arith.addf %423, %425 : vector<2x32xf32>
    %cst_159 = arith.constant 0.000000e+00 : f32
    %427 = vector.broadcast %cst_159 : f32 to vector<2x32xf32>
    %428 = arith.maximumf %426, %427 : vector<2x32xf32>
    %429 = arith.truncf %428 : vector<2x32xf32> to vector<2x32xbf16>
    %c0_160 = arith.constant 0 : index
    %c0_161 = arith.constant 0 : index
    %430 = vector.load %arg19[%c0_160, %c0_161] : memref<32x128xbf16, #tpu.memory_space<vmem>>, vector<32x128xbf16>
    %cst_162 = arith.constant dense<0.000000e+00> : vector<2x128xf32>
    %431 = tpu.matmul %429, %430, %cst_162 {dimension_numbers = #tpu.dot_dimension_numbers<[1], [0], [0], [1], [0, 0, 1, 1], [], []>} : vector<2x32xbf16>, vector<32x128xbf16>, vector<2x128xf32> -> vector<2x128xf32>
    %c0_163 = arith.constant 0 : index
    %c0_164 = arith.constant 0 : index
    %432 = vector.load %arg20[%c0_163, %c0_164] : memref<1x128xf32, #tpu.memory_space<vmem>>, vector<1x128xf32>
    %433 = vector.broadcast %432 : vector<1x128xf32> to vector<2x128xf32>
    %434 = arith.addf %431, %433 : vector<2x128xf32>
    %c0_165 = arith.constant 0 : index
    %c0_166 = arith.constant 0 : index
    %435 = vector.load %arg21[%c0_165, %c0_166] : memref<2x128xf32, #tpu.memory_space<vmem>>, vector<2x128xf32>
    tpu.vector_store %arg21[%c0_165, %c0_166], %434 {strides = array<i32>} : memref<2x128xf32, #tpu.memory_space<vmem>>, vector<2x128xf32>,
    return
  }
}

</mosaic_0001>

<bundles_post_ra>
// kernel: tpu_custom_call.1
= control target key start
LH: loop header
LB: loop body
LE: loop exit
PB: predicated region body
PF: predicated region fallthrough
CT: control target
= control target key end

     0   :  { %s4893_s0 = inlined_call_operand.hbm [shape: f32[16,32], index: 0, kind: input, shape index: {}]   ;;  %s4894_s1 = inlined_call_operand.hbm [shape: f32[2,1,8], index: 1, kind: input, shape index: {}]   ;;  %s4895_s2 = inlined_call_operand.hbm [shape: bf16[2,16], index: 2, kind: input, shape index: {}]   ;;  %s4896_s3 = inlined_call_operand.hbm [shape: f32[1,32], index: 3, kind: input, shape index: {}]   ;;  %s4897_s4 = inlined_call_operand.hbm [shape: f32[1,32], index: 4, kind: input, shape index: {}]   ;;  %s4898_s5 = inlined_call_operand.vmem [shape: bf16[2,32,96], index: 5, kind: input, shape index: {}]   ;;  %s4899_s6 = inlined_call_operand.hbm [shape: f32[2,1,96], index: 6, kind: input, shape index: {}]   ;;  %s4900_s7 = inlined_call_operand.vmem [shape: bf16[2,32,32], index: 7, kind: input, shape index: {}]   ;;  %s4901_s8 = inlined_call_operand.hbm [shape: f32[2,1,32], index: 8, kind: input, shape index: {}]   ;;  %s4902_s9 = inlined_call_operand.hbm [shape: f32[2,1,32], index: 9, kind: input, shape index: {}]   ;;  %s4903_s10 = inlined_call_operand.hbm [shape: f32[2,1,32], index: 10, kind: input, shape index: {}]   ;;  %s4904_s11 = inlined_call_operand.vmem [shape: bf16[2,32,64], index: 11, kind: input, shape index: {}]   ;;  %s4905_s12 = inlined_call_operand.hbm [shape: f32[2,1,64], index: 12, kind: input, shape index: {}]   ;;  %s4906_s13 = inlined_call_operand.vmem [shape: bf16[2,64,32], index: 13, kind: input, shape index: {}]   ;;  %s4907_s14 = inlined_call_operand.hbm [shape: f32[2,1,32], index: 14, kind: input, shape index: {}]   ;;  %s4908_s15 = inlined_call_operand.hbm [shape: f32[2,1,32], index: 15, kind: input, shape index: {}]   ;;  %s4909_s16 = inlined_call_operand.hbm [shape: f32[2,1,32], index: 16, kind: input, shape index: {}]   ;;  %s4910_s17 = inlined_call_operand.vmem [shape: bf16[32,32], index: 17, kind: input, shape index: {}]   ;;  %s4911_s18 = inlined_call_operand.hbm [shape: f32[1,32], index: 18, kind: input, shape index: {}]   ;;  %s4912_s19 = inlined_call_operand.vmem [shape: bf16[32,128], index: 19, kind: input, shape index: {}]   ;;  %s4913_s20 = inlined_call_operand.vmem [shape: f32[1,128], index: 20, kind: input, shape index: {}]   ;;  %s4914_s21 = inlined_call_operand.hbm [shape: f32[2,128], index: 21, kind: output, shape index: {}]  }
   0x1   :  { %4916 = sst [smem:[#allocation35_spill]] %s4893_s0 }
   0x2   :  { %4917 = sst [smem:[#allocation36_spill]] %s4894_s1 }
   0x3   :  { %4918 = sst [smem:[#allocation37_spill]] %s4895_s2 }
   0x4   :  { %4919 = sst [smem:[#allocation38_spill]] %s4896_s3 }
   0x5   :  { %4920 = sst [smem:[#allocation39_spill]] %s4897_s4 }
   0x6   :  { %4921 = sst [smem:[#allocation40_spill]] %s4898_s5 }
   0x7   :  { %26 = vsyncpa [#allocation3], 0 }
   0x8   :  { %27 = vsyncpa [#allocation6], 0 }
   0x9   :  { %28 = vsyncpa [#allocation9], 0 }
   0xa   :  { %29 = vsyncpa [#allocation12], 0 }
   0xb   :  { %30 = vsyncpa [#allocation15], 0 }
   0xc   :  { %31 = vsyncpa [#allocation18], 0 }
   0xd   :  { %32 = vsyncpa [#allocation21], 0 }
   0xe   :  { %33 = vsyncpa [#allocation24], 0 }
   0xf   :  { %34 = vsyncpa [#allocation4], 0  ;;  %s4144_s2 = smov [#allocation5]  }
  0x10   :  { %s52_s25 = sshll.u32 %s4144_s2, 4  ;;  %s53_s25 = int_to_ptr.vmem [resolvable:$true] %s52_s25 }
  0x11   :  { %s3834_s26 = scalar_lea.vmem %s53_s25, 32  ;;  %p3839_p1 = scmp.lt.s32.totalorder %s53_s25, %s53_s25 }
  0x12   :  { %p3835_p0 = scmp.ne.s32.totalorder %s53_s25, %s3834_s26  ;;  %p3840_p2 = scmp.lt.s32.totalorder %s3834_s26, %s3834_s26 }
  0x14   :  { %p3841_p3 = por %p3840_p2, %p3839_p1 }
  0x16   :  { %p3842_p4 = pnand %p3841_p3, %p3835_p0 }
  0x18   :  { %3845 = shalt.err (!%p3842_p4)
}
  0x19   :  { %s4145_s27 = smov 16   ;;  %s4146_s3 = smov 1  }
  0x1a   :  { %s4922_s0 = sld [smem:[#allocation36_spill]]  ;;  %s4147_s4 = smov [#allocation8]  }
  0x1b   :  { %s75_s30 = sshll.u32 %s4147_s4, 4  ;;  %s4148_s5 = smov [#allocation11]   ;;  %s76_s30 = int_to_ptr.vmem [resolvable:$true] %s75_s30 }
  0x1c   :  { %s96_s22 = sshll.u32 %s4148_s5, 4  ;;  %s3854_s23 = scalar_lea.vmem %s76_s30, 16  ;;  %s97_s22 = int_to_ptr.vmem [resolvable:$true] %s96_s22 }
  0x1d   :  { %p3855_p5 = scmp.ne.s32.totalorder %s76_s30, %s3854_s23  ;;  %s3858_s1 = scalar_lea.vmem %s76_s30, 32 }
  0x1e   :  { %p3859_p6 = scmp.lt.s32.totalorder %s76_s30, %s76_s30  ;;  %p3860_p7 = scmp.lt.s32.totalorder %s3858_s1, %s3854_s23 }
  0x20   :  { %58 = dma.hbm_to_vmem [thread:$0]  %s4922_s0, 32, %s53_s25, [#allocation6], %s4145_s27, %s4145_s27, %s4146_s3  }
  0x21   :  { %p3861_p8 = por %p3860_p7, %p3859_p6 }
  0x23   :  { %p3862_p9 = pnand %p3861_p8, %p3855_p5 }
  0x25   :  { %3865 = shalt.err (!%p3862_p9)
}
  0x26   :  { %s4923_s26 = sld [smem:[#allocation38_spill]]  ;;  %s3874_s28 = scalar_lea.vmem %s97_s22, 32 }
  0x27   :  { %p3875_p10 = scmp.ne.s32.totalorder %s97_s22, %s3874_s28  ;;  %p3879_p11 = scmp.lt.s32.totalorder %s97_s22, %s97_s22 }
  0x28   :  { %p3880_p12 = scmp.lt.s32.totalorder %s3874_s28, %s3874_s28 }
  0x2a   :  { %p3881_p13 = por %p3880_p12, %p3879_p11 }
  0x2c   :  { %78 = dma.hbm_to_vmem [thread:$0]  %s4923_s26, 16, %s76_s30, [#allocation9]  }
  0x2d   :  { %p3882_p0 = pnand %p3881_p13, %p3875_p10 }
  0x2f   :  { %3885 = shalt.err (!%p3882_p0)
}
  0x30   :  { %102 = dma.hbm_to_vmem [thread:$0]  %s4899_s6, 32, %s97_s22, [#allocation12], %s4145_s27, %s4145_s27, %s4146_s3  }
  0x31   :  { %s4149_s0 = smov [#allocation14]   ;;  %s4150_s5 = smov [#allocation17]  }
  0x32   :  { %s122_s4 = sshll.u32 %s4149_s0, 4  ;;  %s148_s30 = sshll.u32 %s4150_s5, 4  ;;  %s123_s4 = int_to_ptr.vmem [resolvable:$true] %s122_s4  ;;  %s149_s30 = int_to_ptr.vmem [resolvable:$true] %s148_s30 }
  0x33   :  { %s3894_s23 = scalar_lea.vmem %s123_s4, 32  ;;  %p3899_p2 = scmp.lt.s32.totalorder %s123_s4, %s123_s4 }
  0x34   :  { %p3895_p1 = scmp.ne.s32.totalorder %s123_s4, %s3894_s23  ;;  %p3900_p3 = scmp.lt.s32.totalorder %s3894_s23, %s3894_s23 }
  0x36   :  { %p3901_p4 = por %p3900_p3, %p3899_p2 }
  0x38   :  { %p3902_p5 = pnand %p3901_p4, %p3895_p1 }
  0x3a   :  { %3905 = shalt.err (!%p3902_p5)
}
  0x3b   :  { %128 = dma.hbm_to_vmem [thread:$0]  %s4902_s9, 32, %s123_s4, [#allocation15], %s4145_s27, %s4145_s27, %s4146_s3  }
  0x3c   :  { %s3914_s6 = scalar_lea.vmem %s149_s30, 32  ;;  %p3919_p7 = scmp.lt.s32.totalorder %s149_s30, %s149_s30 }
  0x3d   :  { %p3915_p6 = scmp.ne.s32.totalorder %s149_s30, %s3914_s6  ;;  %p3920_p8 = scmp.lt.s32.totalorder %s3914_s6, %s3914_s6 }
  0x3f   :  { %p3921_p9 = por %p3920_p8, %p3919_p7 }
  0x41   :  { %p3922_p10 = pnand %p3921_p9, %p3915_p6 }
  0x43   :  { %3925 = shalt.err (!%p3922_p10)
}
  0x44   :  { %154 = dma.hbm_to_vmem [thread:$0]  %s4905_s12, 32, %s149_s30, [#allocation18], %s4145_s27, %s4145_s27, %s4146_s3  }
  0x45   :  { %s4151_s26 = smov [#allocation20]   ;;  %s4152_s25 = smov [#allocation2]  }
  0x46   :  { %s174_s28 = sshll.u32 %s4151_s26, 4  ;;  %s40_s9 = sshll.u32 %s4152_s25, 4  ;;  %s175_s28 = int_to_ptr.vmem [resolvable:$true] %s174_s28  ;;  %s41_s9 = int_to_ptr.vmem [resolvable:$true] %s40_s9 }
  0x47   :  { %s3934_s29 = scalar_lea.vmem %s175_s28, 32  ;;  %p3939_p12 = scmp.lt.s32.totalorder %s175_s28, %s175_s28 }
  0x48   :  { %p3935_p11 = scmp.ne.s32.totalorder %s175_s28, %s3934_s29  ;;  %p3940_p13 = scmp.lt.s32.totalorder %s3934_s29, %s3934_s29 }
  0x4a   :  { %p3941_p0 = por %p3940_p13, %p3939_p12 }
  0x4c   :  { %p3942_p1 = pnand %p3941_p0, %p3935_p11 }
  0x4e   :  { %3945 = shalt.err (!%p3942_p1)
}
  0x4f   :  { %180 = dma.hbm_to_vmem [thread:$0]  %s4908_s15, 32, %s175_s28, [#allocation21], %s4145_s27, %s4145_s27, %s4146_s3  }
  0x50   :  { %s3954_s12 = scalar_lea.vmem %s41_s9, 256  ;;  %p3959_p3 = scmp.lt.s32.totalorder %s41_s9, %s41_s9 }
  0x51   :  { %p3955_p2 = scmp.ne.s32.totalorder %s41_s9, %s3954_s12  ;;  %p3960_p4 = scmp.lt.s32.totalorder %s3954_s12, %s3954_s12 }
  0x53   :  { %p3961_p5 = por %p3960_p4, %p3959_p3 }
  0x55   :  { %p3962_p6 = pnand %p3961_p5, %p3955_p2 }
  0x57   :  { %3965 = shalt.err (!%p3962_p6)
}
  0x58   :  { %s4153_s5 = smov 128   ;;  %s4154_s30 = smov 8  }
  0x59   :  { %s4924_s24 = sld [smem:[#allocation35_spill]]  ;;  %s4155_s6 = smov [#allocation7]  }
  0x5a   :  { %s65_s22 = sshll.u32 %s4155_s6, 4  ;;  %s4156_s2 = smov [#allocation10]   ;;  %s66_s22 = int_to_ptr.vmem [resolvable:$true] %s65_s22 }
  0x5b   :  { %s85_s15 = sshll.u32 %s4156_s2, 4  ;;  %s3974_s26 = scalar_lea.vmem %s66_s22, 16  ;;  %s86_s15 = int_to_ptr.vmem [resolvable:$true] %s85_s15 }
  0x5c   :  { %p3975_p7 = scmp.ne.s32.totalorder %s66_s22, %s3974_s26  ;;  %s3978_s28 = scalar_lea.vmem %s66_s22, 32 }
  0x5d   :  { %p3979_p8 = scmp.lt.s32.totalorder %s66_s22, %s66_s22  ;;  %p3980_p9 = scmp.lt.s32.totalorder %s3978_s28, %s3974_s26 }
  0x5f   :  { %46 = dma.hbm_to_vmem [thread:$0]  %s4924_s24, 256, %s41_s9, [#allocation3], %s4153_s5, %s4153_s5, %s4154_s30  }
  0x60   :  { %p3981_p10 = por %p3980_p9, %p3979_p8 }
  0x62   :  { %p3982_p11 = pnand %p3981_p10, %p3975_p7 }
  0x64   :  { %3985 = shalt.err (!%p3982_p11)
}
  0x65   :  { %s4925_s0 = sld [smem:[#allocation37_spill]]  ;;  %s3994_s4 = scalar_lea.vmem %s86_s15, 16 }
  0x66   :  { %p3995_p12 = scmp.ne.s32.totalorder %s86_s15, %s3994_s4  ;;  %s3998_s9 = scalar_lea.vmem %s86_s15, 32 }
  0x67   :  { %p3999_p13 = scmp.lt.s32.totalorder %s86_s15, %s86_s15  ;;  %p4000_p0 = scmp.lt.s32.totalorder %s3998_s9, %s3994_s4 }
  0x69   :  { %p4001_p1 = por %p4000_p0, %p3999_p13 }
  0x6b   :  { %68 = dma.hbm_to_vmem [thread:$0]  %s4925_s0, 16, %s66_s22, [#allocation6]  }
  0x6c   :  { %p4002_p2 = pnand %p4001_p1, %p3995_p12 }
  0x6e   :  { %4005 = shalt.err (!%p4002_p2)
}
  0x6f   :  { %s4926_s23 = sld [smem:[#allocation39_spill]]  ;;  %s4157_s1 = smov [#allocation13]  }
  0x70   :  { %s110_s24 = sshll.u32 %s4157_s1, 4  ;;  %s4158_s6 = smov [#allocation16]   ;;  %s111_s24 = int_to_ptr.vmem [resolvable:$true] %s110_s24 }
  0x71   :  { %s134_s2 = sshll.u32 %s4158_s6, 4  ;;  %s4014_s26 = scalar_lea.vmem %s111_s24, 32  ;;  %s135_s2 = int_to_ptr.vmem [resolvable:$true] %s134_s2 }
  0x72   :  { %p4015_p3 = scmp.ne.s32.totalorder %s111_s24, %s4014_s26  ;;  %p4019_p4 = scmp.lt.s32.totalorder %s111_s24, %s111_s24 }
  0x73   :  { %p4020_p5 = scmp.lt.s32.totalorder %s4014_s26, %s4014_s26 }
  0x75   :  { %88 = dma.hbm_to_vmem [thread:$0]  %s4926_s23, 16, %s86_s15, [#allocation9]  }
  0x76   :  { %p4021_p6 = por %p4020_p5, %p4019_p4 }
  0x78   :  { %p4022_p7 = pnand %p4021_p6, %p4015_p3 }
  0x7a   :  { %4025 = shalt.err (!%p4022_p7)
}
  0x7b   :  { %116 = dma.hbm_to_vmem [thread:$0]  %s4901_s8, 32, %s111_s24, [#allocation12], %s4145_s27, %s4145_s27, %s4146_s3  }
  0x7c   :  { %s4034_s15 = scalar_lea.vmem %s135_s2, 32  ;;  %p4039_p9 = scmp.lt.s32.totalorder %s135_s2, %s135_s2 }
  0x7d   :  { %p4035_p8 = scmp.ne.s32.totalorder %s135_s2, %s4034_s15  ;;  %p4040_p10 = scmp.lt.s32.totalorder %s4034_s15, %s4034_s15 }
  0x7f   :  { %p4041_p11 = por %p4040_p10, %p4039_p9 }
  0x81   :  { %p4042_p12 = pnand %p4041_p11, %p4035_p8 }
  0x83   :  { %4045 = shalt.err (!%p4042_p12)
}
  0x84   :  { %140 = dma.hbm_to_vmem [thread:$0]  %s4903_s10, 32, %s135_s2, [#allocation15], %s4145_s27, %s4145_s27, %s4146_s3  }
  0x85   :  { %s4159_s0 = smov [#allocation19]   ;;  %s4160_s9 = smov [#allocation22]  }
  0x86   :  { %s162_s4 = sshll.u32 %s4159_s0, 4  ;;  %s186_s8 = sshll.u32 %s4160_s9, 4  ;;  %s163_s4 = int_to_ptr.vmem [resolvable:$true] %s162_s4  ;;  %s187_s8 = int_to_ptr.vmem [resolvable:$true] %s186_s8 }
  0x87   :  { %s4054_s12 = scalar_lea.vmem %s163_s4, 32  ;;  %p4059_p0 = scmp.lt.s32.totalorder %s163_s4, %s163_s4 }
  0x88   :  { %p4055_p13 = scmp.ne.s32.totalorder %s163_s4, %s4054_s12  ;;  %p4060_p1 = scmp.lt.s32.totalorder %s4054_s12, %s4054_s12 }
  0x8a   :  { %p4061_p2 = por %p4060_p1, %p4059_p0 }
  0x8c   :  { %p4062_p3 = pnand %p4061_p2, %p4055_p13 }
  0x8e   :  { %4065 = shalt.err (!%p4062_p3)
}
  0x8f   :  { %168 = dma.hbm_to_vmem [thread:$0]  %s4907_s14, 32, %s163_s4, [#allocation18], %s4145_s27, %s4145_s27, %s4146_s3  }
  0x90   :  { %s4074_s10 = scalar_lea.vmem %s187_s8, 32  ;;  %p4079_p5 = scmp.lt.s32.totalorder %s187_s8, %s187_s8 }
  0x91   :  { %p4075_p4 = scmp.ne.s32.totalorder %s187_s8, %s4074_s10  ;;  %p4080_p6 = scmp.lt.s32.totalorder %s4074_s10, %s4074_s10 }
  0x93   :  { %p4081_p7 = por %p4080_p6, %p4079_p5 }
  0x95   :  { %p4082_p8 = pnand %p4081_p7, %p4075_p4 }
  0x97   :  { %4085 = shalt.err (!%p4082_p8)
}
  0x98   :  { %192 = dma.hbm_to_vmem [thread:$0]  %s4909_s16, 32, %s187_s8, [#allocation21], %s4145_s27, %s4145_s27, %s4146_s3  }
  0x99   :  { %s4161_s6 = smov [#allocation23]  }
  0x9a   :  { %s201_s2 = sshll.u32 %s4161_s6, 4  ;;  %s202_s2 = int_to_ptr.vmem [resolvable:$true] %s201_s2 }
  0x9b   :  { %s4094_s26 = scalar_lea.vmem %s202_s2, 16  ;;  %s4098_s14 = scalar_lea.vmem %s202_s2, 32 }
  0x9c   :  { %p4095_p9 = scmp.ne.s32.totalorder %s202_s2, %s4094_s26  ;;  %p4099_p10 = scmp.lt.s32.totalorder %s202_s2, %s202_s2 }
  0x9d   :  { %p4100_p11 = scmp.lt.s32.totalorder %s4098_s14, %s4094_s26 }
  0x9f   :  { %p4101_p12 = por %p4100_p11, %p4099_p10 }
  0xa1   :  { %p4102_p13 = pnand %p4101_p12, %p4095_p9 }
  0xa3   :  { %4105 = shalt.err (!%p4102_p13)
}
  0xa4   :  { %204 = dma.hbm_to_vmem [thread:$0]  %s4911_s18, 16, %s202_s2, [#allocation24]  }
  0xa5   :  { %4126 = dma.done.wait [#allocation3], 256  }
  0xa6   :  { %4127 = vsyncadd [#allocation3], 4294967040 }
  0xa7   :  { %4128 = dma.done.wait [#allocation6], 48  }
  0xa8   :  { %4129 = vsyncadd [#allocation6], 4294967248 }
  0xa9   :  { %4130 = dma.done.wait [#allocation9], 32  }
  0xaa   :  { %4131 = vsyncadd [#allocation9], 4294967264 }
  0xab   :  { %4132 = dma.done.wait [#allocation12], 64  }
  0xac   :  { %4133 = vsyncadd [#allocation12], 4294967232 }
  0xad   :  { %4134 = dma.done.wait [#allocation15], 64  }
  0xae   :  { %4135 = vsyncadd [#allocation15], 4294967232 }
  0xaf   :  { %4136 = dma.done.wait [#allocation18], 64  }
  0xb0   :  { %4137 = vsyncadd [#allocation18], 4294967232 }
  0xb1   :  { %4138 = dma.done.wait [#allocation21], 64  }
  0xb2   :  { %4139 = vsyncadd [#allocation21], 4294967232 }
  0xb3   :  { %4140 = dma.done.wait [#allocation24], 16  }
  0xb4   :  { %4141 = vsyncadd [#allocation24], 4294967280  ;;  %vm256_vm0 = vcmask 261120   ;;  %v252_v0 = vld [vmem:[#allocation2] sm:$0xff]  ;;  %v253_v1 = vld [vmem:[#allocation2 + $0x8] sm:$0xff]  ;;  %s4927_s3 = sld [smem:[#allocation40_spill]] }
  0xb5   :  { %v257_v2 = vsel %vm256_vm0, %v252_v0, 0.0  ;;  %v260_v3 = vsel %vm256_vm0, %v253_v1, 0.0  ;;  %v4162_v15 = vmov 0.0   ;;  %vm4163_vm1 = vmmov 0   ;;  %v3150_v25 = vld [vmem:[#allocation8] ss:$0 sm:$0xff] }
  0xb6   :  { %258 = vadd.xlane.f32.xlu0 %v257_v2  ;;  %3359 = vmatprep.subr.bf16.mxu0 %v4162_v15  ;;  %v3151_v29 = vld [vmem:[#allocation10] ss:$0 sm:$0xff]  ;;  %v3152_v34 = vld [vmem:[#allocation11] ss:$0 sm:$0xff]  ;;  %s4164_s29 = smov 96   ;;  %vm387_vm2 = vcmask 64512  }
  0xb7   :  { %3363 = vmatprep.mubr.msk.bf16.mxu0 %vm4163_vm1, %v4162_v15  ;;  %3367 = vmatprep.subr.bf16.mxu1 %v4162_v15  ;;  %v4404_v47 = vld [vmem:[#allocation5] ss:$0 sm:$0xff]  ;;  %v4407_v51 = vld [vmem:[#allocation5 + $0x1] ss:$0 sm:$0xff]  ;;  %s4165_s0 = smov 64   ;;  %s4166_s4 = smov 88  }
  0xb8   :  { %3369 = vmatprep.mubr.msk.bf16.mxu1 %vm4163_vm1, %v4162_v15  ;;  %vm512_vm3 = vcmask 1043456   ;;  %s4167_s9 = smov 120   ;;  %s4168_s8 = smov 56   ;;  %vm1290_vm4 = vcmask 130048   ;;  %vm1293_vm5 = vcmask 195584   ;;  %vm1536_vm6 = vcmask 523264  }
  0xb9   :  { %s4169_s12 = smov 80   ;;  %s4170_s5 = smov 112  }
  0xba   :  { %261 = vadd.xlane.f32.xlu0 %v260_v3  ;;  %v3708_v14 = vld [vmem:[%s4927_s3 + $0x8] sm:$0xff]   ;;  %v3709_v16 = vld [vmem:[%s4927_s3] sm:$0xff]   ;;  %s4171_s23 = smov 48   ;;  %s4172_s10 = smov 72  }
  0xbb   :  { %3360 = vmatpush3.bf16.msra.mxu0 %v3708_v14  ;;  %s4173_s1 = smov 104   ;;  %s4174_s24 = smov 40  }
  0xbc   :  { %3361 = vmatprep.subr.bf16.mxu0 %v4162_v15  ;;  %s4175_s22 = smov 24   ;;  %s4176_s6 = smov [#allocation25]  }
  0xbd   :  { %s3134_s2 = sshll.u32 %s4176_s6, 4  ;;  %s3135_s2 = int_to_ptr.vmem [resolvable:$true] %s3134_s2 }
  0xbe   :  { %p4111_p1 = scmp.lt.s32.totalorder %s3135_s2, %s3135_s2 }
  0xbf   :  { %3362 = vmatpush3.bf16.msra.mxu0 %v3709_v16 }
  0xc0   :  { %3373 = vmatprep.subr.bf16.mxu0 %v4162_v15 }
 0x13f   :  { %v259_v4 = vpop.xlane.xlu0 %258 }
 0x140   :  { %v264_v5 = vmul.f32 0.03125, %v259_v4 }
 0x142   :  { %v266_v6 = vsub.f32 %v252_v0, %v264_v5 }
 0x143   :  { %v262_v7 = vpop.xlane.xlu0 %261 }
 0x144   :  { %v265_v8 = vmul.f32 0.03125, %v262_v7  ;;  %v268_v9 = vmul.f32 %v266_v6, %v266_v6 }
 0x146   :  { %v267_v10 = vsub.f32 %v253_v1, %v265_v8  ;;  %v270_v11 = vsel %vm256_vm0, %v268_v9, 0.0 }
 0x147   :  { %271 = vadd.xlane.f32.xlu1 %v270_v11 }
 0x148   :  { %v269_v12 = vmul.f32 %v267_v10, %v267_v10 }
 0x14a   :  { %v273_v13 = vsel %vm256_vm0, %v269_v12, 0.0 }
 0x14b   :  { %274 = vadd.xlane.f32.xlu1 %v273_v13 }
 0x1d0   :  { %v272_v17 = vpop.xlane.xlu1 %271 }
 0x1d1   :  { %v276_v18 = vmul.f32 0.03125, %v272_v17 }
 0x1d3   :  { %v278_v19 = vadd.f32 1e-12, %v276_v18 }
 0x1d4   :  { %v275_v20 = vpop.xlane.xlu1 %274 }
 0x1d5   :  { %3732 = vrsqrt.f32 %v278_v19  ;;  %v277_v21 = vmul.f32 0.03125, %v275_v20 }
 0x1d7   :  { %v279_v22 = vadd.f32 1e-12, %v277_v21 }
 0x1d9   :  { %3734 = vrsqrt.f32 %v279_v22 }
 0x1e2   :  { %v3733_v23 = vpop.eup %3732 }
 0x1e3   :  { %v282_v24 = vmul.f32 %v3733_v23, %v266_v6 }
 0x1e5   :  { %v290_v28 = vmul.f32 %v3150_v25, %v282_v24 }
 0x1e6   :  { %v3735_v26 = vpop.eup %3734 }
 0x1e7   :  { %v283_v27 = vmul.f32 %v3735_v26, %v267_v10  ;;  %v4375_v31 = vadd.f32 %v3151_v29, %v290_v28 }
 0x1e9   :  { %v291_v30 = vmul.f32 %v3150_v25, %v283_v27 }
 0x1eb   :  { %v4377_v32 = vadd.f32 %v3151_v29, %v291_v30 }
 0x1ed   :  { %v302_v33 = vpack.c.bf16 %v4377_v32, %v4375_v31 }
 0x1ef   :  { %3364 = vmatmul.mubr.msk.bf16.vlgmr.msra.gmra.mxu0 %vm256_vm0, %v302_v33 }
 0x1f0   :  { %3375 = vmatprep.mubr.msk.bf16.mxu0 %vm4163_vm1, %v4162_v15 }
 0x2af   :  { %v363_v35 = vpop.f32.mrf.mxu0 }
 0x2b0   :  { %v364_v36 = vadd.f32 %v3152_v34, %v363_v35 }
 0x2b1   :  { %v3365_v37 = vpop.f32.mrf.mxu0 }
 0x2b2   :  { %v4384_v38 = vpack.c.bf16 %v364_v36, %v364_v36 }
 0x2b3   :  { %v366_v39 = vpop.f32.mrf.mxu0 }
 0x2b4   :  { %v367_v40 = vadd.f32 %v3152_v34, %v366_v39  ;;  %385 = vrot.lane.b32.xlu0 %v4384_v38, %s4164_s29 }
 0x2b5   :  { %v3366_v41 = vpop.f32.mrf.mxu0 }
 0x2b6   :  { %v4388_v42 = vpack.c.bf16 %v367_v40, %v367_v40 }
 0x2b8   :  { %435 = vrot.lane.b32.xlu1 %v4388_v42, %s4164_s29 }
 0x326   :  { %v386_v43 = vpop.permute.xlu0 %385 }
 0x327   :  { %v392_v44 = vsel %vm387_vm2, %v386_v43, 0 }
 0x328   :  { %3368 = vmatpush3.bf16.xpose.msra.mxu1 %v392_v44 }
 0x329   :  { %3379 = vmatprep.subr.bf16.mxu1 %v4162_v15 }
 0x32a   :  { %v436_v45 = vpop.permute.xlu1 %435 }
 0x32b   :  { %v441_v46 = vsel %vm387_vm2, %v436_v45, 0 }
 0x32c   :  { %3374 = vmatpush3.bf16.xpose.msra.mxu0 %v441_v46 }
 0x32d   :  { %3385 = vmatprep.subr.bf16.mxu0 %v4162_v15 }
 0x32f   :  { %3370 = vmatmul.mubr.msk.bf16.vlgmr.msra.gmra.mxu1 %vm387_vm2, %v4384_v38 }
 0x330   :  { %3381 = vmatprep.mubr.msk.bf16.mxu1 %vm4163_vm1, %v4162_v15 }
 0x333   :  { %3376 = vmatmul.mubr.msk.bf16.vlgmr.msra.gmra.mxu0 %vm387_vm2, %v4388_v42 }
 0x334   :  { %3387 = vmatprep.mubr.msk.bf16.mxu0 %vm4163_vm1, %v4162_v15 }
 0x3ef   :  { %v428_v48 = vpop.f32.mrf.mxu1 }
 0x3f0   :  { %v429_v49 = vadd.f32 %v4404_v47, %v428_v48 }
 0x3f1   :  { %v3371_v50 = vpop.f32.mrf.mxu1 }
 0x3f2   :  { %v483_v52 = vsel %vm387_vm2, %v429_v49, -inf }
 0x3f3   :  { %v431_v53 = vpop.f32.mrf.mxu1  ;;  %484 = vmax.xlane.f32.xlu1 %v483_v52  ;;  %v477_v54 = vpop.f32.mrf.mxu0 }
 0x3f4   :  { %v478_v55 = vadd.f32 %v4407_v51, %v477_v54 }
 0x3f5   :  { %v3372_v56 = vpop.f32.mrf.mxu1  ;;  %v3377_v57 = vpop.f32.mrf.mxu0 }
 0x3f6   :  { %v486_v58 = vsel %vm387_vm2, %v478_v55, -inf }
 0x3f7   :  { %487 = vmax.xlane.f32.xlu0 %v486_v58  ;;  %v480_v59 = vpop.f32.mrf.mxu0 }
 0x3f9   :  { %v3378_v60 = vpop.f32.mrf.mxu0 }
 0x404   :  { %556 = vrot.lane.b32.xlu1 %v4388_v42, %s4165_s0 }
 0x408   :  { %606 = vrot.lane.b32.xlu1 %v4384_v38, %s4166_s4 }
 0x47c   :  { %v485_v61 = vpop.xlane.xlu1 %484 }
 0x47d   :  { %v489_v62 = vsub.f32 %v429_v49, %v485_v61 }
 0x47f   :  { %v491_v63 = vmul.f32 1.442695, %v489_v62 }
 0x480   :  { %v557_v0 = vpop.permute.xlu1 %556  ;;  %v488_v1 = vpop.xlane.xlu0 %487 }
 0x481   :  { %3736 = vpow2.f32 %v491_v63  ;;  %v562_v2 = vsel %vm512_vm3, %v557_v0, 0  ;;  %v490_v3 = vsub.f32 %v478_v55, %v488_v1 }
 0x482   :  { %3386 = vmatpush3.bf16.msra.mxu0 %v562_v2 }
 0x483   :  { %v493_v4 = vmul.f32 1.442695, %v490_v3  ;;  %3397 = vmatprep.subr.bf16.mxu0 %v4162_v15 }
 0x484   :  { %v607_v9 = vpop.permute.xlu1 %606 }
 0x485   :  { %3738 = vpow2.f32 %v493_v4  ;;  %v612_v19 = vsel %vm387_vm2, %v607_v9, 0 }
 0x48e   :  { %v3737_v5 = vpop.eup %3736 }
 0x48f   :  { %v495_v6 = vsel %vm387_vm2, %v3737_v5, 0.0 }
 0x490   :  { %496 = vadd.xlane.f32.xlu0 %v495_v6 }
 0x492   :  { %v3739_v7 = vpop.eup %3738 }
 0x493   :  { %v498_v8 = vsel %vm387_vm2, %v3739_v7, 0.0 }
 0x494   :  { %499 = vadd.xlane.f32.xlu1 %v498_v8 }
 0x4a5   :  { %656 = vrot.lane.b32.xlu1 %v4388_v42, %s4166_s4 }
 0x4a6   :  { %507 = vrot.lane.b32.xlu0 %v4384_v38, %s4165_s0 }
 0x4a9   :  { %654 = vrot.lane.b32.xlu1 %v4388_v42, %s4167_s9 }
 0x4aa   :  { %604 = vrot.lane.b32.xlu0 %v4384_v38, %s4167_s9 }
 0x519   :  { %v497_v10 = vpop.xlane.xlu0 %496 }
 0x51a   :  { %3740 = vrcp.f32 %v497_v10 }
 0x51d   :  { %v500_v11 = vpop.xlane.xlu1 %499  ;;  %v508_v12 = vpop.permute.xlu0 %507 }
 0x51e   :  { %3742 = vrcp.f32 %v500_v11  ;;  %v514_v13 = vsel %vm512_vm3, %v508_v12, 0 }
 0x51f   :  { %3380 = vmatpush3.bf16.msra.mxu1 %v514_v13 }
 0x520   :  { %3391 = vmatprep.subr.bf16.mxu1 %v4162_v15 }
 0x521   :  { %v657_v21 = vpop.permute.xlu1 %656  ;;  %v605_v24 = vpop.permute.xlu0 %604 }
 0x522   :  { %v662_v23 = vsel %vm387_vm2, %v657_v21, 0 }
 0x525   :  { %v655_v25 = vpop.permute.xlu1 %654 }
 0x527   :  { %v3741_v14 = vpop.eup %3740 }
 0x528   :  { %v502_v16 = vmul.f32 %v3741_v14, %v3737_v5 }
 0x52a   :  { %v505_v17 = vpack.c.bf16 %v502_v16, %v502_v16 }
 0x52b   :  { %v3743_v18 = vpop.eup %3742 }
 0x52c   :  { %3382 = vmatmul.mubr.msk.bf16.vlgmr.msra.gmra.mxu1 %vm387_vm2, %v505_v17  ;;  %v504_v20 = vmul.f32 %v3743_v18, %v3739_v7 }
 0x52d   :  { %3392 = vmatpush3.bf16.xpose.msra.mxu1 %v612_v19  ;;  %3393 = vmatprep.mubr.msk.bf16.mxu1 %vm4163_vm1, %v4162_v15 }
 0x52e   :  { %v506_v22 = vpack.c.bf16 %v504_v20, %v504_v20  ;;  %3403 = vmatprep.subr.bf16.mxu1 %v4162_v15 }
 0x530   :  { %3388 = vmatmul.mubr.msk.bf16.vlgmr.msra.gmra.mxu0 %vm387_vm2, %v506_v22 }
 0x531   :  { %3398 = vmatpush3.bf16.xpose.msra.mxu0 %v662_v23  ;;  %3399 = vmatprep.mubr.msk.bf16.mxu0 %vm4163_vm1, %v4162_v15 }
 0x532   :  { %3409 = vmatprep.subr.bf16.mxu0 %v4162_v15 }
 0x534   :  { %3394 = vmatmul.mubr.msk.bf16.vlgmr.msra.gmra.mxu1 %vm387_vm2, %v605_v24 }
 0x535   :  { %3405 = vmatprep.mubr.msk.bf16.mxu1 %vm4163_vm1, %v4162_v15 }
 0x538   :  { %3400 = vmatmul.mubr.msk.bf16.vlgmr.msra.gmra.mxu0 %vm387_vm2, %v655_v25 }
 0x539   :  { %3411 = vmatprep.mubr.msk.bf16.mxu0 %vm4163_vm1, %v4162_v15 }
 0x5ec   :  { %v4446_v26 = vpop.f32.mrf.mxu1 }
 0x5ee   :  { %v3383_v27 = vpop.f32.mrf.mxu1 }
 0x5f0   :  { %v553_v28 = vpop.f32.mrf.mxu1  ;;  %v4448_v29 = vpop.f32.mrf.mxu0 }
 0x5f2   :  { %v3384_v30 = vpop.f32.mrf.mxu1  ;;  %v3389_v33 = vpop.f32.mrf.mxu0 }
 0x5f4   :  { %v601_v34 = vpop.f32.mrf.mxu0  ;;  %v648_v35 = vpop.f32.mrf.mxu1 }
 0x5f5   :  { %v649_v36 = vadd.f32 %v4404_v47, %v648_v35 }
 0x5f6   :  { %v3390_v37 = vpop.f32.mrf.mxu0  ;;  %v3395_v39 = vpop.f32.mrf.mxu1 }
 0x5f7   :  { %v704_v40 = vsel %vm387_vm2, %v649_v36, -inf }
 0x5f8   :  { %705 = vmax.xlane.f32.xlu0 %v704_v40  ;;  %v651_v41 = vpop.f32.mrf.mxu1  ;;  %v698_v43 = vpop.f32.mrf.mxu0 }
 0x5f9   :  { %v699_v44 = vadd.f32 %v4407_v51, %v698_v43 }
 0x5fa   :  { %v3396_v45 = vpop.f32.mrf.mxu1  ;;  %v3401_v46 = vpop.f32.mrf.mxu0 }
 0x5fb   :  { %v707_v48 = vsel %vm387_vm2, %v699_v44, -inf }
 0x5fc   :  { %708 = vmax.xlane.f32.xlu1 %v707_v48  ;;  %v701_v49 = vpop.f32.mrf.mxu0 }
 0x5fe   :  { %v3402_v50 = vpop.f32.mrf.mxu0 }
 0x60d   :  { %776 = vrot.lane.b32.xlu1 %v4388_v42, %s4168_s8 }
 0x611   :  { %826 = vrot.lane.b32.xlu1 %v4384_v38, %s4169_s12 }
 0x615   :  { %876 = vrot.lane.b32.xlu1 %v4388_v42, %s4169_s12 }
 0x619   :  { %874 = vrot.lane.b32.xlu1 %v4388_v42, %s4170_s5 }
 0x681   :  { %v706_v52 = vpop.xlane.xlu0 %705 }
 0x682   :  { %v710_v53 = vsub.f32 %v649_v36, %v706_v52 }
 0x684   :  { %v712_v54 = vmul.f32 1.442695, %v710_v53 }
 0x685   :  { %v709_v55 = vpop.xlane.xlu1 %708 }
 0x686   :  { %3744 = vpow2.f32 %v712_v54  ;;  %v711_v56 = vsub.f32 %v699_v44, %v709_v55 }
 0x688   :  { %v714_v57 = vmul.f32 1.442695, %v711_v56 }
 0x689   :  { %v777_v58 = vpop.permute.xlu1 %776 }
 0x68a   :  { %3746 = vpow2.f32 %v714_v57  ;;  %v782_v59 = vsel %vm512_vm3, %v777_v58, 0 }
 0x68b   :  { %3410 = vmatpush3.bf16.msra.mxu0 %v782_v59 }
 0x68c   :  { %3421 = vmatprep.subr.bf16.mxu0 %v4162_v15 }
 0x68d   :  { %v827_v5 = vpop.permute.xlu1 %826 }
 0x68e   :  { %v832_v9 = vsel %vm387_vm2, %v827_v5, 0 }
 0x691   :  { %v877_v11 = vpop.permute.xlu1 %876 }
 0x692   :  { %v882_v13 = vsel %vm387_vm2, %v877_v11, 0 }
 0x693   :  { %v3745_v60 = vpop.eup %3744 }
 0x694   :  { %v716_v61 = vsel %vm387_vm2, %v3745_v60, 0.0 }
 0x695   :  { %717 = vadd.xlane.f32.xlu0 %v716_v61  ;;  %v875_v16 = vpop.permute.xlu1 %874 }
 0x697   :  { %v3747_v62 = vpop.eup %3746 }
 0x698   :  { %v719_v63 = vsel %vm387_vm2, %v3747_v62, 0.0 }
 0x699   :  { %720 = vadd.xlane.f32.xlu0 %v719_v63 }
 0x6af   :  { %728 = vrot.lane.b32.xlu0 %v4384_v38, %s4168_s8 }
 0x6b3   :  { %824 = vrot.lane.b32.xlu0 %v4384_v38, %s4170_s5 }
 0x71e   :  { %v718_v0 = vpop.xlane.xlu0 %717 }
 0x71f   :  { %3748 = vrcp.f32 %v718_v0 }
 0x722   :  { %v721_v1 = vpop.xlane.xlu0 %720 }
 0x723   :  { %3750 = vrcp.f32 %v721_v1 }
 0x726   :  { %v729_v2 = vpop.permute.xlu0 %728 }
 0x727   :  { %v734_v3 = vsel %vm512_vm3, %v729_v2, 0 }
 0x728   :  { %3404 = vmatpush3.bf16.msra.mxu1 %v734_v3 }
 0x729   :  { %3415 = vmatprep.subr.bf16.mxu1 %v4162_v15 }
 0x72a   :  { %v825_v14 = vpop.permute.xlu0 %824 }
 0x72c   :  { %v3749_v4 = vpop.eup %3748 }
 0x72d   :  { %v723_v6 = vmul.f32 %v3749_v4, %v3745_v60 }
 0x72f   :  { %v726_v7 = vpack.c.bf16 %v723_v6, %v723_v6 }
 0x730   :  { %v3751_v8 = vpop.eup %3750 }
 0x731   :  { %3406 = vmatmul.mubr.msk.bf16.vlgmr.msra.gmra.mxu1 %vm387_vm2, %v726_v7  ;;  %v725_v10 = vmul.f32 %v3751_v8, %v3747_v62 }
 0x732   :  { %3416 = vmatpush3.bf16.xpose.msra.mxu1 %v832_v9  ;;  %3417 = vmatprep.mubr.msk.bf16.mxu1 %vm4163_vm1, %v4162_v15 }
 0x733   :  { %v727_v12 = vpack.c.bf16 %v725_v10, %v725_v10  ;;  %3427 = vmatprep.subr.bf16.mxu1 %v4162_v15 }
 0x735   :  { %3412 = vmatmul.mubr.msk.bf16.vlgmr.msra.gmra.mxu0 %vm387_vm2, %v727_v12 }
 0x736   :  { %3422 = vmatpush3.bf16.xpose.msra.mxu0 %v882_v13  ;;  %3423 = vmatprep.mubr.msk.bf16.mxu0 %vm4163_vm1, %v4162_v15 }
 0x737   :  { %3433 = vmatprep.subr.bf16.mxu0 %v4162_v15 }
 0x739   :  { %3418 = vmatmul.mubr.msk.bf16.vlgmr.msra.gmra.mxu1 %vm387_vm2, %v825_v14 }
 0x73a   :  { %3429 = vmatprep.mubr.msk.bf16.mxu1 %vm4163_vm1, %v4162_v15 }
 0x73d   :  { %3424 = vmatmul.mubr.msk.bf16.vlgmr.msra.gmra.mxu0 %vm387_vm2, %v875_v16 }
 0x73e   :  { %3435 = vmatprep.mubr.msk.bf16.mxu0 %vm4163_vm1, %v4162_v15 }
 0x7f1   :  { %v4488_v17 = vpop.f32.mrf.mxu1 }
 0x7f3   :  { %v3407_v18 = vpop.f32.mrf.mxu1 }
 0x7f5   :  { %v773_v19 = vpop.f32.mrf.mxu1  ;;  %v4490_v20 = vpop.f32.mrf.mxu0 }
 0x7f6   :  { %v3678_v21 = vpack.i.bf16 %v4490_v20, %v4488_v17 }
 0x7f7   :  { %v3408_v22 = vpop.f32.mrf.mxu1  ;;  %v3413_v23 = vpop.f32.mrf.mxu0 }
 0x7f9   :  { %v821_v24 = vpop.f32.mrf.mxu0  ;;  %v868_v25 = vpop.f32.mrf.mxu1 }
 0x7fa   :  { %v869_v27 = vadd.f32 %v4404_v47, %v868_v25 }
 0x7fb   :  { %v3414_v28 = vpop.f32.mrf.mxu0  ;;  %v3419_v30 = vpop.f32.mrf.mxu1 }
 0x7fc   :  { %v924_v33 = vsel %vm387_vm2, %v869_v27, -inf }
 0x7fd   :  { %925 = vmax.xlane.f32.xlu0 %v924_v33  ;;  %v871_v34 = vpop.f32.mrf.mxu1  ;;  %v918_v35 = vpop.f32.mrf.mxu0 }
 0x7fe   :  { %v919_v36 = vadd.f32 %v4407_v51, %v918_v35 }
 0x7ff   :  { %v3420_v37 = vpop.f32.mrf.mxu1  ;;  %v3425_v39 = vpop.f32.mrf.mxu0 }
 0x800   :  { %v927_v40 = vsel %vm387_vm2, %v919_v36, -inf }
 0x801   :  { %928 = vmax.xlane.f32.xlu1 %v927_v40  ;;  %v921_v41 = vpop.f32.mrf.mxu0 }
 0x803   :  { %v3426_v43 = vpop.f32.mrf.mxu0 }
 0x812   :  { %996 = vrot.lane.b32.xlu1 %v4388_v42, %s4171_s23 }
 0x816   :  { %1046 = vrot.lane.b32.xlu1 %v4384_v38, %s4172_s10 }
 0x81a   :  { %1096 = vrot.lane.b32.xlu1 %v4388_v42, %s4172_s10 }
 0x81e   :  { %1094 = vrot.lane.b32.xlu1 %v4388_v42, %s4173_s1 }
 0x886   :  { %v926_v44 = vpop.xlane.xlu0 %925 }
 0x887   :  { %v930_v45 = vsub.f32 %v869_v27, %v926_v44 }
 0x889   :  { %v932_v46 = vmul.f32 1.442695, %v930_v45 }
 0x88a   :  { %v929_v48 = vpop.xlane.xlu1 %928 }
 0x88b   :  { %3752 = vpow2.f32 %v932_v46  ;;  %v931_v49 = vsub.f32 %v919_v36, %v929_v48 }
 0x88d   :  { %v934_v50 = vmul.f32 1.442695, %v931_v49 }
 0x88e   :  { %v997_v52 = vpop.permute.xlu1 %996 }
 0x88f   :  { %3754 = vpow2.f32 %v934_v50  ;;  %v1002_v53 = vsel %vm512_vm3, %v997_v52, 0 }
 0x890   :  { %3434 = vmatpush3.bf16.msra.mxu0 %v1002_v53 }
 0x891   :  { %3445 = vmatprep.subr.bf16.mxu0 %v4162_v15 }
 0x892   :  { %v1047_v63 = vpop.permute.xlu1 %1046 }
 0x893   :  { %v1052_v3 = vsel %vm387_vm2, %v1047_v63, 0 }
 0x896   :  { %v1097_v5 = vpop.permute.xlu1 %1096 }
 0x897   :  { %v1102_v7 = vsel %vm387_vm2, %v1097_v5, 0 }
 0x898   :  { %v3753_v54 = vpop.eup %3752 }
 0x899   :  { %v936_v55 = vsel %vm387_vm2, %v3753_v54, 0.0 }
 0x89a   :  { %937 = vadd.xlane.f32.xlu0 %v936_v55  ;;  %v1095_v9 = vpop.permute.xlu1 %1094 }
 0x89c   :  { %v3755_v56 = vpop.eup %3754 }
 0x89d   :  { %v939_v57 = vsel %vm387_vm2, %v3755_v56, 0.0 }
 0x89e   :  { %940 = vadd.xlane.f32.xlu0 %v939_v57 }
 0x8b4   :  { %948 = vrot.lane.b32.xlu0 %v4384_v38, %s4171_s23 }
 0x8b8   :  { %1044 = vrot.lane.b32.xlu0 %v4384_v38, %s4173_s1 }
 0x923   :  { %v938_v58 = vpop.xlane.xlu0 %937 }
 0x924   :  { %3756 = vrcp.f32 %v938_v58 }
 0x927   :  { %v941_v59 = vpop.xlane.xlu0 %940 }
 0x928   :  { %3758 = vrcp.f32 %v941_v59  ;;  %v3710_v59 = vld [vmem:[%s4900_s7 + $0x8] sm:$0xff]  }
 0x92b   :  { %v949_v60 = vpop.permute.xlu0 %948 }
 0x92c   :  { %v954_v61 = vsel %vm512_vm3, %v949_v60, 0  ;;  %v3711_v60 = vld [vmem:[%s4900_s7] sm:$0xff]  }
 0x92d   :  { %3428 = vmatpush3.bf16.msra.mxu1 %v954_v61 }
 0x92e   :  { %3439 = vmatprep.subr.bf16.mxu1 %v4162_v15 }
 0x92f   :  { %v1045_v8 = vpop.permute.xlu0 %1044 }
 0x931   :  { %v3757_v62 = vpop.eup %3756 }
 0x932   :  { %v943_v0 = vmul.f32 %v3757_v62, %v3753_v54 }
 0x934   :  { %v946_v1 = vpack.c.bf16 %v943_v0, %v943_v0 }
 0x935   :  { %v3759_v2 = vpop.eup %3758 }
 0x936   :  { %3430 = vmatmul.mubr.msk.bf16.vlgmr.msra.gmra.mxu1 %vm387_vm2, %v946_v1  ;;  %v945_v4 = vmul.f32 %v3759_v2, %v3755_v56 }
 0x937   :  { %3440 = vmatpush3.bf16.xpose.msra.mxu1 %v1052_v3  ;;  %3441 = vmatprep.mubr.msk.bf16.mxu1 %vm4163_vm1, %v4162_v15 }
 0x938   :  { %v947_v6 = vpack.c.bf16 %v945_v4, %v945_v4  ;;  %3451 = vmatprep.subr.bf16.mxu1 %v4162_v15 }
 0x93a   :  { %3436 = vmatmul.mubr.msk.bf16.vlgmr.msra.gmra.mxu0 %vm387_vm2, %v947_v6 }
 0x93b   :  { %3446 = vmatpush3.bf16.xpose.msra.mxu0 %v1102_v7  ;;  %3447 = vmatprep.mubr.msk.bf16.mxu0 %vm4163_vm1, %v4162_v15 }
 0x93c   :  { %3457 = vmatprep.subr.bf16.mxu0 %v4162_v15 }
 0x93e   :  { %3442 = vmatmul.mubr.msk.bf16.vlgmr.msra.gmra.mxu1 %vm387_vm2, %v1045_v8 }
 0x93f   :  { %3453 = vmatprep.mubr.msk.bf16.mxu1 %vm4163_vm1, %v4162_v15 }
 0x942   :  { %3448 = vmatmul.mubr.msk.bf16.vlgmr.msra.gmra.mxu0 %vm387_vm2, %v1095_v9 }
 0x943   :  { %3459 = vmatprep.mubr.msk.bf16.mxu0 %vm4163_vm1, %v4162_v15 }
 0x9f6   :  { %v990_v10 = vpop.f32.mrf.mxu1 }
 0x9f8   :  { %v3431_v11 = vpop.f32.mrf.mxu1 }
 0x9fa   :  { %v993_v12 = vpop.f32.mrf.mxu1  ;;  %v1038_v13 = vpop.f32.mrf.mxu0 }
 0x9fb   :  { %v3683_v39 = vpack.i.bf16 %v1038_v13, %v990_v10 }
 0x9fc   :  { %v3432_v14 = vpop.f32.mrf.mxu1  ;;  %v3437_v16 = vpop.f32.mrf.mxu0 }
 0x9fe   :  { %v1041_v18 = vpop.f32.mrf.mxu0  ;;  %v1088_v19 = vpop.f32.mrf.mxu1 }
 0x9ff   :  { %v1089_v22 = vadd.f32 %v4404_v47, %v1088_v19 }
 0xa00   :  { %v3438_v23 = vpop.f32.mrf.mxu0  ;;  %v3443_v24 = vpop.f32.mrf.mxu1 }
 0xa01   :  { %v1144_v25 = vsel %vm387_vm2, %v1089_v22, -inf }
 0xa02   :  { %1145 = vmax.xlane.f32.xlu0 %v1144_v25  ;;  %v1091_v27 = vpop.f32.mrf.mxu1  ;;  %v1138_v28 = vpop.f32.mrf.mxu0 }
 0xa03   :  { %v1139_v30 = vadd.f32 %v4407_v51, %v1138_v28 }
 0xa04   :  { %v3444_v33 = vpop.f32.mrf.mxu1  ;;  %v3449_v34 = vpop.f32.mrf.mxu0 }
 0xa05   :  { %v1147_v35 = vsel %vm387_vm2, %v1139_v30, -inf }
 0xa06   :  { %1148 = vmax.xlane.f32.xlu1 %v1147_v35  ;;  %v1141_v36 = vpop.f32.mrf.mxu0 }
 0xa08   :  { %v3450_v37 = vpop.f32.mrf.mxu0 }
 0xa17   :  { %1216 = vrot.lane.b32.xlu1 %v4388_v42, %s4174_s24 }
 0xa1b   :  { %3679 = vrot.lane.b32.xlu1 %v3678_v21, %s4154_s30 }
 0xa1f   :  { %3684 = vrot.lane.b32.xlu1 %v3683_v39, %s4145_s27 }
 0xa8b   :  { %v1146_v51 = vpop.xlane.xlu0 %1145 }
 0xa8c   :  { %v1150_v40 = vsub.f32 %v1089_v22, %v1146_v51 }
 0xa8e   :  { %v1152_v41 = vmul.f32 1.442695, %v1150_v40 }
 0xa8f   :  { %v1149_v43 = vpop.xlane.xlu1 %1148 }
 0xa90   :  { %3760 = vpow2.f32 %v1152_v41  ;;  %v1151_v44 = vsub.f32 %v1139_v30, %v1149_v43 }
 0xa92   :  { %v1154_v45 = vmul.f32 1.442695, %v1151_v44 }
 0xa93   :  { %v1217_v46 = vpop.permute.xlu1 %1216 }
 0xa94   :  { %3762 = vpow2.f32 %v1154_v45  ;;  %v1222_v48 = vsel %vm512_vm3, %v1217_v46, 0 }
 0xa95   :  { %3458 = vmatpush3.bf16.msra.mxu0 %v1222_v48 }
 0xa96   :  { %3471 = vmatprep.subr.bf16.mxu0 %v4162_v15 }
 0xa97   :  { %v3680_v6 = vpop.permute.xlu1 %3679 }
 0xa98   :  { %v3682_v8 = vunpack.i.h.bf16 %v3680_v6  ;;  %v3681_v9 = vunpack.i.l.bf16 %v3680_v6 }
 0xa9a   :  { %v1289_v13 = vsel %vm387_vm2, %v4448_v29, %v3682_v8  ;;  %v1288_v14 = vsel %vm387_vm2, %v4446_v26, %v3681_v9  ;;  %v3174_v29 = vld [vmem:[#allocation13] ss:$0 sm:$0xff] }
 0xa9b   :  { %v3685_v7 = vpop.permute.xlu1 %3684 }
 0xa9c   :  { %v3687_v10 = vunpack.i.h.bf16 %v3685_v7  ;;  %v3686_v11 = vunpack.i.l.bf16 %v3685_v7 }
 0xa9d   :  { %v3761_v42 = vpop.eup %3760 }
 0xa9e   :  { %v1156_v17 = vsel %vm387_vm2, %v3761_v42, 0.0  ;;  %v1291_v19 = vsel %vm1290_vm4, %v1288_v14, %v3686_v11  ;;  %v1292_v22 = vsel %vm1290_vm4, %v1289_v13, %v3687_v10 }
 0xa9f   :  { %1157 = vadd.xlane.f32.xlu0 %v1156_v17  ;;  %v3713_v17 = vld [vmem:[%s4904_s11] sm:$0xff]  }
 0xaa1   :  { %v3763_v20 = vpop.eup %3762 }
 0xaa2   :  { %v1159_v21 = vsel %vm387_vm2, %v3763_v20, 0.0 }
 0xaa3   :  { %1160 = vadd.xlane.f32.xlu0 %v1159_v21 }
 0xab9   :  { %1168 = vrot.lane.b32.xlu0 %v4384_v38, %s4174_s24 }
 0xb28   :  { %v1158_v49 = vpop.xlane.xlu0 %1157 }
 0xb29   :  { %3764 = vrcp.f32 %v1158_v49 }
 0xb2c   :  { %v1161_v50 = vpop.xlane.xlu0 %1160 }
 0xb2d   :  { %3766 = vrcp.f32 %v1161_v50 }
 0xb30   :  { %v1169_v52 = vpop.permute.xlu0 %1168 }
 0xb31   :  { %v1174_v53 = vsel %vm512_vm3, %v1169_v52, 0 }
 0xb32   :  { %3452 = vmatpush3.bf16.msra.mxu1 %v1174_v53 }
 0xb33   :  { %3463 = vmatprep.subr.bf16.mxu1 %v4162_v15 }
 0xb36   :  { %v3765_v54 = vpop.eup %3764 }
 0xb37   :  { %v1163_v55 = vmul.f32 %v3765_v54, %v3761_v42 }
 0xb39   :  { %v1166_v56 = vpack.c.bf16 %v1163_v55, %v1163_v55 }
 0xb3a   :  { %v3767_v57 = vpop.eup %3766 }
 0xb3b   :  { %3454 = vmatmul.mubr.msk.bf16.vlgmr.msra.gmra.mxu1 %vm387_vm2, %v1166_v56  ;;  %v1165_v58 = vmul.f32 %v3767_v57, %v3763_v20  ;;  %v3178_v56 = vld [vmem:[#allocation14] ss:$0 sm:$0xff] }
 0xb3c   :  { %3467 = vmatprep.mubr.msk.bf16.mxu1 %vm4163_vm1, %v4162_v15  ;;  %3464 = vmatpush3.bf16.msra.mxu1 %v3710_v59  ;;  %v3179_v59 = vld [vmem:[#allocation16] ss:$0 sm:$0xff] }
 0xb3d   :  { %v1167_v38 = vpack.c.bf16 %v1165_v58, %v1165_v58  ;;  %3465 = vmatprep.subr.bf16.mxu1 %v4162_v15 }
 0xb3f   :  { %3460 = vmatmul.mubr.msk.bf16.vlgmr.msra.gmra.mxu0 %vm387_vm2, %v1167_v38 }
 0xb40   :  { %3475 = vmatprep.mubr.msk.bf16.mxu0 %vm4163_vm1, %v4162_v15  ;;  %3466 = vmatpush3.bf16.msra.mxu1 %v3711_v60 }
 0xb41   :  { %3479 = vmatprep.subr.bf16.mxu1 %v4162_v15 }
 0xbfb   :  { %v1210_v61 = vpop.f32.mrf.mxu1 }
 0xbfd   :  { %v3455_v62 = vpop.f32.mrf.mxu1 }
 0xbff   :  { %v1213_v63 = vpop.f32.mrf.mxu1  ;;  %v1258_v0 = vpop.f32.mrf.mxu0 }
 0xc00   :  { %v3688_v1 = vpack.i.bf16 %v1258_v0, %v1210_v61  ;;  %v3714_v0 = vld [vmem:[%s4906_s13 + $0x18] sm:$0xff]  }
 0xc01   :  { %v3456_v2 = vpop.f32.mrf.mxu1  ;;  %v3461_v3 = vpop.f32.mrf.mxu0 }
 0xc02   :  { %3689 = vrot.lane.b32.xlu0 %v3688_v1, %s4175_s22  ;;  %v3715_v1 = vld [vmem:[%s4906_s13 + $0x10] sm:$0xff]   ;;  %v3716_v2 = vld [vmem:[%s4906_s13 + $0x8] sm:$0xff]   ;;  %v3717_v3 = vld [vmem:[%s4906_s13] sm:$0xff]  }
 0xc03   :  { %v1261_v4 = vpop.f32.mrf.mxu0 }
 0xc04   :  { %v3180_v4 = vld [vmem:[#allocation17] ss:$0 sm:$0xff] }
 0xc05   :  { %v3462_v5 = vpop.f32.mrf.mxu0 }
 0xc74   :  { %v3690_v12 = vpop.permute.xlu0 %3689 }
 0xc75   :  { %v3692_v16 = vunpack.i.h.bf16 %v3690_v12  ;;  %v3691_v18 = vunpack.i.l.bf16 %v3690_v12 }
 0xc77   :  { %v1295_v23 = vsel %vm1293_vm5, %v1292_v22, %v3692_v16  ;;  %v1294_v24 = vsel %vm1293_vm5, %v1291_v19, %v3691_v18 }
 0xc78   :  { %v1296_v25 = vpack.c.bf16 %v1295_v23, %v1294_v24 }
 0xc7a   :  { %3468 = vmatmul.mubr.msk.bf16.vlgmr.msra.gmra.mxu1 %vm256_vm0, %v1296_v25 }
 0xc7b   :  { %3487 = vmatprep.mubr.msk.bf16.mxu1 %vm4163_vm1, %v4162_v15  ;;  %3480 = vmatpush3.bf16.msra.mxu1 %v3714_v0 }
 0xc7c   :  { %3481 = vmatprep.subr.bf16.mxu1 %v4162_v15 }
 0xc7f   :  { %3482 = vmatpush3.bf16.msra.mxu1 %v3715_v1 }
 0xc80   :  { %3483 = vmatprep.subr.bf16.mxu1 %v4162_v15 }
 0xc83   :  { %3484 = vmatpush3.bf16.msra.mxu1 %v3716_v2 }
 0xc84   :  { %3485 = vmatprep.subr.bf16.mxu1 %v4162_v15 }
 0xc87   :  { %3486 = vmatpush3.bf16.msra.mxu1 %v3717_v3  ;;  %v3191_v3 = vld [vmem:[#allocation22] ss:$0 sm:$0xff] }
 0xc88   :  { %3505 = vmatprep.subr.bf16.mxu1 %v4162_v15 }
 0xd3a   :  { %v1357_v27 = vpop.f32.mrf.mxu1 }
 0xd3b   :  { %v1358_v28 = vadd.f32 %v3174_v29, %v1357_v27 }
 0xd3c   :  { %v3469_v26 = vpop.f32.mrf.mxu1 }
 0xd3d   :  { %v1364_v30 = vadd.f32 %v1358_v28, %v4375_v31 }
 0xd3e   :  { %v1360_v33 = vpop.f32.mrf.mxu1 }
 0xd3f   :  { %v1361_v34 = vadd.f32 %v3174_v29, %v1360_v33  ;;  %v1368_v35 = vsel %vm256_vm0, %v1364_v30, 0.0 }
 0xd40   :  { %1369 = vadd.xlane.f32.xlu1 %v1368_v35  ;;  %v3470_v36 = vpop.f32.mrf.mxu1 }
 0xd41   :  { %v1365_v37 = vadd.f32 %v1361_v34, %v4377_v32  ;;  %v3712_v32 = vld [vmem:[%s4904_s11 + $0x8] sm:$0xff]   ;;  %v3184_v36 = vld [vmem:[#allocation19] ss:$0 sm:$0xff] }
 0xd42   :  { %3472 = vmatpush3.bf16.msra.mxu0 %v3712_v32 }
 0xd43   :  { %v1371_v39 = vsel %vm256_vm0, %v1365_v37, 0.0  ;;  %3473 = vmatprep.subr.bf16.mxu0 %v4162_v15 }
 0xd44   :  { %1372 = vadd.xlane.f32.xlu0 %v1371_v39 }
 0xd46   :  { %3474 = vmatpush3.bf16.msra.mxu0 %v3713_v17 }
 0xd47   :  { %3491 = vmatprep.subr.bf16.mxu0 %v4162_v15 }
 0xdc9   :  { %v1370_v51 = vpop.xlane.xlu1 %1369 }
 0xdca   :  { %v1374_v40 = vmul.f32 0.03125, %v1370_v51 }
 0xdcc   :  { %v1376_v41 = vsub.f32 %v1364_v30, %v1374_v40 }
 0xdcd   :  { %v1373_v43 = vpop.xlane.xlu0 %1372 }
 0xdce   :  { %v1375_v44 = vmul.f32 0.03125, %v1373_v43  ;;  %v1378_v45 = vmul.f32 %v1376_v41, %v1376_v41 }
 0xdd0   :  { %v1377_v46 = vsub.f32 %v1365_v37, %v1375_v44  ;;  %v1380_v31 = vsel %vm256_vm0, %v1378_v45, 0.0 }
 0xdd1   :  { %1381 = vadd.xlane.f32.xlu0 %v1380_v31 }
 0xdd2   :  { %v1379_v48 = vmul.f32 %v1377_v46, %v1377_v46 }
 0xdd4   :  { %v1383_v42 = vsel %vm256_vm0, %v1379_v48, 0.0 }
 0xdd5   :  { %1384 = vadd.xlane.f32.xlu0 %v1383_v42 }
 0xe5a   :  { %v1382_v20 = vpop.xlane.xlu0 %1381 }
 0xe5b   :  { %v1386_v21 = vmul.f32 0.03125, %v1382_v20 }
 0xe5d   :  { %v1388_v49 = vadd.f32 1e-12, %v1386_v21 }
 0xe5e   :  { %v1385_v50 = vpop.xlane.xlu0 %1384 }
 0xe5f   :  { %3768 = vrsqrt.f32 %v1388_v49  ;;  %v1387_v52 = vmul.f32 0.03125, %v1385_v50 }
 0xe61   :  { %v1389_v53 = vadd.f32 1e-12, %v1387_v52 }
 0xe63   :  { %3770 = vrsqrt.f32 %v1389_v53 }
 0xe6c   :  { %v3769_v54 = vpop.eup %3768 }
 0xe6d   :  { %v1392_v55 = vmul.f32 %v3769_v54, %v1376_v41  ;;  %v3718_v54 = vld [vmem:[%s4927_s3 + $0x18] sm:$0xff]  }
 0xe6f   :  { %v1400_v38 = vmul.f32 %v3178_v56, %v1392_v55  ;;  %v3719_v55 = vld [vmem:[%s4927_s3 + $0x10] sm:$0xff]  }
 0xe70   :  { %v3771_v57 = vpop.eup %3770 }
 0xe71   :  { %v1393_v58 = vmul.f32 %v3771_v57, %v1377_v46  ;;  %v1408_v61 = vadd.f32 %v3179_v59, %v1400_v38 }
 0xe73   :  { %v1401_v60 = vmul.f32 %v3178_v56, %v1393_v58 }
 0xe75   :  { %v1409_v62 = vadd.f32 %v3179_v59, %v1401_v60 }
 0xe77   :  { %v1410_v63 = vpack.c.bf16 %v1409_v62, %v1408_v61 }
 0xe79   :  { %3476 = vmatmul.mubr.msk.bf16.vlgmr.msra.gmra.mxu0 %vm256_vm0, %v1410_v63  ;;  %v3190_v63 = vld [vmem:[#allocation20] ss:$0 sm:$0xff] }
 0xe7a   :  { %3495 = vmatprep.mubr.msk.bf16.mxu0 %vm4163_vm1, %v4162_v15  ;;  %3492 = vmatpush3.bf16.msra.mxu0 %v3718_v54 }
 0xe7b   :  { %3493 = vmatprep.subr.bf16.mxu0 %v4162_v15 }
 0xe7e   :  { %3494 = vmatpush3.bf16.msra.mxu0 %v3719_v55 }
 0xe7f   :  { %3499 = vmatprep.subr.bf16.mxu0 %v4162_v15 }
 0xf39   :  { %v1471_v5 = vpop.f32.mrf.mxu0 }
 0xf3a   :  { %v1472_v6 = vadd.f32 %v3180_v4, %v1471_v5 }
 0xf3b   :  { %v3477_v7 = vpop.f32.mrf.mxu0 }
 0xf3c   :  { %v1480_v8 = vmul.f32 0.044715, %v1472_v6  ;;  %v1478_v28 = vmul.f32 0.5, %v1472_v6 }
 0xf3d   :  { %v1474_v9 = vpop.f32.mrf.mxu0 }
 0xf3e   :  { %v1482_v10 = vmul.f32 %v1480_v8, %v1472_v6  ;;  %v1475_v11 = vadd.f32 %v3180_v4, %v1474_v9  ;;  %v3196_v8 = vld [vmem:[#allocation11 + $0x1] ss:$0 sm:$0xff] }
 0xf3f   :  { %v3478_v12 = vpop.f32.mrf.mxu0 }
 0xf40   :  { %v1484_v13 = vmul.f32 %v1482_v10, %v1472_v6  ;;  %v1481_v14 = vmul.f32 0.044715, %v1475_v11  ;;  %v1479_v26 = vmul.f32 0.5, %v1475_v11 }
 0xf42   :  { %v1486_v16 = vadd.f32 %v1484_v13, %v1472_v6  ;;  %v1483_v18 = vmul.f32 %v1481_v14, %v1475_v11 }
 0xf44   :  { %v1488_v19 = vmul.f32 0.7978846, %v1486_v16  ;;  %v1485_v22 = vmul.f32 %v1483_v18, %v1475_v11 }
 0xf46   :  { %3772 = vtanh.f32 %v1488_v19  ;;  %v1487_v23 = vadd.f32 %v1485_v22, %v1475_v11 }
 0xf48   :  { %v1489_v24 = vmul.f32 0.7978846, %v1487_v23 }
 0xf4a   :  { %3774 = vtanh.f32 %v1489_v24 }
 0xf53   :  { %v3773_v25 = vpop.eup %3772 }
 0xf54   :  { %v1492_v29 = vadd.f32 1.0, %v3773_v25 }
 0xf56   :  { %v1494_v33 = vmul.f32 %v1492_v29, %v1478_v28 }
 0xf57   :  { %v3775_v27 = vpop.eup %3774 }
 0xf58   :  { %v1493_v30 = vadd.f32 1.0, %v3775_v27 }
 0xf5a   :  { %v1495_v34 = vmul.f32 %v1493_v30, %v1479_v26 }
 0xf5c   :  { %v1496_v35 = vpack.c.bf16 %v1495_v34, %v1494_v33  ;;  %v4656_v33 = vld [vmem:[#allocation5 + $0x1] ss:$0 sm:$0xff] }
 0xf5e   :  { %3488 = vmatmul.mubr.msk.bf16.vlgmr.msra.gmra.mxu1 %vm1536_vm6, %v1496_v35 }
 0xf5f   :  { %3507 = vmatprep.mubr.msk.bf16.mxu1 %vm4163_vm1, %v4162_v15 }
0x101e   :  { %v1574_v37 = vpop.f32.mrf.mxu1 }
0x101f   :  { %v1575_v39 = vadd.f32 %v3184_v36, %v1574_v37 }
0x1020   :  { %v3489_v51 = vpop.f32.mrf.mxu1 }
0x1021   :  { %v1581_v40 = vadd.f32 %v1575_v39, %v1408_v61 }
0x1022   :  { %v1577_v41 = vpop.f32.mrf.mxu1 }
0x1023   :  { %v1578_v43 = vadd.f32 %v3184_v36, %v1577_v41  ;;  %v1585_v44 = vsel %vm256_vm0, %v1581_v40, 0.0 }
0x1024   :  { %1586 = vadd.xlane.f32.xlu1 %v1585_v44  ;;  %v3490_v45 = vpop.f32.mrf.mxu1 }
0x1025   :  { %v1582_v46 = vadd.f32 %v1578_v43, %v1409_v62 }
0x1027   :  { %v1588_v31 = vsel %vm256_vm0, %v1582_v46, 0.0 }
0x1028   :  { %1589 = vadd.xlane.f32.xlu0 %v1588_v31 }
0x10ad   :  { %v1587_v48 = vpop.xlane.xlu1 %1586 }
0x10ae   :  { %v1591_v42 = vmul.f32 0.03125, %v1587_v48 }
0x10b0   :  { %v1593_v32 = vsub.f32 %v1581_v40, %v1591_v42 }
0x10b1   :  { %v1590_v17 = vpop.xlane.xlu0 %1589 }
0x10b2   :  { %v1592_v20 = vmul.f32 0.03125, %v1590_v17  ;;  %v1595_v21 = vmul.f32 %v1593_v32, %v1593_v32 }
0x10b4   :  { %v1594_v49 = vsub.f32 %v1582_v46, %v1592_v20  ;;  %v1597_v50 = vsel %vm256_vm0, %v1595_v21, 0.0 }
0x10b5   :  { %1598 = vadd.xlane.f32.xlu1 %v1597_v50 }
0x10b6   :  { %v1596_v52 = vmul.f32 %v1594_v49, %v1594_v49 }
0x10b8   :  { %v1600_v53 = vsel %vm256_vm0, %v1596_v52, 0.0 }
0x10b9   :  { %1601 = vadd.xlane.f32.xlu0 %v1600_v53 }
0x113e   :  { %v1599_v56 = vpop.xlane.xlu1 %1598 }
0x113f   :  { %v1603_v57 = vmul.f32 0.03125, %v1599_v56 }
0x1141   :  { %v1605_v58 = vadd.f32 1e-12, %v1603_v57 }
0x1142   :  { %v1602_v38 = vpop.xlane.xlu0 %1601 }
0x1143   :  { %3776 = vrsqrt.f32 %v1605_v58  ;;  %v1604_v59 = vmul.f32 0.03125, %v1602_v38 }
0x1145   :  { %v1606_v60 = vadd.f32 1e-12, %v1604_v59 }
0x1147   :  { %3778 = vrsqrt.f32 %v1606_v60 }
0x1150   :  { %v3777_v61 = vpop.eup %3776 }
0x1151   :  { %v1609_v62 = vmul.f32 %v3777_v61, %v1593_v32 }
0x1153   :  { %v1617_v2 = vmul.f32 %v3190_v63, %v1609_v62 }
0x1154   :  { %v3779_v0 = vpop.eup %3778 }
0x1155   :  { %v1610_v1 = vmul.f32 %v3779_v0, %v1594_v49  ;;  %v4625_v5 = vadd.f32 %v3191_v3, %v1617_v2 }
0x1157   :  { %v1618_v4 = vmul.f32 %v3190_v63, %v1610_v1 }
0x1159   :  { %v4627_v6 = vadd.f32 %v3191_v3, %v1618_v4 }
0x115b   :  { %v1627_v7 = vpack.c.bf16 %v4627_v6, %v4625_v5 }
0x115d   :  { %3496 = vmatmul.mubr.msk.bf16.vlgmr.msra.gmra.mxu0 %vm256_vm0, %v1627_v7 }
0x115e   :  { %3501 = vmatprep.mubr.msk.bf16.mxu0 %vm4163_vm1, %v4162_v15 }
0x121d   :  { %v1690_v9 = vpop.f32.mrf.mxu0 }
0x121e   :  { %v1691_v10 = vadd.f32 %v3196_v8, %v1690_v9  ;;  %v4698_v9 = vld [vmem:[#allocation5] ss:$0 sm:$0xff] }
0x121f   :  { %v3497_v11 = vpop.f32.mrf.mxu0 }
0x1220   :  { %v4634_v12 = vpack.c.bf16 %v1691_v10, %v1691_v10 }
0x1221   :  { %v1693_v13 = vpop.f32.mrf.mxu0 }
0x1222   :  { %v1694_v14 = vadd.f32 %v3196_v8, %v1693_v13  ;;  %1700 = vrot.lane.b32.xlu1 %v4634_v12, %s4164_s29 }
0x1223   :  { %v3498_v16 = vpop.f32.mrf.mxu0 }
0x1224   :  { %v4638_v18 = vpack.c.bf16 %v1694_v14, %v1694_v14 }
0x1226   :  { %1749 = vrot.lane.b32.xlu0 %v4638_v18, %s4164_s29 }
0x1294   :  { %v1701_v19 = vpop.permute.xlu1 %1700 }
0x1295   :  { %v1706_v22 = vsel %vm387_vm2, %v1701_v19, 0 }
0x1296   :  { %3500 = vmatpush3.bf16.xpose.msra.mxu0 %v1706_v22 }
0x1297   :  { %3511 = vmatprep.subr.bf16.mxu0 %v4162_v15 }
0x1298   :  { %v1750_v23 = vpop.permute.xlu0 %1749 }
0x1299   :  { %v1755_v24 = vsel %vm387_vm2, %v1750_v23, 0 }
0x129a   :  { %3506 = vmatpush3.bf16.xpose.msra.mxu1 %v1755_v24 }
0x129b   :  { %3517 = vmatprep.subr.bf16.mxu1 %v4162_v15 }
0x129d   :  { %3502 = vmatmul.mubr.msk.bf16.vlgmr.msra.gmra.mxu0 %vm387_vm2, %v4634_v12 }
0x129e   :  { %3513 = vmatprep.mubr.msk.bf16.mxu0 %vm4163_vm1, %v4162_v15 }
0x12a1   :  { %3508 = vmatmul.mubr.msk.bf16.vlgmr.msra.gmra.mxu1 %vm387_vm2, %v4638_v18 }
0x12a2   :  { %3519 = vmatprep.mubr.msk.bf16.mxu1 %vm4163_vm1, %v4162_v15 }
0x135d   :  { %v1742_v25 = vpop.f32.mrf.mxu0 }
0x135e   :  { %v1743_v29 = vadd.f32 %v4404_v47, %v1742_v25 }
0x135f   :  { %v3503_v27 = vpop.f32.mrf.mxu0 }
0x1360   :  { %v1797_v28 = vsel %vm387_vm2, %v1743_v29, -inf }
0x1361   :  { %v1791_v26 = vpop.f32.mrf.mxu1  ;;  %1798 = vmax.xlane.f32.xlu1 %v1797_v28  ;;  %v1745_v30 = vpop.f32.mrf.mxu0 }
0x1362   :  { %v1792_v34 = vadd.f32 %v4656_v33, %v1791_v26 }
0x1363   :  { %v3504_v35 = vpop.f32.mrf.mxu0  ;;  %v3509_v36 = vpop.f32.mrf.mxu1 }
0x1364   :  { %v1800_v37 = vsel %vm387_vm2, %v1792_v34, -inf }
0x1365   :  { %1801 = vmax.xlane.f32.xlu0 %v1800_v37  ;;  %v1794_v39 = vpop.f32.mrf.mxu1 }
0x1367   :  { %v3510_v51 = vpop.f32.mrf.mxu1 }
0x1372   :  { %1821 = vrot.lane.b32.xlu1 %v4634_v12, %s4165_s0 }
0x13ea   :  { %v1799_v47 = vpop.xlane.xlu1 %1798 }
0x13eb   :  { %v1803_v40 = vsub.f32 %v1743_v29, %v1799_v47 }
0x13ed   :  { %v1805_v41 = vmul.f32 1.442695, %v1803_v40 }
0x13ee   :  { %v1802_v43 = vpop.xlane.xlu0 %1801  ;;  %v1822_v44 = vpop.permute.xlu1 %1821 }
0x13ef   :  { %3780 = vpow2.f32 %v1805_v41  ;;  %v1804_v45 = vsub.f32 %v1792_v34, %v1802_v43  ;;  %v1827_v46 = vsel %vm512_vm3, %v1822_v44, 0 }
0x13f0   :  { %3512 = vmatpush3.bf16.msra.mxu0 %v1827_v46 }
0x13f1   :  { %v1807_v31 = vmul.f32 1.442695, %v1804_v45  ;;  %3523 = vmatprep.subr.bf16.mxu0 %v4162_v15 }
0x13f3   :  { %3782 = vpow2.f32 %v1807_v31 }
0x13fc   :  { %v3781_v48 = vpop.eup %3780 }
0x13fd   :  { %v1809_v42 = vsel %vm387_vm2, %v3781_v48, 0.0 }
0x13fe   :  { %1810 = vadd.xlane.f32.xlu1 %v1809_v42 }
0x1400   :  { %v3783_v32 = vpop.eup %3782 }
0x1401   :  { %v1812_v17 = vsel %vm387_vm2, %v3783_v32, 0.0 }
0x1402   :  { %1813 = vadd.xlane.f32.xlu0 %v1812_v17 }
0x140f   :  { %1919 = vrot.lane.b32.xlu1 %v4634_v12, %s4166_s4 }
0x1413   :  { %1969 = vrot.lane.b32.xlu1 %v4638_v18, %s4166_s4 }
0x1417   :  { %1917 = vrot.lane.b32.xlu1 %v4634_v12, %s4167_s9 }
0x1418   :  { %1869 = vrot.lane.b32.xlu0 %v4638_v18, %s4165_s0 }
0x141c   :  { %1967 = vrot.lane.b32.xlu0 %v4638_v18, %s4167_s9 }
0x1487   :  { %v1811_v20 = vpop.xlane.xlu1 %1810 }
0x1488   :  { %3784 = vrcp.f32 %v1811_v20 }
0x148b   :  { %v1814_v21 = vpop.xlane.xlu0 %1813  ;;  %v1920_v53 = vpop.permute.xlu1 %1919 }
0x148c   :  { %3786 = vrcp.f32 %v1814_v21  ;;  %v1925_v57 = vsel %vm387_vm2, %v1920_v53, 0 }
0x148f   :  { %v1870_v49 = vpop.permute.xlu0 %1869  ;;  %v1970_v38 = vpop.permute.xlu1 %1969 }
0x1490   :  { %v1875_v50 = vsel %vm512_vm3, %v1870_v49, 0  ;;  %v1975_v60 = vsel %vm387_vm2, %v1970_v38, 0 }
0x1491   :  { %3518 = vmatpush3.bf16.msra.mxu1 %v1875_v50 }
0x1492   :  { %3529 = vmatprep.subr.bf16.mxu1 %v4162_v15 }
0x1493   :  { %v1918_v61 = vpop.permute.xlu1 %1917  ;;  %v1968_v62 = vpop.permute.xlu0 %1967 }
0x1495   :  { %v3785_v52 = vpop.eup %3784 }
0x1496   :  { %v1816_v54 = vmul.f32 %v3785_v52, %v3781_v48 }
0x1498   :  { %v1819_v55 = vpack.c.bf16 %v1816_v54, %v1816_v54 }
0x1499   :  { %v3787_v56 = vpop.eup %3786 }
0x149a   :  { %3514 = vmatmul.mubr.msk.bf16.vlgmr.msra.gmra.mxu0 %vm387_vm2, %v1819_v55  ;;  %v1818_v58 = vmul.f32 %v3787_v56, %v3783_v32 }
0x149b   :  { %3524 = vmatpush3.bf16.xpose.msra.mxu0 %v1925_v57  ;;  %3525 = vmatprep.mubr.msk.bf16.mxu0 %vm4163_vm1, %v4162_v15 }
0x149c   :  { %v1820_v59 = vpack.c.bf16 %v1818_v58, %v1818_v58  ;;  %3535 = vmatprep.subr.bf16.mxu0 %v4162_v15 }
0x149e   :  { %3520 = vmatmul.mubr.msk.bf16.vlgmr.msra.gmra.mxu1 %vm387_vm2, %v1820_v59 }
0x149f   :  { %3530 = vmatpush3.bf16.xpose.msra.mxu1 %v1975_v60  ;;  %3531 = vmatprep.mubr.msk.bf16.mxu1 %vm4163_vm1, %v4162_v15 }
0x14a0   :  { %3541 = vmatprep.subr.bf16.mxu1 %v4162_v15 }
0x14a2   :  { %3526 = vmatmul.mubr.msk.bf16.vlgmr.msra.gmra.mxu0 %vm387_vm2, %v1918_v61 }
0x14a3   :  { %3537 = vmatprep.mubr.msk.bf16.mxu0 %vm4163_vm1, %v4162_v15 }
0x14a6   :  { %3532 = vmatmul.mubr.msk.bf16.vlgmr.msra.gmra.mxu1 %vm387_vm2, %v1968_v62 }
0x14a7   :  { %3543 = vmatprep.mubr.msk.bf16.mxu1 %vm4163_vm1, %v4162_v15 }
0x155a   :  { %v4694_v63 = vpop.f32.mrf.mxu0 }
0x155c   :  { %v3515_v0 = vpop.f32.mrf.mxu0 }
0x155e   :  { %v1866_v1 = vpop.f32.mrf.mxu0  ;;  %v4696_v2 = vpop.f32.mrf.mxu1 }
0x1560   :  { %v3516_v3 = vpop.f32.mrf.mxu0  ;;  %v3521_v4 = vpop.f32.mrf.mxu1 }
0x1562   :  { %v1914_v7 = vpop.f32.mrf.mxu1  ;;  %v1961_v8 = vpop.f32.mrf.mxu0 }
0x1563   :  { %v1962_v10 = vadd.f32 %v4698_v9, %v1961_v8 }
0x1564   :  { %v3522_v11 = vpop.f32.mrf.mxu1  ;;  %v3527_v13 = vpop.f32.mrf.mxu0 }
0x1565   :  { %v2017_v14 = vsel %vm387_vm2, %v1962_v10, -inf }
0x1566   :  { %v2011_v16 = vpop.f32.mrf.mxu1  ;;  %2018 = vmax.xlane.f32.xlu1 %v2017_v14  ;;  %v1964_v19 = vpop.f32.mrf.mxu0 }
0x1567   :  { %v2012_v22 = vadd.f32 %v4656_v33, %v2011_v16 }
0x1568   :  { %v3528_v23 = vpop.f32.mrf.mxu0  ;;  %v3533_v24 = vpop.f32.mrf.mxu1 }
0x1569   :  { %v2020_v25 = vsel %vm387_vm2, %v2012_v22, -inf }
0x156a   :  { %2021 = vmax.xlane.f32.xlu0 %v2020_v25  ;;  %v2014_v29 = vpop.f32.mrf.mxu1 }
0x156c   :  { %v3534_v27 = vpop.f32.mrf.mxu1 }
0x1577   :  { %2041 = vrot.lane.b32.xlu1 %v4634_v12, %s4168_s8 }
0x157b   :  { %2139 = vrot.lane.b32.xlu1 %v4634_v12, %s4169_s12 }
0x157f   :  { %2189 = vrot.lane.b32.xlu1 %v4638_v18, %s4169_s12 }
0x1583   :  { %2137 = vrot.lane.b32.xlu1 %v4634_v12, %s4170_s5 }
0x15ef   :  { %v2019_v28 = vpop.xlane.xlu1 %2018 }
0x15f0   :  { %v2023_v26 = vsub.f32 %v1962_v10, %v2019_v28 }
0x15f2   :  { %v2025_v30 = vmul.f32 1.442695, %v2023_v26 }
0x15f3   :  { %v2022_v34 = vpop.xlane.xlu0 %2021  ;;  %v2042_v35 = vpop.permute.xlu1 %2041 }
0x15f4   :  { %3788 = vpow2.f32 %v2025_v30  ;;  %v2024_v36 = vsub.f32 %v2012_v22, %v2022_v34  ;;  %v2047_v37 = vsel %vm512_vm3, %v2042_v35, 0 }
0x15f5   :  { %3536 = vmatpush3.bf16.msra.mxu0 %v2047_v37 }
0x15f6   :  { %v2027_v39 = vmul.f32 1.442695, %v2024_v36  ;;  %3547 = vmatprep.subr.bf16.mxu0 %v4162_v15 }
0x15f7   :  { %v2140_v48 = vpop.permute.xlu1 %2139 }
0x15f8   :  { %3790 = vpow2.f32 %v2027_v39  ;;  %v2145_v20 = vsel %vm387_vm2, %v2140_v48, 0 }
0x15fb   :  { %v2190_v49 = vpop.permute.xlu1 %2189 }
0x15fc   :  { %v2195_v52 = vsel %vm387_vm2, %v2190_v49, 0 }
0x15ff   :  { %v2138_v53 = vpop.permute.xlu1 %2137 }
0x1601   :  { %v3789_v51 = vpop.eup %3788 }
0x1602   :  { %v2029_v47 = vsel %vm387_vm2, %v3789_v51, 0.0 }
0x1603   :  { %2030 = vadd.xlane.f32.xlu0 %v2029_v47 }
0x1605   :  { %v3791_v40 = vpop.eup %3790 }
0x1606   :  { %v2032_v41 = vsel %vm387_vm2, %v3791_v40, 0.0 }
0x1607   :  { %2033 = vadd.xlane.f32.xlu0 %v2032_v41 }
0x161d   :  { %2089 = vrot.lane.b32.xlu0 %v4638_v18, %s4168_s8 }
0x1621   :  { %2187 = vrot.lane.b32.xlu0 %v4638_v18, %s4170_s5 }
0x168c   :  { %v2031_v43 = vpop.xlane.xlu0 %2030 }
0x168d   :  { %3792 = vrcp.f32 %v2031_v43 }
0x1690   :  { %v2034_v44 = vpop.xlane.xlu0 %2033 }
0x1691   :  { %3794 = vrcp.f32 %v2034_v44 }
0x1694   :  { %v2090_v45 = vpop.permute.xlu0 %2089 }
0x1695   :  { %v2095_v46 = vsel %vm512_vm3, %v2090_v45, 0 }
0x1696   :  { %3542 = vmatpush3.bf16.msra.mxu1 %v2095_v46 }
0x1697   :  { %3553 = vmatprep.subr.bf16.mxu1 %v4162_v15 }
0x1698   :  { %v2188_v54 = vpop.permute.xlu0 %2187 }
0x169a   :  { %v3793_v31 = vpop.eup %3792 }
0x169b   :  { %v2036_v42 = vmul.f32 %v3793_v31, %v3789_v51 }
0x169d   :  { %v2039_v32 = vpack.c.bf16 %v2036_v42, %v2036_v42 }
0x169e   :  { %v3795_v17 = vpop.eup %3794 }
0x169f   :  { %3538 = vmatmul.mubr.msk.bf16.vlgmr.msra.gmra.mxu0 %vm387_vm2, %v2039_v32  ;;  %v2038_v21 = vmul.f32 %v3795_v17, %v3791_v40 }
0x16a0   :  { %3548 = vmatpush3.bf16.xpose.msra.mxu0 %v2145_v20  ;;  %3549 = vmatprep.mubr.msk.bf16.mxu0 %vm4163_vm1, %v4162_v15 }
0x16a1   :  { %v2040_v50 = vpack.c.bf16 %v2038_v21, %v2038_v21  ;;  %3559 = vmatprep.subr.bf16.mxu0 %v4162_v15 }
0x16a3   :  { %3544 = vmatmul.mubr.msk.bf16.vlgmr.msra.gmra.mxu1 %vm387_vm2, %v2040_v50 }
0x16a4   :  { %3554 = vmatpush3.bf16.xpose.msra.mxu1 %v2195_v52  ;;  %3555 = vmatprep.mubr.msk.bf16.mxu1 %vm4163_vm1, %v4162_v15 }
0x16a5   :  { %3565 = vmatprep.subr.bf16.mxu1 %v4162_v15 }
0x16a7   :  { %3550 = vmatmul.mubr.msk.bf16.vlgmr.msra.gmra.mxu0 %vm387_vm2, %v2138_v53 }
0x16a8   :  { %3561 = vmatprep.mubr.msk.bf16.mxu0 %vm4163_vm1, %v4162_v15 }
0x16ab   :  { %3556 = vmatmul.mubr.msk.bf16.vlgmr.msra.gmra.mxu1 %vm387_vm2, %v2188_v54 }
0x16ac   :  { %3567 = vmatprep.mubr.msk.bf16.mxu1 %vm4163_vm1, %v4162_v15 }
0x175f   :  { %v4738_v55 = vpop.f32.mrf.mxu0 }
0x1761   :  { %v3539_v56 = vpop.f32.mrf.mxu0 }
0x1763   :  { %v2086_v57 = vpop.f32.mrf.mxu0  ;;  %v4740_v58 = vpop.f32.mrf.mxu1 }
0x1764   :  { %v3693_v38 = vpack.i.bf16 %v4740_v58, %v4738_v55 }
0x1765   :  { %v3540_v59 = vpop.f32.mrf.mxu0  ;;  %v3545_v60 = vpop.f32.mrf.mxu1 }
0x1767   :  { %v2134_v61 = vpop.f32.mrf.mxu1  ;;  %v2181_v62 = vpop.f32.mrf.mxu0 }
0x1768   :  { %v2182_v0 = vadd.f32 %v4698_v9, %v2181_v62 }
0x1769   :  { %v3546_v1 = vpop.f32.mrf.mxu1  ;;  %v3551_v3 = vpop.f32.mrf.mxu0 }
0x176a   :  { %v2237_v4 = vsel %vm387_vm2, %v2182_v0, -inf }
0x176b   :  { %v2231_v7 = vpop.f32.mrf.mxu1  ;;  %2238 = vmax.xlane.f32.xlu1 %v2237_v4  ;;  %v2184_v8 = vpop.f32.mrf.mxu0 }
0x176c   :  { %v2232_v10 = vadd.f32 %v4656_v33, %v2231_v7 }
0x176d   :  { %v3552_v11 = vpop.f32.mrf.mxu0  ;;  %v3557_v13 = vpop.f32.mrf.mxu1 }
0x176e   :  { %v2240_v14 = vsel %vm387_vm2, %v2232_v10, -inf }
0x176f   :  { %2241 = vmax.xlane.f32.xlu0 %v2240_v14  ;;  %v2234_v16 = vpop.f32.mrf.mxu1 }
0x1771   :  { %v3558_v19 = vpop.f32.mrf.mxu1 }
0x177c   :  { %2261 = vrot.lane.b32.xlu1 %v4634_v12, %s4171_s23 }
0x1780   :  { %2359 = vrot.lane.b32.xlu1 %v4634_v12, %s4172_s10 }
0x1784   :  { %2409 = vrot.lane.b32.xlu1 %v4638_v18, %s4172_s10 }
0x1788   :  { %2357 = vrot.lane.b32.xlu1 %v4634_v12, %s4173_s1 }
0x17f4   :  { %v2239_v22 = vpop.xlane.xlu1 %2238 }
0x17f5   :  { %v2243_v23 = vsub.f32 %v2182_v0, %v2239_v22 }
0x17f7   :  { %v2245_v24 = vmul.f32 1.442695, %v2243_v23 }
0x17f8   :  { %v2242_v25 = vpop.xlane.xlu0 %2241  ;;  %v2262_v29 = vpop.permute.xlu1 %2261 }
0x17f9   :  { %3796 = vpow2.f32 %v2245_v24  ;;  %v2244_v27 = vsub.f32 %v2232_v10, %v2242_v25  ;;  %v2267_v28 = vsel %vm512_vm3, %v2262_v29, 0 }
0x17fa   :  { %3560 = vmatpush3.bf16.msra.mxu0 %v2267_v28 }
0x17fb   :  { %v2247_v26 = vmul.f32 1.442695, %v2244_v27  ;;  %3571 = vmatprep.subr.bf16.mxu0 %v4162_v15 }
0x17fc   :  { %v2360_v41 = vpop.permute.xlu1 %2359 }
0x17fd   :  { %3798 = vpow2.f32 %v2247_v26  ;;  %v2365_v46 = vsel %vm387_vm2, %v2360_v41, 0 }
0x1800   :  { %v2410_v48 = vpop.permute.xlu1 %2409 }
0x1801   :  { %v2415_v32 = vsel %vm387_vm2, %v2410_v48, 0 }
0x1804   :  { %v2358_v17 = vpop.permute.xlu1 %2357 }
0x1806   :  { %v3797_v30 = vpop.eup %3796 }
0x1807   :  { %v2249_v34 = vsel %vm387_vm2, %v3797_v30, 0.0 }
0x1808   :  { %2250 = vadd.xlane.f32.xlu0 %v2249_v34 }
0x180a   :  { %v3799_v35 = vpop.eup %3798 }
0x180b   :  { %v2252_v36 = vsel %vm387_vm2, %v3799_v35, 0.0 }
0x180c   :  { %2253 = vadd.xlane.f32.xlu0 %v2252_v36 }
0x1822   :  { %2309 = vrot.lane.b32.xlu0 %v4638_v18, %s4171_s23 }
0x1826   :  { %2407 = vrot.lane.b32.xlu0 %v4638_v18, %s4173_s1 }
0x1891   :  { %v2251_v37 = vpop.xlane.xlu0 %2250 }
0x1892   :  { %3800 = vrcp.f32 %v2251_v37  ;;  %v3720_v37 = vld [vmem:[%s4900_s7 + $0x18] sm:$0xff]  }
0x1895   :  { %v2254_v39 = vpop.xlane.xlu0 %2253 }
0x1896   :  { %3802 = vrcp.f32 %v2254_v39  ;;  %v3721_v39 = vld [vmem:[%s4900_s7 + $0x10] sm:$0xff]  }
0x1899   :  { %v2310_v51 = vpop.permute.xlu0 %2309 }
0x189a   :  { %v2315_v47 = vsel %vm512_vm3, %v2310_v51, 0 }
0x189b   :  { %3566 = vmatpush3.bf16.msra.mxu1 %v2315_v47 }
0x189c   :  { %3577 = vmatprep.subr.bf16.mxu1 %v4162_v15 }
0x189d   :  { %v2408_v20 = vpop.permute.xlu0 %2407 }
0x189f   :  { %v3801_v40 = vpop.eup %3800 }
0x18a0   :  { %v2256_v43 = vmul.f32 %v3801_v40, %v3797_v30 }
0x18a2   :  { %v2259_v44 = vpack.c.bf16 %v2256_v43, %v2256_v43 }
0x18a3   :  { %v3803_v45 = vpop.eup %3802 }
0x18a4   :  { %3562 = vmatmul.mubr.msk.bf16.vlgmr.msra.gmra.mxu0 %vm387_vm2, %v2259_v44  ;;  %v2258_v31 = vmul.f32 %v3803_v45, %v3799_v35 }
0x18a5   :  { %3572 = vmatpush3.bf16.xpose.msra.mxu0 %v2365_v46  ;;  %3573 = vmatprep.mubr.msk.bf16.mxu0 %vm4163_vm1, %v4162_v15 }
0x18a6   :  { %v2260_v42 = vpack.c.bf16 %v2258_v31, %v2258_v31  ;;  %3583 = vmatprep.subr.bf16.mxu0 %v4162_v15 }
0x18a8   :  { %3568 = vmatmul.mubr.msk.bf16.vlgmr.msra.gmra.mxu1 %vm387_vm2, %v2260_v42 }
0x18a9   :  { %3578 = vmatpush3.bf16.xpose.msra.mxu1 %v2415_v32  ;;  %3579 = vmatprep.mubr.msk.bf16.mxu1 %vm4163_vm1, %v4162_v15 }
0x18aa   :  { %3589 = vmatprep.subr.bf16.mxu1 %v4162_v15 }
0x18ac   :  { %3574 = vmatmul.mubr.msk.bf16.vlgmr.msra.gmra.mxu0 %vm387_vm2, %v2358_v17 }
0x18ad   :  { %3585 = vmatprep.mubr.msk.bf16.mxu0 %vm4163_vm1, %v4162_v15 }
0x18b0   :  { %3580 = vmatmul.mubr.msk.bf16.vlgmr.msra.gmra.mxu1 %vm387_vm2, %v2408_v20 }
0x18b1   :  { %3591 = vmatprep.mubr.msk.bf16.mxu1 %vm4163_vm1, %v4162_v15 }
0x1964   :  { %v2303_v21 = vpop.f32.mrf.mxu0 }
0x1966   :  { %v3563_v49 = vpop.f32.mrf.mxu0 }
0x1968   :  { %v2306_v50 = vpop.f32.mrf.mxu0  ;;  %v2351_v52 = vpop.f32.mrf.mxu1 }
0x196a   :  { %v3564_v53 = vpop.f32.mrf.mxu0  ;;  %v3569_v54 = vpop.f32.mrf.mxu1 }
0x196c   :  { %v2354_v56 = vpop.f32.mrf.mxu1  ;;  %v2401_v57 = vpop.f32.mrf.mxu0 }
0x196d   :  { %v2402_v59 = vadd.f32 %v4698_v9, %v2401_v57  ;;  %v3698_v9 = vpack.i.bf16 %v2351_v52, %v2303_v21 }
0x196e   :  { %v3570_v60 = vpop.f32.mrf.mxu1  ;;  %v3575_v61 = vpop.f32.mrf.mxu0 }
0x196f   :  { %v2457_v62 = vsel %vm387_vm2, %v2402_v59, -inf }
0x1970   :  { %v2451_v0 = vpop.f32.mrf.mxu1  ;;  %2458 = vmax.xlane.f32.xlu1 %v2457_v62  ;;  %v2404_v1 = vpop.f32.mrf.mxu0 }
0x1971   :  { %v2452_v3 = vadd.f32 %v4656_v33, %v2451_v0 }
0x1972   :  { %v3576_v4 = vpop.f32.mrf.mxu0  ;;  %v3581_v7 = vpop.f32.mrf.mxu1 }
0x1973   :  { %v2460_v8 = vsel %vm387_vm2, %v2452_v3, -inf }
0x1974   :  { %2461 = vmax.xlane.f32.xlu0 %v2460_v8  ;;  %v2454_v10 = vpop.f32.mrf.mxu1 }
0x1976   :  { %v3582_v11 = vpop.f32.mrf.mxu1 }
0x1981   :  { %2481 = vrot.lane.b32.xlu1 %v4634_v12, %s4174_s24 }
0x1985   :  { %3694 = vrot.lane.b32.xlu1 %v3693_v38, %s4154_s30 }
0x1989   :  { %3699 = vrot.lane.b32.xlu1 %v3698_v9, %s4145_s27 }
0x19f9   :  { %v2459_v13 = vpop.xlane.xlu1 %2458 }
0x19fa   :  { %v2463_v33 = vsub.f32 %v2402_v59, %v2459_v13 }
0x19fc   :  { %v2465_v14 = vmul.f32 1.442695, %v2463_v33 }
0x19fd   :  { %v2462_v16 = vpop.xlane.xlu0 %2461  ;;  %v2482_v19 = vpop.permute.xlu1 %2481 }
0x19fe   :  { %3804 = vpow2.f32 %v2465_v14  ;;  %v2464_v22 = vsub.f32 %v2452_v3, %v2462_v16  ;;  %v2487_v23 = vsel %vm512_vm3, %v2482_v19, 0 }
0x19ff   :  { %3584 = vmatpush3.bf16.msra.mxu0 %v2487_v23 }
0x1a00   :  { %v2467_v24 = vmul.f32 1.442695, %v2464_v22  ;;  %3595 = vmatprep.subr.bf16.mxu0 %v4162_v15 }
0x1a01   :  { %v3695_v48 = vpop.permute.xlu1 %3694 }
0x1a02   :  { %3806 = vpow2.f32 %v2467_v24  ;;  %v3697_v32 = vunpack.i.h.bf16 %v3695_v48  ;;  %v3696_v17 = vunpack.i.l.bf16 %v3695_v48 }
0x1a04   :  { %v2602_v50 = vsel %vm387_vm2, %v4696_v2, %v3697_v32  ;;  %v2601_v52 = vsel %vm387_vm2, %v4694_v63, %v3696_v17  ;;  %v3220_v2 = vld [vmem:[#allocation13 + $0x1] ss:$0 sm:$0xff] }
0x1a05   :  { %v3700_v42 = vpop.permute.xlu1 %3699 }
0x1a06   :  { %v3702_v20 = vunpack.i.h.bf16 %v3700_v42  ;;  %v3701_v21 = vunpack.i.l.bf16 %v3700_v42 }
0x1a08   :  { %v2603_v56 = vsel %vm1290_vm4, %v2601_v52, %v3701_v21  ;;  %v2604_v57 = vsel %vm1290_vm4, %v2602_v50, %v3702_v20 }
0x1a0b   :  { %v3805_v12 = vpop.eup %3804 }
0x1a0c   :  { %v2469_v55 = vsel %vm387_vm2, %v3805_v12, 0.0 }
0x1a0d   :  { %2470 = vadd.xlane.f32.xlu0 %v2469_v55 }
0x1a0f   :  { %v3807_v58 = vpop.eup %3806 }
0x1a10   :  { %v2472_v38 = vsel %vm387_vm2, %v3807_v58, 0.0 }
0x1a11   :  { %2473 = vadd.xlane.f32.xlu0 %v2472_v38 }
0x1a27   :  { %2529 = vrot.lane.b32.xlu0 %v4638_v18, %s4174_s24 }
0x1a96   :  { %v2471_v25 = vpop.xlane.xlu0 %2470 }
0x1a97   :  { %3808 = vrcp.f32 %v2471_v25 }
0x1a9a   :  { %v2474_v29 = vpop.xlane.xlu0 %2473 }
0x1a9b   :  { %3810 = vrcp.f32 %v2474_v29 }
0x1a9e   :  { %v2530_v27 = vpop.permute.xlu0 %2529 }
0x1a9f   :  { %v2535_v28 = vsel %vm512_vm3, %v2530_v27, 0 }
0x1aa0   :  { %3590 = vmatpush3.bf16.msra.mxu1 %v2535_v28 }
0x1aa1   :  { %3603 = vmatprep.subr.bf16.mxu1 %v4162_v15 }
0x1aa4   :  { %v3809_v26 = vpop.eup %3808 }
0x1aa5   :  { %v2476_v30 = vmul.f32 %v3809_v26, %v3805_v12  ;;  %v3723_v12 = vld [vmem:[%s4904_s11 + $0x10] sm:$0xff]  }
0x1aa7   :  { %v2479_v34 = vpack.c.bf16 %v2476_v30, %v2476_v30  ;;  %v3224_v30 = vld [vmem:[#allocation14 + $0x1] ss:$0 sm:$0xff] }
0x1aa8   :  { %v3811_v35 = vpop.eup %3810 }
0x1aa9   :  { %3586 = vmatmul.mubr.msk.bf16.vlgmr.msra.gmra.mxu0 %vm387_vm2, %v2479_v34  ;;  %v2478_v36 = vmul.f32 %v3811_v35, %v3807_v58 }
0x1aaa   :  { %3599 = vmatprep.mubr.msk.bf16.mxu0 %vm4163_vm1, %v4162_v15  ;;  %3596 = vmatpush3.bf16.msra.mxu0 %v3720_v37 }
0x1aab   :  { %v2480_v18 = vpack.c.bf16 %v2478_v36, %v2478_v36  ;;  %3597 = vmatprep.subr.bf16.mxu0 %v4162_v15 }
0x1aad   :  { %3592 = vmatmul.mubr.msk.bf16.vlgmr.msra.gmra.mxu1 %vm387_vm2, %v2480_v18  ;;  %v3225_v18 = vld [vmem:[#allocation16 + $0x1] ss:$0 sm:$0xff] }
0x1aae   :  { %3607 = vmatprep.mubr.msk.bf16.mxu1 %vm4163_vm1, %v4162_v15  ;;  %3598 = vmatpush3.bf16.msra.mxu0 %v3721_v39 }
0x1aaf   :  { %3611 = vmatprep.subr.bf16.mxu0 %v4162_v15 }
0x1b69   :  { %v2523_v51 = vpop.f32.mrf.mxu0 }
0x1b6b   :  { %v3587_v47 = vpop.f32.mrf.mxu0 }
0x1b6d   :  { %v2526_v40 = vpop.f32.mrf.mxu0  ;;  %v2571_v41 = vpop.f32.mrf.mxu1 }
0x1b6e   :  { %v3703_v43 = vpack.i.bf16 %v2571_v41, %v2523_v51  ;;  %v3724_v40 = vld [vmem:[%s4906_s13 + $0x38] sm:$0xff]   ;;  %v3725_v41 = vld [vmem:[%s4906_s13 + $0x30] sm:$0xff]  }
0x1b6f   :  { %v3588_v44 = vpop.f32.mrf.mxu0  ;;  %v3593_v45 = vpop.f32.mrf.mxu1 }
0x1b70   :  { %3704 = vrot.lane.b32.xlu1 %v3703_v43, %s4175_s22  ;;  %v3726_v43 = vld [vmem:[%s4906_s13 + $0x28] sm:$0xff]   ;;  %v3727_v44 = vld [vmem:[%s4906_s13 + $0x20] sm:$0xff]  }
0x1b71   :  { %v2574_v46 = vpop.f32.mrf.mxu1  ;;  %v3230_v45 = vld [vmem:[#allocation17 + $0x1] ss:$0 sm:$0xff] }
0x1b73   :  { %v3594_v31 = vpop.f32.mrf.mxu1 }
0x1be2   :  { %v3705_v49 = vpop.permute.xlu1 %3704 }
0x1be3   :  { %v3707_v53 = vunpack.i.h.bf16 %v3705_v49  ;;  %v3706_v54 = vunpack.i.l.bf16 %v3705_v49 }
0x1be5   :  { %v2606_v59 = vsel %vm1293_vm5, %v2604_v57, %v3707_v53  ;;  %v2605_v60 = vsel %vm1293_vm5, %v2603_v56, %v3706_v54 }
0x1be6   :  { %v2607_v61 = vpack.c.bf16 %v2606_v59, %v2605_v60 }
0x1be8   :  { %3600 = vmatmul.mubr.msk.bf16.vlgmr.msra.gmra.mxu0 %vm256_vm0, %v2607_v61 }
0x1be9   :  { %3619 = vmatprep.mubr.msk.bf16.mxu0 %vm4163_vm1, %v4162_v15  ;;  %3612 = vmatpush3.bf16.msra.mxu0 %v3724_v40  ;;  %v3249_v40 = vld [vmem:[#allocation22 + $0x1] ss:$0 sm:$0xff] }
0x1bea   :  { %3613 = vmatprep.subr.bf16.mxu0 %v4162_v15 }
0x1bed   :  { %3614 = vmatpush3.bf16.msra.mxu0 %v3725_v41 }
0x1bee   :  { %3615 = vmatprep.subr.bf16.mxu0 %v4162_v15 }
0x1bf1   :  { %3616 = vmatpush3.bf16.msra.mxu0 %v3726_v43 }
0x1bf2   :  { %3617 = vmatprep.subr.bf16.mxu0 %v4162_v15 }
0x1bf5   :  { %3618 = vmatpush3.bf16.msra.mxu0 %v3727_v44 }
0x1bf6   :  { %3637 = vmatprep.subr.bf16.mxu0 %v4162_v15 }
0x1ca8   :  { %v2670_v62 = vpop.f32.mrf.mxu0 }
0x1ca9   :  { %v2671_v0 = vadd.f32 %v3220_v2, %v2670_v62 }
0x1caa   :  { %v3601_v63 = vpop.f32.mrf.mxu0 }
0x1cab   :  { %v2677_v1 = vadd.f32 %v2671_v0, %v4625_v5 }
0x1cac   :  { %v2673_v3 = vpop.f32.mrf.mxu0 }
0x1cad   :  { %v2674_v4 = vadd.f32 %v3220_v2, %v2673_v3  ;;  %v2683_v7 = vsel %vm256_vm0, %v2677_v1, 0.0 }
0x1cae   :  { %2684 = vadd.xlane.f32.xlu0 %v2683_v7  ;;  %v3602_v8 = vpop.f32.mrf.mxu0  ;;  %v3242_v7 = vld [vmem:[#allocation19 + $0x1] ss:$0 sm:$0xff] }
0x1caf   :  { %v2678_v10 = vadd.f32 %v2674_v4, %v4627_v6  ;;  %v3722_v6 = vld [vmem:[%s4904_s11 + $0x18] sm:$0xff]  }
0x1cb0   :  { %3604 = vmatpush3.bf16.msra.mxu1 %v3722_v6 }
0x1cb1   :  { %v2686_v11 = vsel %vm256_vm0, %v2678_v10, 0.0  ;;  %3605 = vmatprep.subr.bf16.mxu1 %v4162_v15 }
0x1cb2   :  { %2687 = vadd.xlane.f32.xlu1 %v2686_v11 }
0x1cb4   :  { %3606 = vmatpush3.bf16.msra.mxu1 %v3723_v12 }
0x1cb5   :  { %3623 = vmatprep.subr.bf16.mxu1 %v4162_v15 }
0x1d37   :  { %v2685_v9 = vpop.xlane.xlu0 %2684 }
0x1d38   :  { %v2689_v13 = vmul.f32 0.03125, %v2685_v9 }
0x1d3a   :  { %v2691_v33 = vsub.f32 %v2677_v1, %v2689_v13 }
0x1d3b   :  { %v2688_v14 = vpop.xlane.xlu1 %2687 }
0x1d3c   :  { %v2690_v16 = vmul.f32 0.03125, %v2688_v14  ;;  %v2693_v19 = vmul.f32 %v2691_v33, %v2691_v33 }
0x1d3e   :  { %v2692_v22 = vsub.f32 %v2678_v10, %v2690_v16  ;;  %v2695_v5 = vsel %vm256_vm0, %v2693_v19, 0.0 }
0x1d3f   :  { %2696 = vadd.xlane.f32.xlu0 %v2695_v5 }
0x1d40   :  { %v2694_v23 = vmul.f32 %v2692_v22, %v2692_v22 }
0x1d42   :  { %v2698_v24 = vsel %vm256_vm0, %v2694_v23, 0.0 }
0x1d43   :  { %2699 = vadd.xlane.f32.xlu0 %v2698_v24 }
0x1dc8   :  { %v2697_v55 = vpop.xlane.xlu0 %2696 }
0x1dc9   :  { %v2701_v58 = vmul.f32 0.03125, %v2697_v55 }
0x1dcb   :  { %v2703_v38 = vadd.f32 1e-12, %v2701_v58 }
0x1dcc   :  { %v2700_v25 = vpop.xlane.xlu0 %2699 }
0x1dcd   :  { %3812 = vrsqrt.f32 %v2703_v38  ;;  %v2702_v29 = vmul.f32 0.03125, %v2700_v25 }
0x1dcf   :  { %v2704_v27 = vadd.f32 1e-12, %v2702_v29 }
0x1dd1   :  { %3814 = vrsqrt.f32 %v2704_v27 }
0x1dda   :  { %v3813_v28 = vpop.eup %3812 }
0x1ddb   :  { %v2707_v26 = vmul.f32 %v3813_v28, %v2691_v33 }
0x1ddd   :  { %v2715_v36 = vmul.f32 %v3224_v30, %v2707_v26 }
0x1dde   :  { %v3815_v34 = vpop.eup %3814 }
0x1ddf   :  { %v2708_v35 = vmul.f32 %v3815_v34, %v2692_v22  ;;  %v2723_v39 = vadd.f32 %v3225_v18, %v2715_v36 }
0x1de1   :  { %v2716_v37 = vmul.f32 %v3224_v30, %v2708_v35 }
0x1de3   :  { %v2724_v51 = vadd.f32 %v3225_v18, %v2716_v37  ;;  %v3248_v37 = vld [vmem:[#allocation20 + $0x1] ss:$0 sm:$0xff] }
0x1de5   :  { %v2725_v47 = vpack.c.bf16 %v2724_v51, %v2723_v39 }
0x1de7   :  { %3608 = vmatmul.mubr.msk.bf16.vlgmr.msra.gmra.mxu1 %vm256_vm0, %v2725_v47 }
0x1de8   :  { %3625 = vmatprep.mubr.msk.bf16.mxu1 %vm4163_vm1, %v4162_v15 }
0x1ea7   :  { %v2788_v46 = vpop.f32.mrf.mxu1 }
0x1ea8   :  { %v2789_v31 = vadd.f32 %v3230_v45, %v2788_v46  ;;  %v2947_v46 = vld [vmem:[#allocation7] sm:$0x1] }
0x1ea9   :  { %v3609_v48 = vpop.f32.mrf.mxu1 }
0x1eaa   :  { %v2797_v42 = vmul.f32 0.044715, %v2789_v31  ;;  %v2795_v62 = vmul.f32 0.5, %v2789_v31  ;;  %v3729_v48 = vld [vmem:[%s4910_s17] sm:$0xff]  }
0x1eab   :  { %v2791_v32 = vpop.f32.mrf.mxu1 }
0x1eac   :  { %v2799_v17 = vmul.f32 %v2797_v42, %v2789_v31  ;;  %v2792_v20 = vadd.f32 %v3230_v45, %v2791_v32 }
0x1ead   :  { %v3610_v21 = vpop.f32.mrf.mxu1 }
0x1eae   :  { %v2801_v49 = vmul.f32 %v2799_v17, %v2789_v31  ;;  %v2798_v50 = vmul.f32 0.044715, %v2792_v20  ;;  %v2796_v0 = vmul.f32 0.5, %v2792_v20 }
0x1eb0   :  { %v2803_v52 = vadd.f32 %v2801_v49, %v2789_v31  ;;  %v2800_v53 = vmul.f32 %v2798_v50, %v2792_v20  ;;  %v3728_v31 = vld [vmem:[%s4910_s17 + $0x8] sm:$0xff]   ;;  %v3731_v50 = vld [vmem:[%s4912_s19] sm:$0xff]  }
0x1eb1   :  { %v3730_v49 = vld [vmem:[%s4912_s19 + $0x8] sm:$0xff]   ;;  %s4106_s19 = scalar_lea.vmem %s3135_s2, 32 }
0x1eb2   :  { %v2805_v54 = vmul.f32 0.7978846, %v2803_v52  ;;  %v2802_v56 = vmul.f32 %v2800_v53, %v2792_v20  ;;  %v3251_v52 = vld [vmem:[#allocation23] ss:$0 sm:$0xff]  ;;  %p4107_p0 = scmp.ne.s32.totalorder %s3135_s2, %s4106_s19  ;;  %p4112_p2 = scmp.lt.s32.totalorder %s4106_s19, %s4106_s19 }
0x1eb4   :  { %3816 = vtanh.f32 %v2805_v54  ;;  %v2804_v57 = vadd.f32 %v2802_v56, %v2792_v20  ;;  %p4113_p3 = por %p4112_p2, %p4111_p1 }
0x1eb6   :  { %v2806_v59 = vmul.f32 0.7978846, %v2804_v57  ;;  %p4114_p4 = pnand %p4113_p3, %p4107_p0 }
0x1eb8   :  { %3818 = vtanh.f32 %v2806_v59 }
0x1ec1   :  { %v3817_v60 = vpop.eup %3816 }
0x1ec2   :  { %v2809_v61 = vadd.f32 1.0, %v3817_v60 }
0x1ec4   :  { %v2811_v1 = vmul.f32 %v2809_v61, %v2795_v62 }
0x1ec5   :  { %v3819_v2 = vpop.eup %3818 }
0x1ec6   :  { %v2810_v63 = vadd.f32 1.0, %v3819_v2  ;;  %v3255_v2 = vld [vmem:[%s4913_s20] ss:$0 sm:$0xff] }
0x1ec8   :  { %v2812_v3 = vmul.f32 %v2810_v63, %v2796_v0 }
0x1eca   :  { %v2813_v4 = vpack.c.bf16 %v2812_v3, %v2811_v1 }
0x1ecc   :  { %3620 = vmatmul.mubr.msk.bf16.vlgmr.msra.gmra.mxu0 %vm1536_vm6, %v2813_v4 }
0x1ecd   :  { %3641 = vmatprep.mubr.msk.bf16.mxu0 %vm4163_vm1, %v4162_v15  ;;  %3638 = vmatpush3.bf16.msra.mxu0 %v3730_v49 }
0x1ece   :  { %3639 = vmatprep.subr.bf16.mxu0 %v4162_v15 }
0x1ed1   :  { %3640 = vmatpush3.bf16.msra.mxu0 %v3731_v50 }
0x1f8c   :  { %v2892_v8 = vpop.f32.mrf.mxu0 }
0x1f8d   :  { %v2893_v10 = vadd.f32 %v3242_v7, %v2892_v8 }
0x1f8e   :  { %v3621_v11 = vpop.f32.mrf.mxu0 }
0x1f8f   :  { %v2899_v9 = vadd.f32 %v2893_v10, %v2723_v39 }
0x1f90   :  { %v2895_v13 = vpop.f32.mrf.mxu0 }
0x1f91   :  { %v2896_v33 = vadd.f32 %v3242_v7, %v2895_v13  ;;  %v2905_v14 = vsel %vm256_vm0, %v2899_v9, 0.0 }
0x1f92   :  { %2906 = vadd.xlane.f32.xlu0 %v2905_v14  ;;  %v3622_v16 = vpop.f32.mrf.mxu0 }
0x1f93   :  { %v2900_v19 = vadd.f32 %v2896_v33, %v2724_v51 }
0x1f95   :  { %v2908_v22 = vsel %vm256_vm0, %v2900_v19, 0.0 }
0x1f96   :  { %2909 = vadd.xlane.f32.xlu1 %v2908_v22 }
0x201b   :  { %v2907_v5 = vpop.xlane.xlu0 %2906 }
0x201c   :  { %v2911_v23 = vmul.f32 0.03125, %v2907_v5 }
0x201e   :  { %v2913_v24 = vsub.f32 %v2899_v9, %v2911_v23 }
0x201f   :  { %v2910_v6 = vpop.xlane.xlu1 %2909 }
0x2020   :  { %v2912_v12 = vmul.f32 0.03125, %v2910_v6  ;;  %v2915_v55 = vmul.f32 %v2913_v24, %v2913_v24 }
0x2022   :  { %v2914_v58 = vsub.f32 %v2900_v19, %v2912_v12  ;;  %v2917_v38 = vsel %vm256_vm0, %v2915_v55, 0.0 }
0x2023   :  { %2918 = vadd.xlane.f32.xlu0 %v2917_v38 }
0x2024   :  { %v2916_v25 = vmul.f32 %v2914_v58, %v2914_v58 }
0x2026   :  { %v2920_v29 = vsel %vm256_vm0, %v2916_v25, 0.0 }
0x2027   :  { %2921 = vadd.xlane.f32.xlu1 %v2920_v29 }
0x20ac   :  { %v2919_v27 = vpop.xlane.xlu0 %2918 }
0x20ad   :  { %v2923_v28 = vmul.f32 0.03125, %v2919_v27 }
0x20af   :  { %v2925_v26 = vadd.f32 1e-12, %v2923_v28 }
0x20b0   :  { %v2922_v30 = vpop.xlane.xlu1 %2921 }
0x20b1   :  { %3820 = vrsqrt.f32 %v2925_v26  ;;  %v2924_v34 = vmul.f32 0.03125, %v2922_v30 }
0x20b3   :  { %v2926_v35 = vadd.f32 1e-12, %v2924_v34 }
0x20b5   :  { %3822 = vrsqrt.f32 %v2926_v35 }
0x20be   :  { %v3821_v36 = vpop.eup %3820 }
0x20bf   :  { %v2929_v18 = vmul.f32 %v3821_v36, %v2913_v24 }
0x20c1   :  { %v2937_v47 = vmul.f32 %v3248_v37, %v2929_v18 }
0x20c2   :  { %v3823_v39 = vpop.eup %3822 }
0x20c3   :  { %v2930_v51 = vmul.f32 %v3823_v39, %v2914_v58  ;;  %v2945_v43 = vadd.f32 %v3249_v40, %v2937_v47 }
0x20c5   :  { %v2938_v41 = vmul.f32 %v3248_v37, %v2930_v51 }
0x20c7   :  { %v2946_v44 = vadd.f32 %v3249_v40, %v2938_v41 }
0x20c9   :  { %v2948_v45 = vpack.c.bf16 %v2946_v44, %v2945_v43 }
0x20cb   :  { %3624 = vmatpush3.bf16.msra.mxu1 %v2948_v45 }
0x20cc   :  { %3629 = vmatprep.subr.bf16.mxu1 %v4162_v15 }
0x20ce   :  { %3626 = vmatmul.mubr.msk.bf16.vlgmr.msra.gmra.mxu1 %vm1290_vm4, %v2947_v46 }
0x20cf   :  { %3630 = vmatpush3.bf16.msra.mxu1 %v3728_v31  ;;  %3633 = vmatprep.mubr.msk.bf16.mxu1 %vm4163_vm1, %v4162_v15 }
0x20d0   :  { %3631 = vmatprep.subr.bf16.mxu1 %v4162_v15 }
0x20d3   :  { %3632 = vmatpush3.bf16.msra.mxu1 %v3729_v48 }
0x218e   :  { %v2986_v42 = vpop.f32.mrf.mxu1 }
0x218f   :  { %v2992_v32 = vpack.c.bf16 %v2986_v42, %v2986_v42 }
0x2190   :  { %v3627_v17 = vpop.f32.mrf.mxu1 }
0x2191   :  { %3634 = vmatmul.mubr.msk.bf16.vlgmr.msra.gmra.mxu1 %vm256_vm0, %v2992_v32 }
0x2192   :  { %v2989_v20 = vpop.f32.mrf.mxu1 }
0x2194   :  { %v3628_v21 = vpop.f32.mrf.mxu1 }
0x2251   :  { %v3053_v53 = vpop.f32.mrf.mxu1 }
0x2252   :  { %v3054_v54 = vadd.f32 %v3251_v52, %v3053_v53 }
0x2253   :  { %v3635_v56 = vpop.f32.mrf.mxu1 }
0x2254   :  { %v3059_v57 = vmax.f32 %v3054_v54, 0.0 }
0x2255   :  { %v3056_v59 = vpop.f32.mrf.mxu1 }
0x2256   :  { %v3060_v60 = vpack.c.bf16 %v3059_v57, %v3059_v57 }
0x2257   :  { %v3636_v61 = vpop.f32.mrf.mxu1 }
0x2258   :  { %3642 = vmatmul.mubr.msk.bf16.vlgmr.msra.gmra.mxu0 %vm256_vm0, %v3060_v60 }
0x2318   :  { %v3121_v15 = vpop.f32.mrf.mxu0 }
0x2319   :  { %v3122_v62 = vadd.f32 %v3255_v2, %v3121_v15 }
0x231a   :  { %v3643_v0 = vpop.f32.mrf.mxu0 }
0x231b   :  { %3127 = vst [vmem:[#allocation25] sm:$0x3] %v3122_v62 }
0x231c   :  { %v3124_v63 = vpop.f32.mrf.mxu0 }
0x231d   :  { %4117 = shalt.err (!%p4114_p4)
}
0x231e   :  { %3137 = dma.vmem_to_hbm [thread:$0]  %s3135_s2, 32, %s4914_s21, [#allocation4]   ;;  %v3644_v1 = vpop.f32.mrf.mxu0 }
0x231f   :  { %4142 = dma.done.wait [#allocation4], 32  }
0x2320   :  { %4143 = vsyncadd [#allocation4], 4294967264 }
0x2321   :  { %3141 = vsyncpa [#allocation3], 1 }
0x2322   :  { %3142 = vsyncpa [#allocation6], 1 }
0x2323   :  { %3143 = vsyncpa [#allocation9], 1 }
0x2324   :  { %3144 = vsyncpa [#allocation12], 1 }
0x2325   :  { %3145 = vsyncpa [#allocation15], 1 }
0x2326   :  { %3146 = vsyncpa [#allocation18], 1 }
0x2327   :  { %3147 = vsyncpa [#allocation21], 1 }
0x2328   :  { %3148 = vsyncpa [#allocation24], 1 }
0x2329   :  { %3149 = vsyncpa [#allocation4], 1 }

</bundles_post_ra>
